<compile_context>
chip_gen: v7x
topology: tpu7x:2x2x1
jax: 0.10.0
libtpu: 0.0.40
codegen_flags: <defaults>
</compile_context>

<pallas_src>
from collections import namedtuple
from functools import partial

import numpy as np
import jax
import jax.numpy as jnp
from jax import lax
from jax.experimental import pallas as pl
from jax.experimental.pallas import tpu as pltpu


Config = namedtuple(
    "Config", ["arc_mlp_size", "lab_mlp_size", "use_linearization", "use_distance"]
)

_LANE = 128


def _round_up(x, m):
    return ((x + m - 1) // m) * m


def _nbytes(shape, dtype):
    return int(np.prod(shape)) * np.dtype(dtype).itemsize


def _vmem_limit(block_bytes, scratch_bytes=0):
    # Pipelined blocks are double-buffered; leave headroom for compiler
    # internal scratch. Floor at the default scoped limit, cap below v7x's
    # 64 MiB physical VMEM.
    total = 2 * block_bytes + scratch_bytes + (8 << 20)
    return int(min(max(total, 32 << 20), 56 << 20))


# ----------------------------------------------------------------------------
# Kernel 1: fused O=1 scorers (arc / lin / dist), grid = (batch,).
#   h = relu(x @ Wcat + bcat)                     [T, S*H1p]   (weights DMA'd once)
#   out[b, s] = h1[:, s] @ U[s] @ h2[:, s]^T      [T, T]       (bias folded into U)
# ----------------------------------------------------------------------------
def _units_kernel(x1_ref, x2_ref, w1_ref, b1_ref, w2_ref, b2_ref, u_ref, out_ref):
    S, H1, _ = u_ref.shape
    h1 = jnp.maximum(
        jnp.dot(x1_ref[0], w1_ref[...], preferred_element_type=jnp.float32)
        + b1_ref[...],
        0.0,
    ).astype(jnp.bfloat16)                                           # [Tp, S*H1]
    h2 = jnp.maximum(
        jnp.dot(x2_ref[0], w2_ref[...], preferred_element_type=jnp.float32)
        + b2_ref[...],
        0.0,
    ).astype(jnp.bfloat16)
    for s in range(S):                                               # static, S <= 3
        h1s = h1[:, s * H1:(s + 1) * H1]
        h2s = h2[:, s * H1:(s + 1) * H1]
        tmp = jnp.dot(h1s, u_ref[s], preferred_element_type=jnp.float32)   # [Tp, H1]
        out_ref[0, s] = lax.dot_general(                                   # [Tp, Tp]
            tmp.astype(jnp.bfloat16), h2s,
            dimension_numbers=(((1,), (1,)), ((), ())),
            preferred_element_type=jnp.float32,
        )


def deep_biaffine_units(x1, x2, up):
    """x1, x2: [B, Tp, Rp] bf16; stacked O=1 scorers. Returns [B, S, Tp, Tp] f32."""
    B, Tp, Rp = x1.shape
    S, H1, _ = up["U"].shape
    SH = S * H1
    block_bytes = (
        2 * _nbytes((Tp, Rp), jnp.bfloat16)          # x1, x2
        + 2 * _nbytes((Rp, SH), jnp.bfloat16)        # W1cat, W2cat
        + 2 * _nbytes((1, SH), jnp.float32)          # b1cat, b2cat
        + _nbytes((S, H1, H1), jnp.bfloat16)         # U
        + _nbytes((S, Tp, Tp), jnp.float32)          # out block
    )
    return pl.pallas_call(
        _units_kernel,
        out_shape=jax.ShapeDtypeStruct((B, S, Tp, Tp), jnp.float32),
        grid_spec=pltpu.PrefetchScalarGridSpec(
            num_scalar_prefetch=0,
            grid=(B,),
            in_specs=[
                pl.BlockSpec((1, Tp, Rp), lambda b: (b, 0, 0)),    # x1
                pl.BlockSpec((1, Tp, Rp), lambda b: (b, 0, 0)),    # x2
                pl.BlockSpec((Rp, SH), lambda b: (0, 0)),          # W1cat (constant -> 1 DMA)
                pl.BlockSpec((1, SH), lambda b: (0, 0)),           # b1cat
                pl.BlockSpec((Rp, SH), lambda b: (0, 0)),          # W2cat
                pl.BlockSpec((1, SH), lambda b: (0, 0)),           # b2cat
                pl.BlockSpec((S, H1, H1), lambda b: (0, 0, 0)),    # U (constant -> 1 DMA)
            ],
            out_specs=pl.BlockSpec((1, S, Tp, Tp), lambda b: (b, 0, 0, 0)),
        ),
        compiler_params=pltpu.CompilerParams(
            dimension_semantics=("parallel",),
            vmem_limit_bytes=_vmem_limit(block_bytes),
        ),
    )(x1, x2, up["W1"], up["b1"], up["W2"], up["b2"], up["U"])


# ----------------------------------------------------------------------------
# Kernel 2: multi-channel label scorer, grid = (batch_blocks, channel_blocks).
# h1/h2 are computed ONCE per batch block (at channel block 0) into VMEM
# scratch and reused for all channel blocks (channel axis is "arbitrary").
# U is pre-concatenated per channel block: [H1p, O_BLK*H1p].
# ----------------------------------------------------------------------------
def _labels_kernel(x1_ref, x2_ref, w1_ref, b1_ref, w2_ref, b2_ref, u_ref, out_ref,
                   h1_ref, h2_ref):
    BB, Tp, Rp = x1_ref.shape
    _, H1, OH = u_ref.shape
    O_BLK = OH // H1

    @pl.when(pl.program_id(1) == 0)
    def _():
        for bb in range(BB):                                        # static, BB <= 2
            h1 = jnp.dot(x1_ref[bb], w1_ref[...],
                         preferred_element_type=jnp.float32) + b1_ref[...]
            h2 = jnp.dot(x2_ref[bb], w2_ref[...],
                         preferred_element_type=jnp.float32) + b2_ref[...]
            h1_ref[bb] = jnp.maximum(h1, 0.0).astype(h1_ref.dtype)
            h2_ref[bb] = jnp.maximum(h2, 0.0).astype(h2_ref.dtype)

    u_cat = u_ref[0]                                                # [H1, O_BLK*H1]
    for bb in range(BB):                                            # static
        tmp = jnp.dot(h1_ref[bb], u_cat,
                      preferred_element_type=jnp.float32)           # [Tp, O_BLK*H1]
        tmp = tmp.astype(jnp.bfloat16)
        h2b = h2_ref[bb]
        for o in range(O_BLK):                                      # static
            out_ref[bb, o] = lax.dot_general(                       # [Tp, Tp]
                tmp[:, o * H1:(o + 1) * H1], h2b,
                dimension_numbers=(((1,), (1,)), ((), ())),
                preferred_element_type=jnp.float32,
            ).astype(out_ref.dtype)


def deep_biaffine_labels(x1, x2, params):
    """x1, x2: [B, Tp, Rp] bf16; shared-weight O-channel scorer -> [B, O_pad, Tp, Tp] bf16."""
    B, Tp, Rp = x1.shape
    n_ob, H1, OH = params["U"].shape
    O_BLK = OH // H1
    BB = 2 if B % 2 == 0 else 1
    block_bytes = (
        2 * _nbytes((BB, Tp, Rp), jnp.bfloat16)       # x1, x2
        + 2 * _nbytes((Rp, H1), jnp.bfloat16)         # W1, W2
        + 2 * _nbytes((1, H1), jnp.float32)           # b1, b2
        + _nbytes((1, H1, OH), jnp.bfloat16)          # U block
        + _nbytes((BB, O_BLK, Tp, Tp), jnp.bfloat16)  # out block
    )
    scratch_bytes = 2 * _nbytes((BB, Tp, H1), jnp.bfloat16)
    return pl.pallas_call(
        _labels_kernel,
        out_shape=jax.ShapeDtypeStruct((B, n_ob * O_BLK, Tp, Tp), jnp.bfloat16),
        grid_spec=pltpu.PrefetchScalarGridSpec(
            num_scalar_prefetch=0,
            grid=(B // BB, n_ob),
            in_specs=[
                pl.BlockSpec((BB, Tp, Rp), lambda b, o: (b, 0, 0)),   # x1
                pl.BlockSpec((BB, Tp, Rp), lambda b, o: (b, 0, 0)),   # x2
                pl.BlockSpec((Rp, H1), lambda b, o: (0, 0)),          # W1 (1 DMA)
                pl.BlockSpec((1, H1), lambda b, o: (0, 0)),           # b1
                pl.BlockSpec((Rp, H1), lambda b, o: (0, 0)),          # W2
                pl.BlockSpec((1, H1), lambda b, o: (0, 0)),           # b2
                pl.BlockSpec((1, H1, OH), lambda b, o: (o, 0, 0)),    # U[o-block] (streamed)
            ],
            out_specs=pl.BlockSpec((BB, O_BLK, Tp, Tp), lambda b, o: (b, o, 0, 0)),
            scratch_shapes=[
                pltpu.VMEM((BB, Tp, H1), jnp.bfloat16),   # h1 cache
                pltpu.VMEM((BB, Tp, H1), jnp.bfloat16),   # h2 cache
            ],
        ),
        compiler_params=pltpu.CompilerParams(
            # batch blocks parallel (megacore / v7x), channel blocks sequential
            # so the h1/h2 scratch persists.
            dimension_semantics=("parallel", "arbitrary"),
            vmem_limit_bytes=_vmem_limit(block_bytes, scratch_bytes),
        ),
    )(x1, x2, params["W1"], params["b1"], params["W2"], params["b2"], params["U"])


# ----------------------------------------------------------------------------
# Parameter construction (deterministic, synthetic), with ones-column folding
# and zero-padding of both the contraction dim R and the augmented hidden dim
# to multiples of 128 (padded rows/cols are exactly 0 -> results unchanged).
# ----------------------------------------------------------------------------
def make_deep_biaffine_params(key, in1, in2, hidden, out_size, scale=0.1):
    k = jax.random.split(key, 6)
    W1 = jax.random.normal(k[0], (in1, hidden), jnp.float32) * scale
    b1 = jax.random.normal(k[1], (hidden,), jnp.float32) * scale
    W2 = jax.random.normal(k[2], (in2, hidden), jnp.float32) * scale
    b2 = jax.random.normal(k[3], (hidden,), jnp.float32) * scale
    U = jax.random.normal(k[4], (out_size, hidden + 1, hidden + 1), jnp.float32) * scale
    bias = jax.random.normal(k[5], (out_size,), jnp.float32) * scale

    H1 = hidden + 1                     # augmented hidden (ones column at index `hidden`)
    H1p = _round_up(H1, _LANE)          # lane-aligned; padded features are exactly 0
    R1p = _round_up(in1, _LANE)         # lane-aligned contraction dim
    R2p = _round_up(in2, _LANE)

    # ReLU(0*x + 1) == 1 reproduces the "+ ones" augmentation; padded rows and
    # columns have zero weight AND zero bias, so they contribute nothing.
    W1a = jnp.zeros((R1p, H1p), jnp.float32).at[:in1, :hidden].set(W1)
    b1a = jnp.zeros((1, H1p), jnp.float32).at[0, :hidden].set(b1).at[0, hidden].set(1.0)
    W2a = jnp.zeros((R2p, H1p), jnp.float32).at[:in2, :hidden].set(W2)
    b2a = jnp.zeros((1, H1p), jnp.float32).at[0, :hidden].set(b2).at[0, hidden].set(1.0)

    Ua = jnp.zeros((out_size, H1p, H1p), jnp.float32).at[:, :H1, :H1].set(U)
    Ua = Ua.at[:, hidden, hidden].add(bias)   # biaffine bias folded into U[ones, ones]

    return {
        "W1": W1a.astype(jnp.bfloat16),
        "b1": b1a,                               # bias add done in f32
        "W2": W2a.astype(jnp.bfloat16),
        "b2": b2a,
        "U": Ua.astype(jnp.bfloat16),
    }


def make_params(key, config, rnn_size, n_label, label_block=8):
    ks = jax.random.split(key, 4)

    # Stack the O=1 scorers (order: arc [, lin] [, dist]) for the fused kernel,
    # concatenating the MLP weights along the hidden axis.
    unit_list = [make_deep_biaffine_params(ks[0], rnn_size, rnn_size, config.arc_mlp_size, 1)]
    if config.use_linearization:
        unit_list.append(
            make_deep_biaffine_params(ks[2], rnn_size, rnn_size, config.arc_mlp_size, 1))
    if config.use_distance:
        unit_list.append(
            make_deep_biaffine_params(ks[3], rnn_size, rnn_size, config.arc_mlp_size, 1))
    units = {
        "W1": jnp.concatenate([p["W1"] for p in unit_list], axis=1),   # [Rp, S*H1p]
        "b1": jnp.concatenate([p["b1"] for p in unit_list], axis=1),   # [1, S*H1p]
        "W2": jnp.concatenate([p["W2"] for p in unit_list], axis=1),
        "b2": jnp.concatenate([p["b2"] for p in unit_list], axis=1),
        "U": jnp.stack([p["U"][0] for p in unit_list]),                # [S, H1p, H1p]
    }

    # Label scorer: pad the channel axis to a multiple of O_BLK (zero channels,
    # sliced off downstream) and pre-concatenate U per channel block.
    lab = make_deep_biaffine_params(ks[1], rnn_size, rnn_size, config.lab_mlp_size, n_label)
    O_BLK = min(label_block, n_label)
    O_pad = _round_up(n_label, O_BLK)
    H1p = lab["U"].shape[-1]
    Ua = jnp.zeros((O_pad, H1p, H1p), lab["U"].dtype).at[:n_label].set(lab["U"])
    n_ob = O_pad // O_BLK
    U_cat = (Ua.reshape(n_ob, O_BLK, H1p, H1p)
               .transpose(0, 2, 1, 3)
               .reshape(n_ob, H1p, O_BLK * H1p))                       # [n_ob, H1p, O_BLK*H1p]
    lab = {"W1": lab["W1"], "b1": lab["b1"], "W2": lab["W2"], "b2": lab["b2"], "U": U_cat}

    return {"units": units, "lab": lab}


# ----------------------------------------------------------------------------
# CrossEntropyLoss(ignore_index=-1, reduction='sum'), NaN-safe for fully
# masked rows (logits are zeroed before logsumexp on ignored rows).
# ----------------------------------------------------------------------------
def ce_sum(logits, targets):
    valid = targets >= 0
    safe_t = jnp.where(valid, targets, 0)
    safe_logits = jnp.where(valid[:, None], logits, 0.0)
    logz = jax.scipy.special.logsumexp(safe_logits, axis=-1)
    picked = jnp.take_along_axis(safe_logits, safe_t[:, None], axis=-1)[:, 0]
    nll = logz - picked
    return jnp.sum(jnp.where(valid, nll, 0.0))


def _pad_to(x, Tp, Rp):
    B, T, R = x.shape
    return jnp.pad(x, ((0, 0), (0, Tp - T), (0, Rp - R)))


# ----------------------------------------------------------------------------
# Full BiaffineScorer.forward (jitted core; preds converted to numpy outside).
# ----------------------------------------------------------------------------
@partial(jax.jit, static_argnums=(1, 2))
def _forward_core(params, config, n_label,
                  head_repr, dep_repr, heads, labels, masks, total_len):
    # TODO(synk): nn.Dropout is identity here (deterministic eval-mode semantics).
    B, T, R = head_repr.shape
    Tp = _round_up(T, _LANE)   # lane-dense output stores, dense bf16 tiles
    Rp = _round_up(R, _LANE)   # dense MXU K tiles
    x1 = _pad_to(head_repr, Tp, Rp).astype(jnp.bfloat16)
    x2 = _pad_to(dep_repr, Tp, Rp).astype(jnp.bfloat16)

    # Fused arc/lin/dist scorers: [B, S, T, T]   (kept in channel-major layout).
    unit_scores = deep_biaffine_units(x1, x2, params["units"])[:, :, :T, :T]
    arc_score = unit_scores[:, 0]                                        # [B, T, T] f32

    # Label scorer: [B, L, T, T] bf16  (no transpose back to [B, T, T, L]).
    lab_score = deep_biaffine_labels(x1, x2, params["lab"])[:, :n_label, :T, :T]

    head_offset = None
    if config.use_distance or config.use_linearization:
        j = jnp.arange(T, dtype=jnp.int32)[None, None, :]
        i = jnp.arange(T, dtype=jnp.int32)[None, :, None]
        head_offset = jnp.broadcast_to(j - i, (B, T, T))                 # [B, T, T]

    s_idx = 1
    lin_scores = None
    if config.use_linearization:
        lin_scores = unit_scores[:, s_idx]
        s_idx += 1
        arc_score = arc_score + jax.nn.log_sigmoid(
            lin_scores * jnp.sign(head_offset).astype(jnp.float32)
        )

    dist_kld = None
    if config.use_distance:
        dist_scores = unit_scores[:, s_idx]
        s_idx += 1
        dist_pred = 1.0 + jax.nn.softplus(dist_scores)
        dist_target = jnp.abs(head_offset)
        dist_kld = -jnp.log((dist_target.astype(jnp.float32) - dist_pred) ** 2 / 2 + 1)
        arc_score = arc_score + dist_kld

    heads_t = heads[:, 1:]                                               # [B, T-1]
    labels_t = labels[:, 1:]

    diag = jnp.eye(T, dtype=bool)[None]
    arc_score = jnp.where(diag, -jnp.inf, arc_score)

    unlabeled_scores = arc_score[:, 1:, :]
    unlabeled_scores = jnp.where(masks[:, None, :], -jnp.inf, unlabeled_scores)
    unlabeled_target = jnp.where(masks[:, 1:], -1, heads_t)
    loss = ce_sum(unlabeled_scores.reshape(-1, T), unlabeled_target.reshape(-1))

    # deprel: lab_score is [B, L, T1, T2]; gather head column along T2,
    # upcast only the gathered CE logits to f32.
    deprel_scores = lab_score[:, :, 1:, :]                               # [B, L, T-1, T]
    gathered = jnp.take_along_axis(
        deprel_scores, heads_t[:, None, :, None], axis=3
    )[..., 0]                                                            # [B, L, T-1]
    gathered = jnp.transpose(gathered, (0, 2, 1)).reshape(-1, n_label).astype(jnp.float32)
    deprel_target = jnp.where(masks[:, 1:], -1, labels_t)
    loss = loss + ce_sum(gathered, deprel_target.reshape(-1))

    if config.use_linearization:
        lin_g = jnp.take_along_axis(
            lin_scores[:, 1:], heads_t[:, :, None], axis=2
        ).reshape(-1)
        lin_2 = jnp.stack([-lin_g / 2, lin_g / 2], axis=1)
        lin_target = jnp.take_along_axis(
            (head_offset[:, 1:] > 0).astype(jnp.int32), heads_t[:, :, None], axis=2
        )
        loss = loss + ce_sum(lin_2, lin_target.reshape(-1))

    if config.use_distance:
        dk = jnp.take_along_axis(dist_kld[:, 1:], heads_t[:, :, None], axis=2)
        loss = loss - jnp.sum(dk)

    loss = loss / total_len

    arc_log_softmax = jax.nn.log_softmax(arc_score, axis=2)              # [B, T, T]
    # TODO(synk): fuse this argmax (and the head gather above) into the labels
    # kernel for production shapes to avoid materializing [B, L, T, T] at all.
    lab_pred = jnp.argmax(lab_score, axis=1)                             # [B, T, T]
    return loss, arc_log_softmax, lab_pred


def biaffine_scorer_forward(params, config, n_label,
                            head_repr, dep_repr, heads, labels, masks, lengths):
    total_len = jnp.asarray(float(sum(lengths)), jnp.float32)
    loss, arc_lsm, lab_pred = _forward_core(
        params, config, n_label, head_repr, dep_repr, heads, labels, masks, total_len
    )
    preds = [np.asarray(arc_lsm), np.asarray(lab_pred)]
    return loss, preds


# ----------------------------------------------------------------------------
# Example run
# ----------------------------------------------------------------------------
if __name__ == "__main__":
    # At these toy sizes the kernels are launch-overhead dominated; they exist
    # to exercise the path used for realistic parser sizes (T/R ~ 512/800).
    B, T, R = 2, 8, 32
    n_label = 4
    config = Config(arc_mlp_size=32, lab_mlp_size=32,
                    use_linearization=True, use_distance=True)

    key = jax.random.PRNGKey(0)
    k_param, k_h, k_d, k_lab, *k_heads = jax.random.split(key, 4 + T)

    params = make_params(k_param, config, R, n_label)

    head_repr = jax.random.normal(k_h, (B, T, R), jnp.float32)
    dep_repr = jax.random.normal(k_d, (B, T, R), jnp.float32)

    # heads[b, t] in [0, t) for t >= 1 (valid dependency heads; never the diagonal).
    head_cols = [jnp.zeros((B,), jnp.int32)]
    for t in range(1, T):
        head_cols.append(jax.random.randint(k_heads[t - 1], (B,), 0, t, jnp.int32))
    heads = jnp.stack(head_cols, axis=1)                                 # [B, T]

    labels = jax.random.randint(k_lab, (B, T), 0, n_label, jnp.int32)

    # masks: True = padding. Sentence 0 is full length, sentence 1 has 2 pad tokens.
    masks = jnp.array([[False] * T, [False] * (T - 2) + [True] * 2], dtype=bool)
    lengths = [T, T - 2]

    loss, preds = biaffine_scorer_forward(
        params, config, n_label, head_repr, dep_repr, heads, labels, masks, lengths
    )
    loss = jax.block_until_ready(loss)
    assert np.isfinite(float(loss))
    assert preds[0].shape == (B, T, T)
    assert preds[1].shape == (B, T, T)
    print("KERNEL_OK")
</pallas_src>

<mosaic_0001>
module attributes {stable_mosaic.version = 11 : i64} {
  func.func @_units_kernel(%arg0: i32, %arg1: memref<1x128x128xbf16, #tpu.memory_space<vmem>>, %arg2: memref<1x128x128xbf16, #tpu.memory_space<vmem>>, %arg3: memref<128x384xbf16, #tpu.memory_space<vmem>>, %arg4: memref<1x384xf32, #tpu.memory_space<vmem>>, %arg5: memref<128x384xbf16, #tpu.memory_space<vmem>>, %arg6: memref<1x384xf32, #tpu.memory_space<vmem>>, %arg7: memref<3x128x128xbf16, #tpu.memory_space<vmem>>, %arg8: memref<1x3x128x128xf32, #tpu.memory_space<vmem>>) attributes {dimension_semantics = [#tpu.dimension_semantics<parallel>], iteration_bounds = array<i64: 2>, scalar_prefetch = 0 : i64, scratch_operands = 0 : i64, tpu.core_type = #tpu.core_type<tc>, window_params = [{transform_indices = @transform_0, window_bounds = array<i64: 1, 128, 128>}, {transform_indices = @transform_1, window_bounds = array<i64: 1, 128, 128>}, {pipeline_mode = #tpu.pipeline_mode<synchronous>, transform_indices = @transform_2, window_bounds = array<i64: 128, 384>}, {pipeline_mode = #tpu.pipeline_mode<synchronous>, transform_indices = @transform_3, window_bounds = array<i64: 1, 384>}, {pipeline_mode = #tpu.pipeline_mode<synchronous>, transform_indices = @transform_4, window_bounds = array<i64: 128, 384>}, {pipeline_mode = #tpu.pipeline_mode<synchronous>, transform_indices = @transform_5, window_bounds = array<i64: 1, 384>}, {pipeline_mode = #tpu.pipeline_mode<synchronous>, transform_indices = @transform_6, window_bounds = array<i64: 3, 128, 128>}, {transform_indices = @transform_7, window_bounds = array<i64: 1, 3, 128, 128>}]} {
    %c0 = arith.constant 0 : index
    %c0_0 = arith.constant 0 : index
    %c0_1 = arith.constant 0 : index
    %0 = vector.load %arg1[%c0, %c0_0, %c0_1] : memref<1x128x128xbf16, #tpu.memory_space<vmem>>, vector<1x128x128xbf16>
    %1 = vector.shape_cast %0 : vector<1x128x128xbf16> to vector<128x128xbf16>
    %c0_2 = arith.constant 0 : index
    %c0_3 = arith.constant 0 : index
    %2 = vector.load %arg3[%c0_2, %c0_3] : memref<128x384xbf16, #tpu.memory_space<vmem>>, vector<128x384xbf16>
    %cst = arith.constant dense<0.000000e+00> : vector<128x384xf32>
    %3 = tpu.matmul %1, %2, %cst {dimension_numbers = #tpu.dot_dimension_numbers<[1], [0], [0], [1], [0, 0, 1, 1], [], []>} : vector<128x128xbf16>, vector<128x384xbf16>, vector<128x384xf32> -> vector<128x384xf32>
    %c0_4 = arith.constant 0 : index
    %c0_5 = arith.constant 0 : index
    %4 = vector.load %arg4[%c0_4, %c0_5] : memref<1x384xf32, #tpu.memory_space<vmem>>, vector<1x384xf32>
    %5 = vector.broadcast %4 : vector<1x384xf32> to vector<128x384xf32>
    %6 = arith.addf %3, %5 : vector<128x384xf32>
    %cst_6 = arith.constant 0.000000e+00 : f32
    %7 = vector.broadcast %cst_6 : f32 to vector<128x384xf32>
    %8 = arith.maximumf %6, %7 : vector<128x384xf32>
    %9 = arith.truncf %8 : vector<128x384xf32> to vector<128x384xbf16>
    %c0_7 = arith.constant 0 : index
    %c0_8 = arith.constant 0 : index
    %c0_9 = arith.constant 0 : index
    %10 = vector.load %arg2[%c0_7, %c0_8, %c0_9] : memref<1x128x128xbf16, #tpu.memory_space<vmem>>, vector<1x128x128xbf16>
    %11 = vector.shape_cast %10 : vector<1x128x128xbf16> to vector<128x128xbf16>
    %c0_10 = arith.constant 0 : index
    %c0_11 = arith.constant 0 : index
    %12 = vector.load %arg5[%c0_10, %c0_11] : memref<128x384xbf16, #tpu.memory_space<vmem>>, vector<128x384xbf16>
    %cst_12 = arith.constant dense<0.000000e+00> : vector<128x384xf32>
    %13 = tpu.matmul %11, %12, %cst_12 {dimension_numbers = #tpu.dot_dimension_numbers<[1], [0], [0], [1], [0, 0, 1, 1], [], []>} : vector<128x128xbf16>, vector<128x384xbf16>, vector<128x384xf32> -> vector<128x384xf32>
    %c0_13 = arith.constant 0 : index
    %c0_14 = arith.constant 0 : index
    %14 = vector.load %arg6[%c0_13, %c0_14] : memref<1x384xf32, #tpu.memory_space<vmem>>, vector<1x384xf32>
    %15 = vector.broadcast %14 : vector<1x384xf32> to vector<128x384xf32>
    %16 = arith.addf %13, %15 : vector<128x384xf32>
    %cst_15 = arith.constant 0.000000e+00 : f32
    %17 = vector.broadcast %cst_15 : f32 to vector<128x384xf32>
    %18 = arith.maximumf %16, %17 : vector<128x384xf32>
    %19 = arith.truncf %18 : vector<128x384xf32> to vector<128x384xbf16>
    %20 = vector.extract_strided_slice %9 {offsets = [0, 0], sizes = [128, 128], strides = [1, 1]} : vector<128x384xbf16> to vector<128x128xbf16>
    %21 = vector.extract_strided_slice %19 {offsets = [0, 0], sizes = [128, 128], strides = [1, 1]} : vector<128x384xbf16> to vector<128x128xbf16>
    %c0_16 = arith.constant 0 : index
    %c0_17 = arith.constant 0 : index
    %c0_18 = arith.constant 0 : index
    %22 = vector.load %arg7[%c0_16, %c0_17, %c0_18] : memref<3x128x128xbf16, #tpu.memory_space<vmem>>, vector<1x128x128xbf16>
    %23 = vector.shape_cast %22 : vector<1x128x128xbf16> to vector<128x128xbf16>
    %cst_19 = arith.constant dense<0.000000e+00> : vector<128x128xf32>
    %24 = tpu.matmul %20, %23, %cst_19 {dimension_numbers = #tpu.dot_dimension_numbers<[1], [0], [0], [1], [0, 0, 1, 1], [], []>} : vector<128x128xbf16>, vector<128x128xbf16>, vector<128x128xf32> -> vector<128x128xf32>
    %25 = arith.truncf %24 : vector<128x128xf32> to vector<128x128xbf16>
    %cst_20 = arith.constant dense<0.000000e+00> : vector<128x128xf32>
    %26 = tpu.matmul %25, %21, %cst_20 {dimension_numbers = #tpu.dot_dimension_numbers<[1], [1], [0], [0], [0, 0, 1, 0], [], []>} : vector<128x128xbf16>, vector<128x128xbf16>, vector<128x128xf32> -> vector<128x128xf32>
    %c0_21 = arith.constant 0 : index
    %c0_22 = arith.constant 0 : index
    %c0_23 = arith.constant 0 : index
    %c0_24 = arith.constant 0 : index
    %27 = vector.load %arg8[%c0_21, %c0_22, %c0_23, %c0_24] : memref<1x3x128x128xf32, #tpu.memory_space<vmem>>, vector<1x1x128x128xf32>
    %28 = vector.shape_cast %27 : vector<1x1x128x128xf32> to vector<128x128xf32>
    %29 = vector.shape_cast %26 : vector<128x128xf32> to vector<1x1x128x128xf32>
    tpu.vector_store %arg8[%c0_21, %c0_22, %c0_23, %c0_24], %29 {strides = array<i32>} : memref<1x3x128x128xf32, #tpu.memory_space<vmem>>, vector<1x1x128x128xf32>,
    %30 = vector.extract_strided_slice %9 {offsets = [0, 128], sizes = [128, 128], strides = [1, 1]} : vector<128x384xbf16> to vector<128x128xbf16>
    %31 = vector.extract_strided_slice %19 {offsets = [0, 128], sizes = [128, 128], strides = [1, 1]} : vector<128x384xbf16> to vector<128x128xbf16>
    %c1 = arith.constant 1 : index
    %c0_25 = arith.constant 0 : index
    %c0_26 = arith.constant 0 : index
    %32 = vector.load %arg7[%c1, %c0_25, %c0_26] : memref<3x128x128xbf16, #tpu.memory_space<vmem>>, vector<1x128x128xbf16>
    %33 = vector.shape_cast %32 : vector<1x128x128xbf16> to vector<128x128xbf16>
    %cst_27 = arith.constant dense<0.000000e+00> : vector<128x128xf32>
    %34 = tpu.matmul %30, %33, %cst_27 {dimension_numbers = #tpu.dot_dimension_numbers<[1], [0], [0], [1], [0, 0, 1, 1], [], []>} : vector<128x128xbf16>, vector<128x128xbf16>, vector<128x128xf32> -> vector<128x128xf32>
    %35 = arith.truncf %34 : vector<128x128xf32> to vector<128x128xbf16>
    %cst_28 = arith.constant dense<0.000000e+00> : vector<128x128xf32>
    %36 = tpu.matmul %35, %31, %cst_28 {dimension_numbers = #tpu.dot_dimension_numbers<[1], [1], [0], [0], [0, 0, 1, 0], [], []>} : vector<128x128xbf16>, vector<128x128xbf16>, vector<128x128xf32> -> vector<128x128xf32>
    %c0_29 = arith.constant 0 : index
    %c1_30 = arith.constant 1 : index
    %c0_31 = arith.constant 0 : index
    %c0_32 = arith.constant 0 : index
    %37 = vector.load %arg8[%c0_29, %c1_30, %c0_31, %c0_32] : memref<1x3x128x128xf32, #tpu.memory_space<vmem>>, vector<1x1x128x128xf32>
    %38 = vector.shape_cast %37 : vector<1x1x128x128xf32> to vector<128x128xf32>
    %39 = vector.shape_cast %36 : vector<128x128xf32> to vector<1x1x128x128xf32>
    tpu.vector_store %arg8[%c0_29, %c1_30, %c0_31, %c0_32], %39 {strides = array<i32>} : memref<1x3x128x128xf32, #tpu.memory_space<vmem>>, vector<1x1x128x128xf32>,
    %40 = vector.extract_strided_slice %9 {offsets = [0, 256], sizes = [128, 128], strides = [1, 1]} : vector<128x384xbf16> to vector<128x128xbf16>
    %41 = vector.extract_strided_slice %19 {offsets = [0, 256], sizes = [128, 128], strides = [1, 1]} : vector<128x384xbf16> to vector<128x128xbf16>
    %c2 = arith.constant 2 : index
    %c0_33 = arith.constant 0 : index
    %c0_34 = arith.constant 0 : index
    %42 = vector.load %arg7[%c2, %c0_33, %c0_34] : memref<3x128x128xbf16, #tpu.memory_space<vmem>>, vector<1x128x128xbf16>
    %43 = vector.shape_cast %42 : vector<1x128x128xbf16> to vector<128x128xbf16>
    %cst_35 = arith.constant dense<0.000000e+00> : vector<128x128xf32>
    %44 = tpu.matmul %40, %43, %cst_35 {dimension_numbers = #tpu.dot_dimension_numbers<[1], [0], [0], [1], [0, 0, 1, 1], [], []>} : vector<128x128xbf16>, vector<128x128xbf16>, vector<128x128xf32> -> vector<128x128xf32>
    %45 = arith.truncf %44 : vector<128x128xf32> to vector<128x128xbf16>
    %cst_36 = arith.constant dense<0.000000e+00> : vector<128x128xf32>
    %46 = tpu.matmul %45, %41, %cst_36 {dimension_numbers = #tpu.dot_dimension_numbers<[1], [1], [0], [0], [0, 0, 1, 0], [], []>} : vector<128x128xbf16>, vector<128x128xbf16>, vector<128x128xf32> -> vector<128x128xf32>
    %c0_37 = arith.constant 0 : index
    %c2_38 = arith.constant 2 : index
    %c0_39 = arith.constant 0 : index
    %c0_40 = arith.constant 0 : index
    %47 = vector.load %arg8[%c0_37, %c2_38, %c0_39, %c0_40] : memref<1x3x128x128xf32, #tpu.memory_space<vmem>>, vector<1x1x128x128xf32>
    %48 = vector.shape_cast %47 : vector<1x1x128x128xf32> to vector<128x128xf32>
    %49 = vector.shape_cast %46 : vector<128x128xf32> to vector<1x1x128x128xf32>
    tpu.vector_store %arg8[%c0_37, %c2_38, %c0_39, %c0_40], %49 {strides = array<i32>} : memref<1x3x128x128xf32, #tpu.memory_space<vmem>>, vector<1x1x128x128xf32>,
    return
  }
  func.func @transform_0(%arg0: i32) -> (i32, i32, i32) {
    %c0_i32 = arith.constant 0 : i32
    %c0_i32_0 = arith.constant 0 : i32
    %c0_i32_1 = arith.constant 0 : i32
    return %arg0, %c0_i32, %c0_i32_0 : i32, i32, i32
  }
  func.func @transform_1(%arg0: i32) -> (i32, i32, i32) {
    %c0_i32 = arith.constant 0 : i32
    %c0_i32_0 = arith.constant 0 : i32
    %c0_i32_1 = arith.constant 0 : i32
    return %arg0, %c0_i32, %c0_i32_0 : i32, i32, i32
  }
  func.func @transform_2(%arg0: i32) -> (i32, i32) {
    %c0_i32 = arith.constant 0 : i32
    %c0_i32_0 = arith.constant 0 : i32
    %c0_i32_1 = arith.constant 0 : i32
    return %c0_i32, %c0_i32_0 : i32, i32
  }
  func.func @transform_3(%arg0: i32) -> (i32, i32) {
    %c0_i32 = arith.constant 0 : i32
    %c0_i32_0 = arith.constant 0 : i32
    %c0_i32_1 = arith.constant 0 : i32
    return %c0_i32, %c0_i32_0 : i32, i32
  }
  func.func @transform_4(%arg0: i32) -> (i32, i32) {
    %c0_i32 = arith.constant 0 : i32
    %c0_i32_0 = arith.constant 0 : i32
    %c0_i32_1 = arith.constant 0 : i32
    return %c0_i32, %c0_i32_0 : i32, i32
  }
  func.func @transform_5(%arg0: i32) -> (i32, i32) {
    %c0_i32 = arith.constant 0 : i32
    %c0_i32_0 = arith.constant 0 : i32
    %c0_i32_1 = arith.constant 0 : i32
    return %c0_i32, %c0_i32_0 : i32, i32
  }
  func.func @transform_6(%arg0: i32) -> (i32, i32, i32) {
    %c0_i32 = arith.constant 0 : i32
    %c0_i32_0 = arith.constant 0 : i32
    %c0_i32_1 = arith.constant 0 : i32
    %c0_i32_2 = arith.constant 0 : i32
    return %c0_i32, %c0_i32_0, %c0_i32_1 : i32, i32, i32
  }
  func.func @transform_7(%arg0: i32) -> (i32, i32, i32, i32) {
    %c0_i32 = arith.constant 0 : i32
    %c0_i32_0 = arith.constant 0 : i32
    %c0_i32_1 = arith.constant 0 : i32
    %c0_i32_2 = arith.constant 0 : i32
    return %arg0, %c0_i32, %c0_i32_0, %c0_i32_1 : i32, i32, i32, i32
  }
}

module attributes {stable_mosaic.version = 11 : i64} {
  func.func @_labels_kernel(%arg0: i32, %arg1: i32, %arg2: memref<2x128x128xbf16, #tpu.memory_space<vmem>>, %arg3: memref<2x128x128xbf16, #tpu.memory_space<vmem>>, %arg4: memref<128x128xbf16, #tpu.memory_space<vmem>>, %arg5: memref<1x128xf32, #tpu.memory_space<vmem>>, %arg6: memref<128x128xbf16, #tpu.memory_space<vmem>>, %arg7: memref<1x128xf32, #tpu.memory_space<vmem>>, %arg8: memref<1x128x512xbf16, #tpu.memory_space<vmem>>, %arg9: memref<2x4x128x128xbf16, #tpu.memory_space<vmem>>, %arg10: memref<2x128x128xbf16, #tpu.memory_space<vmem>>, %arg11: memref<2x128x128xbf16, #tpu.memory_space<vmem>>) attributes {dimension_semantics = [#tpu.dimension_semantics<parallel>, #tpu.dimension_semantics<arbitrary>], iteration_bounds = array<i64: 1, 1>, scalar_prefetch = 0 : i64, scratch_operands = 2 : i64, tpu.core_type = #tpu.core_type<tc>, window_params = [{transform_indices = @transform_0, window_bounds = array<i64: 2, 128, 128>}, {transform_indices = @transform_1, window_bounds = array<i64: 2, 128, 128>}, {pipeline_mode = #tpu.pipeline_mode<synchronous>, transform_indices = @transform_2, window_bounds = array<i64: 128, 128>}, {pipeline_mode = #tpu.pipeline_mode<synchronous>, transform_indices = @transform_3, window_bounds = array<i64: 1, 128>}, {pipeline_mode = #tpu.pipeline_mode<synchronous>, transform_indices = @transform_4, window_bounds = array<i64: 128, 128>}, {pipeline_mode = #tpu.pipeline_mode<synchronous>, transform_indices = @transform_5, window_bounds = array<i64: 1, 128>}, {transform_indices = @transform_6, window_bounds = array<i64: 1, 128, 512>}, {transform_indices = @transform_7, window_bounds = array<i64: 2, 4, 128, 128>}]} {
    %c0_i32 = arith.constant 0 : i32
    %0 = arith.cmpi eq, %arg1, %c0_i32 : i32
    %1 = arith.extui %0 : i1 to i32
    %c0_i32_0 = arith.constant 0 : i32
    %2 = arith.cmpi ne, %1, %c0_i32_0 : i32
    scf.if %2 {
      %c0_53 = arith.constant 0 : index
      %c0_54 = arith.constant 0 : index
      %c0_55 = arith.constant 0 : index
      %65 = vector.load %arg2[%c0_53, %c0_54, %c0_55] : memref<2x128x128xbf16, #tpu.memory_space<vmem>>, vector<1x128x128xbf16>
      %66 = vector.shape_cast %65 : vector<1x128x128xbf16> to vector<128x128xbf16>
      %c0_56 = arith.constant 0 : index
      %c0_57 = arith.constant 0 : index
      %67 = vector.load %arg4[%c0_56, %c0_57] : memref<128x128xbf16, #tpu.memory_space<vmem>>, vector<128x128xbf16>
      %cst_58 = arith.constant dense<0.000000e+00> : vector<128x128xf32>
      %68 = tpu.matmul %66, %67, %cst_58 {dimension_numbers = #tpu.dot_dimension_numbers<[1], [0], [0], [1], [0, 0, 1, 1], [], []>} : vector<128x128xbf16>, vector<128x128xbf16>, vector<128x128xf32> -> vector<128x128xf32>
      %c0_59 = arith.constant 0 : index
      %c0_60 = arith.constant 0 : index
      %69 = vector.load %arg5[%c0_59, %c0_60] : memref<1x128xf32, #tpu.memory_space<vmem>>, vector<1x128xf32>
      %70 = vector.broadcast %69 : vector<1x128xf32> to vector<128x128xf32>
      %71 = arith.addf %68, %70 : vector<128x128xf32>
      %c0_61 = arith.constant 0 : index
      %c0_62 = arith.constant 0 : index
      %c0_63 = arith.constant 0 : index
      %72 = vector.load %arg3[%c0_61, %c0_62, %c0_63] : memref<2x128x128xbf16, #tpu.memory_space<vmem>>, vector<1x128x128xbf16>
      %73 = vector.shape_cast %72 : vector<1x128x128xbf16> to vector<128x128xbf16>
      %c0_64 = arith.constant 0 : index
      %c0_65 = arith.constant 0 : index
      %74 = vector.load %arg6[%c0_64, %c0_65] : memref<128x128xbf16, #tpu.memory_space<vmem>>, vector<128x128xbf16>
      %cst_66 = arith.constant dense<0.000000e+00> : vector<128x128xf32>
      %75 = tpu.matmul %73, %74, %cst_66 {dimension_numbers = #tpu.dot_dimension_numbers<[1], [0], [0], [1], [0, 0, 1, 1], [], []>} : vector<128x128xbf16>, vector<128x128xbf16>, vector<128x128xf32> -> vector<128x128xf32>
      %c0_67 = arith.constant 0 : index
      %c0_68 = arith.constant 0 : index
      %76 = vector.load %arg7[%c0_67, %c0_68] : memref<1x128xf32, #tpu.memory_space<vmem>>, vector<1x128xf32>
      %77 = vector.broadcast %76 : vector<1x128xf32> to vector<128x128xf32>
      %78 = arith.addf %75, %77 : vector<128x128xf32>
      %cst_69 = arith.constant 0.000000e+00 : f32
      %79 = vector.broadcast %cst_69 : f32 to vector<128x128xf32>
      %80 = arith.maximumf %71, %79 : vector<128x128xf32>
      %81 = arith.truncf %80 : vector<128x128xf32> to vector<128x128xbf16>
      %c0_70 = arith.constant 0 : index
      %c0_71 = arith.constant 0 : index
      %c0_72 = arith.constant 0 : index
      %82 = vector.load %arg10[%c0_70, %c0_71, %c0_72] : memref<2x128x128xbf16, #tpu.memory_space<vmem>>, vector<1x128x128xbf16>
      %83 = vector.shape_cast %82 : vector<1x128x128xbf16> to vector<128x128xbf16>
      %84 = vector.shape_cast %81 : vector<128x128xbf16> to vector<1x128x128xbf16>
      tpu.vector_store %arg10[%c0_70, %c0_71, %c0_72], %84 {strides = array<i32>} : memref<2x128x128xbf16, #tpu.memory_space<vmem>>, vector<1x128x128xbf16>,
      %cst_73 = arith.constant 0.000000e+00 : f32
      %85 = vector.broadcast %cst_73 : f32 to vector<128x128xf32>
      %86 = arith.maximumf %78, %85 : vector<128x128xf32>
      %87 = arith.truncf %86 : vector<128x128xf32> to vector<128x128xbf16>
      %c0_74 = arith.constant 0 : index
      %c0_75 = arith.constant 0 : index
      %c0_76 = arith.constant 0 : index
      %88 = vector.load %arg11[%c0_74, %c0_75, %c0_76] : memref<2x128x128xbf16, #tpu.memory_space<vmem>>, vector<1x128x128xbf16>
      %89 = vector.shape_cast %88 : vector<1x128x128xbf16> to vector<128x128xbf16>
      %90 = vector.shape_cast %87 : vector<128x128xbf16> to vector<1x128x128xbf16>
      tpu.vector_store %arg11[%c0_74, %c0_75, %c0_76], %90 {strides = array<i32>} : memref<2x128x128xbf16, #tpu.memory_space<vmem>>, vector<1x128x128xbf16>,
      %c1_77 = arith.constant 1 : index
      %c0_78 = arith.constant 0 : index
      %c0_79 = arith.constant 0 : index
      %91 = vector.load %arg2[%c1_77, %c0_78, %c0_79] : memref<2x128x128xbf16, #tpu.memory_space<vmem>>, vector<1x128x128xbf16>
      %92 = vector.shape_cast %91 : vector<1x128x128xbf16> to vector<128x128xbf16>
      %c0_80 = arith.constant 0 : index
      %c0_81 = arith.constant 0 : index
      %93 = vector.load %arg4[%c0_80, %c0_81] : memref<128x128xbf16, #tpu.memory_space<vmem>>, vector<128x128xbf16>
      %cst_82 = arith.constant dense<0.000000e+00> : vector<128x128xf32>
      %94 = tpu.matmul %92, %93, %cst_82 {dimension_numbers = #tpu.dot_dimension_numbers<[1], [0], [0], [1], [0, 0, 1, 1], [], []>} : vector<128x128xbf16>, vector<128x128xbf16>, vector<128x128xf32> -> vector<128x128xf32>
      %c0_83 = arith.constant 0 : index
      %c0_84 = arith.constant 0 : index
      %95 = vector.load %arg5[%c0_83, %c0_84] : memref<1x128xf32, #tpu.memory_space<vmem>>, vector<1x128xf32>
      %96 = vector.broadcast %95 : vector<1x128xf32> to vector<128x128xf32>
      %97 = arith.addf %94, %96 : vector<128x128xf32>
      %c1_85 = arith.constant 1 : index
      %c0_86 = arith.constant 0 : index
      %c0_87 = arith.constant 0 : index
      %98 = vector.load %arg3[%c1_85, %c0_86, %c0_87] : memref<2x128x128xbf16, #tpu.memory_space<vmem>>, vector<1x128x128xbf16>
      %99 = vector.shape_cast %98 : vector<1x128x128xbf16> to vector<128x128xbf16>
      %c0_88 = arith.constant 0 : index
      %c0_89 = arith.constant 0 : index
      %100 = vector.load %arg6[%c0_88, %c0_89] : memref<128x128xbf16, #tpu.memory_space<vmem>>, vector<128x128xbf16>
      %cst_90 = arith.constant dense<0.000000e+00> : vector<128x128xf32>
      %101 = tpu.matmul %99, %100, %cst_90 {dimension_numbers = #tpu.dot_dimension_numbers<[1], [0], [0], [1], [0, 0, 1, 1], [], []>} : vector<128x128xbf16>, vector<128x128xbf16>, vector<128x128xf32> -> vector<128x128xf32>
      %c0_91 = arith.constant 0 : index
      %c0_92 = arith.constant 0 : index
      %102 = vector.load %arg7[%c0_91, %c0_92] : memref<1x128xf32, #tpu.memory_space<vmem>>, vector<1x128xf32>
      %103 = vector.broadcast %102 : vector<1x128xf32> to vector<128x128xf32>
      %104 = arith.addf %101, %103 : vector<128x128xf32>
      %cst_93 = arith.constant 0.000000e+00 : f32
      %105 = vector.broadcast %cst_93 : f32 to vector<128x128xf32>
      %106 = arith.maximumf %97, %105 : vector<128x128xf32>
      %107 = arith.truncf %106 : vector<128x128xf32> to vector<128x128xbf16>
      %c1_94 = arith.constant 1 : index
      %c0_95 = arith.constant 0 : index
      %c0_96 = arith.constant 0 : index
      %108 = vector.load %arg10[%c1_94, %c0_95, %c0_96] : memref<2x128x128xbf16, #tpu.memory_space<vmem>>, vector<1x128x128xbf16>
      %109 = vector.shape_cast %108 : vector<1x128x128xbf16> to vector<128x128xbf16>
      %110 = vector.shape_cast %107 : vector<128x128xbf16> to vector<1x128x128xbf16>
      tpu.vector_store %arg10[%c1_94, %c0_95, %c0_96], %110 {strides = array<i32>} : memref<2x128x128xbf16, #tpu.memory_space<vmem>>, vector<1x128x128xbf16>,
      %cst_97 = arith.constant 0.000000e+00 : f32
      %111 = vector.broadcast %cst_97 : f32 to vector<128x128xf32>
      %112 = arith.maximumf %104, %111 : vector<128x128xf32>
      %113 = arith.truncf %112 : vector<128x128xf32> to vector<128x128xbf16>
      %c1_98 = arith.constant 1 : index
      %c0_99 = arith.constant 0 : index
      %c0_100 = arith.constant 0 : index
      %114 = vector.load %arg11[%c1_98, %c0_99, %c0_100] : memref<2x128x128xbf16, #tpu.memory_space<vmem>>, vector<1x128x128xbf16>
      %115 = vector.shape_cast %114 : vector<1x128x128xbf16> to vector<128x128xbf16>
      %116 = vector.shape_cast %113 : vector<128x128xbf16> to vector<1x128x128xbf16>
      tpu.vector_store %arg11[%c1_98, %c0_99, %c0_100], %116 {strides = array<i32>} : memref<2x128x128xbf16, #tpu.memory_space<vmem>>, vector<1x128x128xbf16>,
    } else {
    }
    %c0 = arith.constant 0 : index
    %c0_1 = arith.constant 0 : index
    %c0_2 = arith.constant 0 : index
    %3 = vector.load %arg8[%c0, %c0_1, %c0_2] : memref<1x128x512xbf16, #tpu.memory_space<vmem>>, vector<1x128x512xbf16>
    %4 = vector.shape_cast %3 : vector<1x128x512xbf16> to vector<128x512xbf16>
    %c0_3 = arith.constant 0 : index
    %c0_4 = arith.constant 0 : index
    %c0_5 = arith.constant 0 : index
    %5 = vector.load %arg10[%c0_3, %c0_4, %c0_5] : memref<2x128x128xbf16, #tpu.memory_space<vmem>>, vector<1x128x128xbf16>
    %6 = vector.shape_cast %5 : vector<1x128x128xbf16> to vector<128x128xbf16>
    %cst = arith.constant dense<0.000000e+00> : vector<128x512xf32>
    %7 = tpu.matmul %6, %4, %cst {dimension_numbers = #tpu.dot_dimension_numbers<[1], [0], [0], [1], [0, 0, 1, 1], [], []>} : vector<128x128xbf16>, vector<128x512xbf16>, vector<128x512xf32> -> vector<128x512xf32>
    %8 = arith.truncf %7 : vector<128x512xf32> to vector<128x512xbf16>
    %c0_6 = arith.constant 0 : index
    %c0_7 = arith.constant 0 : index
    %c0_8 = arith.constant 0 : index
    %9 = vector.load %arg11[%c0_6, %c0_7, %c0_8] : memref<2x128x128xbf16, #tpu.memory_space<vmem>>, vector<1x128x128xbf16>
    %10 = vector.shape_cast %9 : vector<1x128x128xbf16> to vector<128x128xbf16>
    %11 = vector.extract_strided_slice %8 {offsets = [0, 0], sizes = [128, 128], strides = [1, 1]} : vector<128x512xbf16> to vector<128x128xbf16>
    %cst_9 = arith.constant dense<0.000000e+00> : vector<128x128xf32>
    %12 = tpu.matmul %11, %10, %cst_9 {dimension_numbers = #tpu.dot_dimension_numbers<[1], [1], [0], [0], [0, 0, 1, 0], [], []>} : vector<128x128xbf16>, vector<128x128xbf16>, vector<128x128xf32> -> vector<128x128xf32>
    %13 = arith.truncf %12 : vector<128x128xf32> to vector<128x128xbf16>
    %c0_10 = arith.constant 0 : index
    %c0_11 = arith.constant 0 : index
    %c0_12 = arith.constant 0 : index
    %c0_13 = arith.constant 0 : index
    %14 = vector.load %arg9[%c0_10, %c0_11, %c0_12, %c0_13] : memref<2x4x128x128xbf16, #tpu.memory_space<vmem>>, vector<1x1x128x128xbf16>
    %15 = vector.shape_cast %14 : vector<1x1x128x128xbf16> to vector<128x128xbf16>
    %16 = vector.shape_cast %13 : vector<128x128xbf16> to vector<1x1x128x128xbf16>
    tpu.vector_store %arg9[%c0_10, %c0_11, %c0_12, %c0_13], %16 {strides = array<i32>} : memref<2x4x128x128xbf16, #tpu.memory_space<vmem>>, vector<1x1x128x128xbf16>,
    %17 = vector.extract_strided_slice %8 {offsets = [0, 128], sizes = [128, 128], strides = [1, 1]} : vector<128x512xbf16> to vector<128x128xbf16>
    %cst_14 = arith.constant dense<0.000000e+00> : vector<128x128xf32>
    %18 = tpu.matmul %17, %10, %cst_14 {dimension_numbers = #tpu.dot_dimension_numbers<[1], [1], [0], [0], [0, 0, 1, 0], [], []>} : vector<128x128xbf16>, vector<128x128xbf16>, vector<128x128xf32> -> vector<128x128xf32>
    %19 = arith.truncf %18 : vector<128x128xf32> to vector<128x128xbf16>
    %c0_15 = arith.constant 0 : index
    %c1 = arith.constant 1 : index
    %c0_16 = arith.constant 0 : index
    %c0_17 = arith.constant 0 : index
    %20 = vector.load %arg9[%c0_15, %c1, %c0_16, %c0_17] : memref<2x4x128x128xbf16, #tpu.memory_space<vmem>>, vector<1x1x128x128xbf16>
    %21 = vector.shape_cast %20 : vector<1x1x128x128xbf16> to vector<128x128xbf16>
    %22 = vector.shape_cast %19 : vector<128x128xbf16> to vector<1x1x128x128xbf16>
    tpu.vector_store %arg9[%c0_15, %c1, %c0_16, %c0_17], %22 {strides = array<i32>} : memref<2x4x128x128xbf16, #tpu.memory_space<vmem>>, vector<1x1x128x128xbf16>,
    %23 = vector.extract_strided_slice %8 {offsets = [0, 256], sizes = [128, 128], strides = [1, 1]} : vector<128x512xbf16> to vector<128x128xbf16>
    %cst_18 = arith.constant dense<0.000000e+00> : vector<128x128xf32>
    %24 = tpu.matmul %23, %10, %cst_18 {dimension_numbers = #tpu.dot_dimension_numbers<[1], [1], [0], [0], [0, 0, 1, 0], [], []>} : vector<128x128xbf16>, vector<128x128xbf16>, vector<128x128xf32> -> vector<128x128xf32>
    %25 = arith.truncf %24 : vector<128x128xf32> to vector<128x128xbf16>
    %c0_19 = arith.constant 0 : index
    %c2 = arith.constant 2 : index
    %c0_20 = arith.constant 0 : index
    %c0_21 = arith.constant 0 : index
    %26 = vector.load %arg9[%c0_19, %c2, %c0_20, %c0_21] : memref<2x4x128x128xbf16, #tpu.memory_space<vmem>>, vector<1x1x128x128xbf16>
    %27 = vector.shape_cast %26 : vector<1x1x128x128xbf16> to vector<128x128xbf16>
    %28 = vector.shape_cast %25 : vector<128x128xbf16> to vector<1x1x128x128xbf16>
    tpu.vector_store %arg9[%c0_19, %c2, %c0_20, %c0_21], %28 {strides = array<i32>} : memref<2x4x128x128xbf16, #tpu.memory_space<vmem>>, vector<1x1x128x128xbf16>,
    %29 = vector.extract_strided_slice %8 {offsets = [0, 384], sizes = [128, 128], strides = [1, 1]} : vector<128x512xbf16> to vector<128x128xbf16>
    %cst_22 = arith.constant dense<0.000000e+00> : vector<128x128xf32>
    %30 = tpu.matmul %29, %10, %cst_22 {dimension_numbers = #tpu.dot_dimension_numbers<[1], [1], [0], [0], [0, 0, 1, 0], [], []>} : vector<128x128xbf16>, vector<128x128xbf16>, vector<128x128xf32> -> vector<128x128xf32>
    %31 = arith.truncf %30 : vector<128x128xf32> to vector<128x128xbf16>
    %c0_23 = arith.constant 0 : index
    %c3 = arith.constant 3 : index
    %c0_24 = arith.constant 0 : index
    %c0_25 = arith.constant 0 : index
    %32 = vector.load %arg9[%c0_23, %c3, %c0_24, %c0_25] : memref<2x4x128x128xbf16, #tpu.memory_space<vmem>>, vector<1x1x128x128xbf16>
    %33 = vector.shape_cast %32 : vector<1x1x128x128xbf16> to vector<128x128xbf16>
    %34 = vector.shape_cast %31 : vector<128x128xbf16> to vector<1x1x128x128xbf16>
    tpu.vector_store %arg9[%c0_23, %c3, %c0_24, %c0_25], %34 {strides = array<i32>} : memref<2x4x128x128xbf16, #tpu.memory_space<vmem>>, vector<1x1x128x128xbf16>,
    %c1_26 = arith.constant 1 : index
    %c0_27 = arith.constant 0 : index
    %c0_28 = arith.constant 0 : index
    %35 = vector.load %arg10[%c1_26, %c0_27, %c0_28] : memref<2x128x128xbf16, #tpu.memory_space<vmem>>, vector<1x128x128xbf16>
    %36 = vector.shape_cast %35 : vector<1x128x128xbf16> to vector<128x128xbf16>
    %cst_29 = arith.constant dense<0.000000e+00> : vector<128x512xf32>
    %37 = tpu.matmul %36, %4, %cst_29 {dimension_numbers = #tpu.dot_dimension_numbers<[1], [0], [0], [1], [0, 0, 1, 1], [], []>} : vector<128x128xbf16>, vector<128x512xbf16>, vector<128x512xf32> -> vector<128x512xf32>
    %38 = arith.truncf %37 : vector<128x512xf32> to vector<128x512xbf16>
    %c1_30 = arith.constant 1 : index
    %c0_31 = arith.constant 0 : index
    %c0_32 = arith.constant 0 : index
    %39 = vector.load %arg11[%c1_30, %c0_31, %c0_32] : memref<2x128x128xbf16, #tpu.memory_space<vmem>>, vector<1x128x128xbf16>
    %40 = vector.shape_cast %39 : vector<1x128x128xbf16> to vector<128x128xbf16>
    %41 = vector.extract_strided_slice %38 {offsets = [0, 0], sizes = [128, 128], strides = [1, 1]} : vector<128x512xbf16> to vector<128x128xbf16>
    %cst_33 = arith.constant dense<0.000000e+00> : vector<128x128xf32>
    %42 = tpu.matmul %41, %40, %cst_33 {dimension_numbers = #tpu.dot_dimension_numbers<[1], [1], [0], [0], [0, 0, 1, 0], [], []>} : vector<128x128xbf16>, vector<128x128xbf16>, vector<128x128xf32> -> vector<128x128xf32>
    %43 = arith.truncf %42 : vector<128x128xf32> to vector<128x128xbf16>
    %c1_34 = arith.constant 1 : index
    %c0_35 = arith.constant 0 : index
    %c0_36 = arith.constant 0 : index
    %c0_37 = arith.constant 0 : index
    %44 = vector.load %arg9[%c1_34, %c0_35, %c0_36, %c0_37] : memref<2x4x128x128xbf16, #tpu.memory_space<vmem>>, vector<1x1x128x128xbf16>
    %45 = vector.shape_cast %44 : vector<1x1x128x128xbf16> to vector<128x128xbf16>
    %46 = vector.shape_cast %43 : vector<128x128xbf16> to vector<1x1x128x128xbf16>
    tpu.vector_store %arg9[%c1_34, %c0_35, %c0_36, %c0_37], %46 {strides = array<i32>} : memref<2x4x128x128xbf16, #tpu.memory_space<vmem>>, vector<1x1x128x128xbf16>,
    %47 = vector.extract_strided_slice %38 {offsets = [0, 128], sizes = [128, 128], strides = [1, 1]} : vector<128x512xbf16> to vector<128x128xbf16>
    %cst_38 = arith.constant dense<0.000000e+00> : vector<128x128xf32>
    %48 = tpu.matmul %47, %40, %cst_38 {dimension_numbers = #tpu.dot_dimension_numbers<[1], [1], [0], [0], [0, 0, 1, 0], [], []>} : vector<128x128xbf16>, vector<128x128xbf16>, vector<128x128xf32> -> vector<128x128xf32>
    %49 = arith.truncf %48 : vector<128x128xf32> to vector<128x128xbf16>
    %c1_39 = arith.constant 1 : index
    %c1_40 = arith.constant 1 : index
    %c0_41 = arith.constant 0 : index
    %c0_42 = arith.constant 0 : index
    %50 = vector.load %arg9[%c1_39, %c1_40, %c0_41, %c0_42] : memref<2x4x128x128xbf16, #tpu.memory_space<vmem>>, vector<1x1x128x128xbf16>
    %51 = vector.shape_cast %50 : vector<1x1x128x128xbf16> to vector<128x128xbf16>
    %52 = vector.shape_cast %49 : vector<128x128xbf16> to vector<1x1x128x128xbf16>
    tpu.vector_store %arg9[%c1_39, %c1_40, %c0_41, %c0_42], %52 {strides = array<i32>} : memref<2x4x128x128xbf16, #tpu.memory_space<vmem>>, vector<1x1x128x128xbf16>,
    %53 = vector.extract_strided_slice %38 {offsets = [0, 256], sizes = [128, 128], strides = [1, 1]} : vector<128x512xbf16> to vector<128x128xbf16>
    %cst_43 = arith.constant dense<0.000000e+00> : vector<128x128xf32>
    %54 = tpu.matmul %53, %40, %cst_43 {dimension_numbers = #tpu.dot_dimension_numbers<[1], [1], [0], [0], [0, 0, 1, 0], [], []>} : vector<128x128xbf16>, vector<128x128xbf16>, vector<128x128xf32> -> vector<128x128xf32>
    %55 = arith.truncf %54 : vector<128x128xf32> to vector<128x128xbf16>
    %c1_44 = arith.constant 1 : index
    %c2_45 = arith.constant 2 : index
    %c0_46 = arith.constant 0 : index
    %c0_47 = arith.constant 0 : index
    %56 = vector.load %arg9[%c1_44, %c2_45, %c0_46, %c0_47] : memref<2x4x128x128xbf16, #tpu.memory_space<vmem>>, vector<1x1x128x128xbf16>
    %57 = vector.shape_cast %56 : vector<1x1x128x128xbf16> to vector<128x128xbf16>
    %58 = vector.shape_cast %55 : vector<128x128xbf16> to vector<1x1x128x128xbf16>
    tpu.vector_store %arg9[%c1_44, %c2_45, %c0_46, %c0_47], %58 {strides = array<i32>} : memref<2x4x128x128xbf16, #tpu.memory_space<vmem>>, vector<1x1x128x128xbf16>,
    %59 = vector.extract_strided_slice %38 {offsets = [0, 384], sizes = [128, 128], strides = [1, 1]} : vector<128x512xbf16> to vector<128x128xbf16>
    %cst_48 = arith.constant dense<0.000000e+00> : vector<128x128xf32>
    %60 = tpu.matmul %59, %40, %cst_48 {dimension_numbers = #tpu.dot_dimension_numbers<[1], [1], [0], [0], [0, 0, 1, 0], [], []>} : vector<128x128xbf16>, vector<128x128xbf16>, vector<128x128xf32> -> vector<128x128xf32>
    %61 = arith.truncf %60 : vector<128x128xf32> to vector<128x128xbf16>
    %c1_49 = arith.constant 1 : index
    %c3_50 = arith.constant 3 : index
    %c0_51 = arith.constant 0 : index
    %c0_52 = arith.constant 0 : index
    %62 = vector.load %arg9[%c1_49, %c3_50, %c0_51, %c0_52] : memref<2x4x128x128xbf16, #tpu.memory_space<vmem>>, vector<1x1x128x128xbf16>
    %63 = vector.shape_cast %62 : vector<1x1x128x128xbf16> to vector<128x128xbf16>
    %64 = vector.shape_cast %61 : vector<128x128xbf16> to vector<1x1x128x128xbf16>
    tpu.vector_store %arg9[%c1_49, %c3_50, %c0_51, %c0_52], %64 {strides = array<i32>} : memref<2x4x128x128xbf16, #tpu.memory_space<vmem>>, vector<1x1x128x128xbf16>,
    return
  }
  func.func @transform_0(%arg0: i32, %arg1: i32) -> (i32, i32, i32) {
    %c0_i32 = arith.constant 0 : i32
    %c0_i32_0 = arith.constant 0 : i32
    %c0_i32_1 = arith.constant 0 : i32
    return %arg0, %c0_i32, %c0_i32_0 : i32, i32, i32
  }
  func.func @transform_1(%arg0: i32, %arg1: i32) -> (i32, i32, i32) {
    %c0_i32 = arith.constant 0 : i32
    %c0_i32_0 = arith.constant 0 : i32
    %c0_i32_1 = arith.constant 0 : i32
    return %arg0, %c0_i32, %c0_i32_0 : i32, i32, i32
  }
  func.func @transform_2(%arg0: i32, %arg1: i32) -> (i32, i32) {
    %c0_i32 = arith.constant 0 : i32
    %c0_i32_0 = arith.constant 0 : i32
    %c0_i32_1 = arith.constant 0 : i32
    return %c0_i32, %c0_i32_0 : i32, i32
  }
  func.func @transform_3(%arg0: i32, %arg1: i32) -> (i32, i32) {
    %c0_i32 = arith.constant 0 : i32
    %c0_i32_0 = arith.constant 0 : i32
    %c0_i32_1 = arith.constant 0 : i32
    return %c0_i32, %c0_i32_0 : i32, i32
  }
  func.func @transform_4(%arg0: i32, %arg1: i32) -> (i32, i32) {
    %c0_i32 = arith.constant 0 : i32
    %c0_i32_0 = arith.constant 0 : i32
    %c0_i32_1 = arith.constant 0 : i32
    return %c0_i32, %c0_i32_0 : i32, i32
  }
  func.func @transform_5(%arg0: i32, %arg1: i32) -> (i32, i32) {
    %c0_i32 = arith.constant 0 : i32
    %c0_i32_0 = arith.constant 0 : i32
    %c0_i32_1 = arith.constant 0 : i32
    return %c0_i32, %c0_i32_0 : i32, i32
  }
  func.func @transform_6(%arg0: i32, %arg1: i32) -> (i32, i32, i32) {
    %c0_i32 = arith.constant 0 : i32
    %c0_i32_0 = arith.constant 0 : i32
    %c0_i32_1 = arith.constant 0 : i32
    return %arg1, %c0_i32, %c0_i32_0 : i32, i32, i32
  }
  func.func @transform_7(%arg0: i32, %arg1: i32) -> (i32, i32, i32, i32) {
    %c0_i32 = arith.constant 0 : i32
    %c0_i32_0 = arith.constant 0 : i32
    %c0_i32_1 = arith.constant 0 : i32
    return %arg0, %arg1, %c0_i32, %c0_i32_0 : i32, i32, i32, i32
  }
}

</mosaic_0001>

<bundles_post_ra>
// kernel: _forward_core.2
= control target key start
LH: loop header
LB: loop body
LE: loop exit
PB: predicated region body
PF: predicated region fallthrough
CT: control target
= control target key end

     0   :  { %12 = vsyncpa [#allocation3], 0  ;;  %s3659_s0 = inlined_call_operand.vmem [shape: bf16[2,128,128], index: 0, kind: input, shape index: {}]   ;;  %s3660_s1 = inlined_call_operand.vmem [shape: bf16[2,128,128], index: 1, kind: input, shape index: {}]   ;;  %s3661_s2 = inlined_call_operand.vmem [shape: bf16[128,384], index: 2, kind: input, shape index: {}]   ;;  %s3662_s3 = inlined_call_operand.vmem [shape: f32[1,384], index: 3, kind: input, shape index: {}]   ;;  %s3663_s4 = inlined_call_operand.hbm [shape: bf16[128,384], index: 4, kind: input, shape index: {}]   ;;  %s3664_s5 = inlined_call_operand.vmem [shape: f32[1,384], index: 5, kind: input, shape index: {}]   ;;  %s3665_s6 = inlined_call_operand.hbm [shape: bf16[3,128,128], index: 6, kind: input, shape index: {}]   ;;  %s3666_s7 = inlined_call_operand.vmem [shape: f32[2,3,128,128], index: 7, kind: output, shape index: {}]  }
   0x1   :  { %13 = vsyncpa [#allocation5], 0  ;;  %s3111_s24 = smov 0  }
   0x2 LB: > { %s3064_s25 = smov [#allocation2]   ;;  %s3117_s27 = sadd.s32 4294967295, %s3062_s24   ;;  %s3062_s24 = sphi %s3111_s24, %s19_s24  }
   0x3   : > { %s225_s26 = sshll.u32 %s3064_s25, 4  ;;  %p2317_p0 = scmp.ge.s32.totalorder %s3062_s24, 1  ;;  %s226_s26 = int_to_ptr.vmem [resolvable:$true] %s225_s26 }
   0x4   : > { %p207_p1 = scmp.lt.s32.totalorder %s3062_s24, 3  ;;  %p3667_p3 = scmp.eq.s32.totalorder %s3117_s27, 0 }
   0x5   : > { %s3065_s29 = smov [#allocation4]   ;;  %s2992_s11 = scalar_lea.hbm %s3663_s4, 3072 }
   0x6   : > { %p3121_p2 = pnand %p2317_p0, %p207_p1  ;;  %s241_s30 = sshll.u32 %s3065_s29, 4  ;;  %s3134_s30 = int_to_ptr.vmem [resolvable:$true] %s241_s30 }
   0x7   : > { %p2993_p6 = scmp.ne.s32.totalorder %s3663_s4, %s2992_s11  ;;  %p2999_p10 = scmp.lt.u32.totalorder %s2992_s11, %s3663_s4 }
   0x8   : > { %s3669_s28 = scalar_select %p3121_p2, 1, 0 }
   0x9   : > { %p2862_p4 = pneg %p3121_p2 }
   0xb   : > { %p3130_p5 = pnand %p3667_p3, %p2862_p4 }
   0xd   : > { %p2994_p7 = pneg %p3130_p5 }
   0xf   : > { %p2995_p8 = pnand %p2994_p7, %p2993_p6 }
  0x11   : > { %p2996_p9 = pneg %p2995_p8 }
  0x13   : > { %p3001_p11 = pnand %p2999_p10, %p2996_p9 }
  0x15   : > { %3004 = shalt.err (!%p3001_p11)
}
  0x16   : > { %s3005_s16 = scalar_lea.vmem %s226_s26, 3072  ;;  %p3013_p1 = scmp.lt.s32.totalorder %s226_s26, %s226_s26 }
  0x17   : > { %p3006_p12 = scmp.ne.s32.totalorder %s226_s26, %s3005_s16  ;;  %p3014_p4 = scmp.lt.s32.totalorder %s3005_s16, %s3005_s16 }
  0x19   : > { %p3008_p13 = pnand %p3006_p12, %p2994_p7  ;;  %p3015_p3 = por %p3014_p4, %p3013_p1 }
  0x1b   : > { %p3009_p0 = pneg %p3008_p13 }
  0x1d   : > { %p3016_p2 = pnand %p3015_p3, %p3009_p0 }
  0x1f   : > { %3019 = shalt.err (!%p3016_p2)
}
  0x20   : > { %s3066_s17 = smov 192   ;;  %s3067_s18 = smov 12  }
  0x21   : > { %2865 = dma.hbm_to_vmem [thread:$0]  (!%p3130_p5), %s3663_s4, 3072, %s226_s26, [#allocation3], %s3066_s17, %s3066_s17, %s3067_s18  }
  0x22   : > { %s3020_s23 = scalar_lea.hbm %s3665_s6, 3072 }
  0x23   : > { %p3021_p6 = scmp.ne.s32.totalorder %s3665_s6, %s3020_s23  ;;  %p3027_p8 = scmp.lt.u32.totalorder %s3020_s23, %s3665_s6 }
  0x25   : > { %p3023_p2 = pnand %p3021_p6, %p2994_p7 }
  0x27   : > { %p3024_p3 = pneg %p3023_p2 }
  0x29   : > { %p3029_p9 = pnand %p3027_p8, %p3024_p3 }
  0x2b   : > { %3032 = shalt.err (!%p3029_p9)
}
  0x2c   : > { %s3033_s26 = scalar_lea.vmem %s3134_s30, 3072  ;;  %p3041_p13 = scmp.lt.s32.totalorder %s3134_s30, %s3134_s30 }
  0x2d   : > { %p3034_p10 = scmp.ne.s32.totalorder %s3134_s30, %s3033_s26  ;;  %p3042_p0 = scmp.lt.s32.totalorder %s3033_s26, %s3033_s26 }
  0x2f   : > { %p3036_p11 = pnand %p3034_p10, %p2994_p7  ;;  %p3043_p1 = por %p3042_p0, %p3041_p13 }
  0x31   : > { %p3037_p12 = pneg %p3036_p11 }
  0x33   : > { %p3044_p4 = pnand %p3043_p1, %p3037_p12 }
  0x35   : > { %3047 = shalt.err (!%p3044_p4)
}
  0x36   : > { %s3068_s11 = smov 64   ;;  %s3069_s12 = smov 4  }
  0x37   : > { %2868 = dma.hbm_to_vmem [thread:$0]  (!%p3130_p5), %s3665_s6, 3072, %s3134_s30, [#allocation5], %s3068_s11, %s3068_s11, %s3069_s12  }
  0x38   : > { %p3671_p6 = scmp.ne.s32.totalorder %s3669_s28, 0 }
  0x39   : > { %p3672_p7 = scmp.eq.s32.totalorder (!%p3671_p6), %s3117_s27, 0 }
  0x3a   : > { %273 = sbr.rel (%p3671_p6) target bundleno = 862 (0x35e), region = 48 }
  0x41   : > { %3053 = dma.done.wait (%p3672_p7), [#allocation3], 3072   ;;  %p3673_p2 = pmov %p3672_p7 }
  0x43   : > { %3055 = vsyncadd (%p3673_p2), [#allocation3], 4294964224  ;;  %p3674_p3 = pmov %p3673_p2 }
  0x44   : > { %p3675_p8 = pmov %p3673_p2 }
  0x45   : > { %3057 = dma.done.wait (%p3674_p3), [#allocation5], 3072  }
  0x46   : > { %3059 = vsyncadd (%p3675_p8), [#allocation5], 4294964224  ;;  %v3070_v0 = vmov 0   ;;  %p314_p5 = scmp.lt.s32.totalorder %s3117_s27, 1  ;;  %v2888_v1 = vld [vmem:[%s3661_s2 + $0x4] ss:$12 sps:$4 sm:$0xff]  }
  0x47   : > { %603 = vmatprep.mubr.bf16.mxu0 %v3070_v0  ;;  %643 = vmatprep.mubr.bf16.mxu1 %v3070_v0  ;;  %v2890_v2 = vld [vmem:[%s3661_s2] ss:$12 sps:$4 sm:$0xff]   ;;  %v2891_v3 = vld [vmem:[%s3661_s2 + $0x1c] ss:$12 sps:$4 sm:$0xff]   ;;  %v2893_v4 = vld [vmem:[%s3661_s2 + $0x18] ss:$12 sps:$4 sm:$0xff]  }
  0x48   : > { %571 = vmatprep.subr.bf16.mxu0 %v2888_v1  ;;  %2837 = vmatprep.subr.bf16.mxu1 %v2888_v1  ;;  %s3677_s27 = smov (!%p314_p5, %s3117_s27), 1  ;;  %v2894_v5 = vld [vmem:[%s3661_s2 + $0x34] ss:$12 sps:$4 sm:$0xff]   ;;  %v2896_v6 = vld [vmem:[%s3661_s2 + $0x30] ss:$12 sps:$4 sm:$0xff]   ;;  %v2969_v51 = vld [vmem:[#allocation4 + $0x8] sm:$0xff]  }
  0x49   : > { %572 = vmatpush1.bf16.msra.mxu0 %v2890_v2  ;;  %2845 = vmatpush1.bf16.msra.mxu1 %v2890_v2  ;;  %s2451_s22 = sshll.u32 %s3677_s27, 6  ;;  %v2897_v7 = vld [vmem:[%s3661_s2 + $0x4c] ss:$12 sps:$4 sm:$0xff]   ;;  %v2899_v8 = vld [vmem:[%s3661_s2 + $0x48] ss:$12 sps:$4 sm:$0xff]   ;;  %v2968_v47 = vld [vmem:[#allocation4] sm:$0xff]  }
  0x4a   : > { %573 = vmatprep.subr.bf16.mxu0 %v2891_v3  ;;  %2838 = vmatprep.subr.bf16.mxu1 %v2891_v3  ;;  %s3226_s11 = scalar_lea.vmem %s3659_s0, %s2451_s22  ;;  %v2900_v9 = vld [vmem:[%s3661_s2 + $0x64] ss:$12 sps:$4 sm:$0xff]   ;;  %v2902_v10 = vld [vmem:[%s3661_s2 + $0x60] ss:$12 sps:$4 sm:$0xff]   ;;  %v2903_v11 = vld [vmem:[%s3661_s2 + $0x7c] ss:$12 sps:$4 sm:$0xff]   ;;  %s3273_s8 = scalar_lea.vmem %s3660_s1, %s2451_s22 }
  0x4b   : > { %v2905_v12 = vld [vmem:[%s3661_s2 + $0x78] ss:$12 sps:$4 sm:$0xff]   ;;  %v2906_v13 = vld [vmem:[%s3661_s2 + $0x94] ss:$12 sps:$4 sm:$0xff]   ;;  %v2908_v14 = vld [vmem:[%s3661_s2 + $0x90] ss:$12 sps:$4 sm:$0xff]  }
  0x4c   : > { %v2909_v15 = vld [vmem:[%s3661_s2 + $0xac] ss:$12 sps:$4 sm:$0xff]   ;;  %v2911_v16 = vld [vmem:[%s3661_s2 + $0xa8] ss:$12 sps:$4 sm:$0xff]   ;;  %v2912_v18 = vld [vmem:[%s3226_s11] sm:$0xff]   ;;  %s2853_s13 = smul.u32 384, %s3677_s27 }
  0x4d   : > { %574 = vmatpush1.bf16.msra.mxu0 %v2893_v4  ;;  %2846 = vmatpush1.bf16.msra.mxu1 %v2893_v4  ;;  %v2920_v17 = vld [vmem:[%s3661_s2 + $0x8] ss:$12 sps:$4 sm:$0xff]   ;;  %v3260_v19 = vld [vmem:[%s3226_s11 + $0x20] sm:$0xff]   ;;  %v2923_v24 = vld [vmem:[%s3661_s2 + $0x50] ss:$12 sps:$4 sm:$0xff]  }
  0x4e   : > { %575 = vmatprep.subr.bf16.mxu0 %v2894_v5  ;;  %2839 = vmatprep.subr.bf16.mxu1 %v2894_v5  ;;  %v2921_v20 = vld [vmem:[%s3661_s2 + $0x20] ss:$12 sps:$4 sm:$0xff]   ;;  %v2922_v22 = vld [vmem:[%s3661_s2 + $0x38] ss:$12 sps:$4 sm:$0xff]   ;;  %v2956_v25 = vld [vmem:[#allocation2 + $0x8] ss:$12 sps:$4 sm:$0xff]   ;;  %s3606_s30 = scalar_lea.vmem %s3666_s7, %s2853_s13 }
  0x4f   : > { %v3276_v21 = vld [vmem:[%s3226_s11 + $0x8] sm:$0xff]   ;;  %v2915_v27 = vld [vmem:[%s3226_s11 + $0x10] sm:$0xff]   ;;  %v2959_v30 = vld [vmem:[#allocation2 + $0x38] ss:$12 sps:$4 sm:$0xff]  }
  0x50   : > { %v3282_v23 = vld [vmem:[%s3226_s11 + $0x28] sm:$0xff]   ;;  %v3296_v29 = vld [vmem:[%s3226_s11 + $0x30] sm:$0xff]   ;;  %v2917_v33 = vld [vmem:[%s3226_s11 + $0x18] sm:$0xff]  }
  0x51   : > { %576 = vmatpush1.bf16.msra.mxu0 %v2896_v6  ;;  %2847 = vmatpush1.bf16.msra.mxu1 %v2896_v6  ;;  %v2957_v26 = vld [vmem:[#allocation2 + $0x20] ss:$12 sps:$4 sm:$0xff]   ;;  %v2924_v28 = vld [vmem:[%s3661_s2 + $0x68] ss:$12 sps:$4 sm:$0xff]   ;;  %v2960_v32 = vld [vmem:[#allocation2 + $0x50] ss:$12 sps:$4 sm:$0xff]  }
  0x52   : > { %577 = vmatprep.subr.bf16.mxu0 %v2897_v7  ;;  %2840 = vmatprep.subr.bf16.mxu1 %v2897_v7  ;;  %v2925_v31 = vld [vmem:[%s3661_s2 + $0x80] ss:$12 sps:$4 sm:$0xff]   ;;  %v2926_v34 = vld [vmem:[%s3661_s2 + $0x98] ss:$12 sps:$4 sm:$0xff]   ;;  %v2962_v36 = vld [vmem:[#allocation2 + $0x68] ss:$12 sps:$4 sm:$0xff]  }
  0x53   : > { %v3309_v35 = vld [vmem:[%s3226_s11 + $0x38] sm:$0xff]   ;;  %v3315_v38 = vld [vmem:[%s3273_s8] sm:$0xff]   ;;  %v2953_v50 = vld [vmem:[%s3273_s8 + $0x8] sm:$0xff]  }
  0x54   : > { %v2927_v37 = vld [vmem:[%s3661_s2 + $0xb0] ss:$12 sps:$4 sm:$0xff]   ;;  %v2963_v39 = vld [vmem:[#allocation2 + $0x80] ss:$12 sps:$4 sm:$0xff]   ;;  %v2965_v41 = vld [vmem:[#allocation2 + $0x98] ss:$12 sps:$4 sm:$0xff]  }
  0x55   : > { %578 = vmatpush1.bf16.msra.mxu0 %v2899_v8  ;;  %2848 = vmatpush1.bf16.msra.mxu1 %v2899_v8  ;;  %v2930_v40 = vld [vmem:[#allocation2 + $0x4] ss:$12 sps:$4 sm:$0xff]   ;;  %v2928_v42 = vld [vmem:[#allocation2] ss:$12 sps:$4 sm:$0xff]   ;;  %v2933_v43 = vld [vmem:[#allocation2 + $0x1c] ss:$12 sps:$4 sm:$0xff]  }
  0x56   : > { %579 = vmatprep.subr.bf16.mxu0 %v2900_v9  ;;  %2841 = vmatprep.subr.bf16.mxu1 %v2900_v9  ;;  %v2966_v44 = vld [vmem:[#allocation2 + $0xb0] ss:$12 sps:$4 sm:$0xff]   ;;  %v2931_v45 = vld [vmem:[#allocation2 + $0x18] ss:$12 sps:$4 sm:$0xff]   ;;  %v2936_v46 = vld [vmem:[#allocation2 + $0x34] ss:$12 sps:$4 sm:$0xff]  }
  0x57   : > { %v2934_v48 = vld [vmem:[#allocation2 + $0x30] ss:$12 sps:$4 sm:$0xff]   ;;  %v2939_v49 = vld [vmem:[#allocation2 + $0x4c] ss:$12 sps:$4 sm:$0xff]   ;;  %v2937_v52 = vld [vmem:[#allocation2 + $0x48] ss:$12 sps:$4 sm:$0xff]  }
  0x58   : > { %v2954_v53 = vld [vmem:[%s3273_s8 + $0x10] sm:$0xff]   ;;  %v2940_v56 = vld [vmem:[#allocation2 + $0x60] ss:$12 sps:$4 sm:$0xff]   ;;  %v2945_v57 = vld [vmem:[#allocation2 + $0x7c] ss:$12 sps:$4 sm:$0xff]  }
  0x59   : > { %580 = vmatpush1.bf16.msra.mxu0 %v2902_v10  ;;  %2849 = vmatpush1.bf16.msra.mxu1 %v2902_v10  ;;  %v2942_v54 = vld [vmem:[#allocation2 + $0x64] ss:$12 sps:$4 sm:$0xff]   ;;  %v2955_v58 = vld [vmem:[%s3273_s8 + $0x18] sm:$0xff]   ;;  %v2948_v62 = vld [vmem:[#allocation2 + $0x94] ss:$12 sps:$4 sm:$0xff]  }
  0x5a   : > { %581 = vmatprep.subr.bf16.mxu0 %v2903_v11  ;;  %2842 = vmatprep.subr.bf16.mxu1 %v2903_v11  ;;  %v2970_v55 = vld [vmem:[#allocation4 + $0x10] sm:$0xff]   ;;  %v2971_v59 = vld [vmem:[#allocation4 + $0x18] sm:$0xff]   ;;  %v2958_v61 = vld [vmem:[%s3273_s8 + $0x20] sm:$0xff]   ;;  %v380_v11 = vlaneseq }
  0x5b   : > { %v2943_v60 = vld [vmem:[#allocation2 + $0x78] ss:$12 sps:$4 sm:$0xff]   ;;  %v2946_v63 = vld [vmem:[#allocation2 + $0x90] ss:$12 sps:$4 sm:$0xff]   ;;  %v2961_v2 = vld [vmem:[%s3273_s8 + $0x28] sm:$0xff]  }
  0x5c   : > { %v2951_v1 = vld [vmem:[#allocation2 + $0xac] ss:$12 sps:$4 sm:$0xff]   ;;  %v2949_v3 = vld [vmem:[#allocation2 + $0xa8] ss:$12 sps:$4 sm:$0xff]   ;;  %v2972_v6 = vld [vmem:[#allocation4 + $0x20] sm:$0xff]  }
  0x5d   : > { %582 = vmatpush1.bf16.msra.mxu0 %v2905_v12  ;;  %2850 = vmatpush1.bf16.msra.mxu1 %v2905_v12  ;;  %v2964_v4 = vld [vmem:[%s3273_s8 + $0x30] sm:$0xff]   ;;  %v2967_v5 = vld [vmem:[%s3273_s8 + $0x38] sm:$0xff]   ;;  %v2973_v7 = vld [vmem:[#allocation4 + $0x28] sm:$0xff]   ;;  %v3343_v12 = vshrl.u32 %v380_v11, 7 }
  0x5e   : > { %583 = vmatprep.subr.bf16.mxu0 %v2906_v13  ;;  %2843 = vmatprep.subr.bf16.mxu1 %v2906_v13  ;;  %v2974_v8 = vld [vmem:[#allocation4 + $0x30] sm:$0xff]   ;;  %v2975_v9 = vld [vmem:[#allocation4 + $0x38] sm:$0xff]   ;;  %v3339_v10 = vld [vmem:[#allocation4 + $0x40] sm:$0xff]  }
  0x5f   : > { %v382_v13 = vsub.s32 0, %v3343_v12 }
  0x61   : > { %584 = vmatpush1.bf16.msra.mxu0 %v2908_v14  ;;  %2851 = vmatpush1.bf16.msra.mxu1 %v2908_v14  ;;  %v3349_v14 = vld [vmem:[%s3662_s3] sm:$0x7] }
  0x62   : > { %585 = vmatprep.subr.bf16.mxu0 %v2909_v15  ;;  %2844 = vmatprep.subr.bf16.mxu1 %v2909_v15  ;;  %v386_v15 = vsub.s32 1, %v3343_v12 }
  0x65   : > { %586 = vmatpush1.bf16.msra.mxu0 %v2911_v16  ;;  %2852 = vmatpush1.bf16.msra.mxu1 %v2911_v16  ;;  %v3355_v16 = vrot.slane %v3349_v14, %v382_v13 }
  0x66   : > { %2581 = vmatprep.subr.bf16.mxu1 %v2920_v17  ;;  %2613 = vmatprep.subr.bf16.mxu0 %v2956_v25 }
  0x68   : > { %604 = vmatmul.mubr.bf16.vlgmr.msra.gmra.mrb[0].mxu0 %v2912_v18  ;;  %644 = vmatmul.mubr.bf16.vlgmr.msra.gmra.mrb[0].mxu1 %v3260_v19 }
  0x69   : > { %613 = vmatprep.mubr.bf16.mxu0 %v3070_v0  ;;  %653 = vmatprep.mubr.bf16.mxu1 %v3070_v0 }
  0x6a   : > { %2582 = vmatpush3.bf16.msra.mxu1 %v2920_v17  ;;  %2614 = vmatpush3.bf16.msra.mxu0 %v2956_v25 }
  0x6b   : > { %2583 = vmatprep.subr.bf16.mxu1 %v2921_v20  ;;  %2615 = vmatprep.subr.bf16.mxu0 %v2957_v26 }
  0x6e   : > { %2584 = vmatpush3.bf16.msra.mxu1 %v2921_v20  ;;  %2616 = vmatpush3.bf16.msra.mxu0 %v2957_v26 }
  0x6f   : > { %2585 = vmatprep.subr.bf16.mxu1 %v2922_v22  ;;  %2617 = vmatprep.subr.bf16.mxu0 %v2959_v30 }
  0x70   : > { %614 = vmatmul.mubr.bf16.gmra.mrb[4].mxu0 %v3276_v21  ;;  %654 = vmatmul.mubr.bf16.gmra.mrb[4].mxu1 %v3282_v23 }
  0x71   : > { %623 = vmatprep.mubr.bf16.mxu0 %v3070_v0  ;;  %663 = vmatprep.mubr.bf16.mxu1 %v3070_v0 }
  0x72   : > { %2586 = vmatpush3.bf16.msra.mxu1 %v2922_v22  ;;  %2618 = vmatpush3.bf16.msra.mxu0 %v2959_v30 }
  0x73   : > { %2587 = vmatprep.subr.bf16.mxu1 %v2923_v24  ;;  %2619 = vmatprep.subr.bf16.mxu0 %v2960_v32 }
  0x76   : > { %2588 = vmatpush3.bf16.msra.mxu1 %v2923_v24  ;;  %2620 = vmatpush3.bf16.msra.mxu0 %v2960_v32 }
  0x77   : > { %2589 = vmatprep.subr.bf16.mxu1 %v2924_v28  ;;  %2621 = vmatprep.subr.bf16.mxu0 %v2962_v36 }
  0x78   : > { %624 = vmatmul.mubr.bf16.gmra.mrb[8].mxu0 %v2915_v27  ;;  %664 = vmatmul.mubr.bf16.gmra.mrb[8].mxu1 %v3296_v29 }
  0x79   : > { %633 = vmatprep.mubr.bf16.mxu0 %v3070_v0  ;;  %673 = vmatprep.mubr.bf16.mxu1 %v3070_v0 }
  0x7a   : > { %2590 = vmatpush3.bf16.msra.mxu1 %v2924_v28  ;;  %2622 = vmatpush3.bf16.msra.mxu0 %v2962_v36 }
  0x7b   : > { %2591 = vmatprep.subr.bf16.mxu1 %v2925_v31  ;;  %2623 = vmatprep.subr.bf16.mxu0 %v2963_v39 }
  0x7e   : > { %2592 = vmatpush3.bf16.msra.mxu1 %v2925_v31  ;;  %2624 = vmatpush3.bf16.msra.mxu0 %v2963_v39 }
  0x7f   : > { %2593 = vmatprep.subr.bf16.mxu1 %v2926_v34  ;;  %2625 = vmatprep.subr.bf16.mxu0 %v2965_v41 }
  0x80   : > { %634 = vmatmul.mubr.bf16.gmra.mrb[12].mxu0 %v2917_v33  ;;  %674 = vmatmul.mubr.bf16.gmra.mrb[12].mxu1 %v3309_v35 }
  0x81   : > { %2597 = vmatprep.mubr.bf16.mxu1 %v2912_v18  ;;  %2629 = vmatprep.mubr.bf16.mxu0 %v3315_v38 }
  0x82   : > { %2594 = vmatpush3.bf16.msra.mxu1 %v2926_v34  ;;  %2626 = vmatpush3.bf16.msra.mxu0 %v2965_v41 }
  0x83   : > { %2595 = vmatprep.subr.bf16.mxu1 %v2927_v37  ;;  %2627 = vmatprep.subr.bf16.mxu0 %v2966_v44 }
  0x86   : > { %2596 = vmatpush3.bf16.msra.mxu1 %v2927_v37  ;;  %2628 = vmatpush3.bf16.msra.mxu0 %v2966_v44 }
  0x87   : > { %1094 = vmatprep.subr.bf16.mxu1 %v2930_v40  ;;  %2645 = vmatprep.subr.bf16.mxu0 %v2968_v47 }
  0x89   : > { %2598 = vmatmul.mubr.bf16.vlgmr.msra.gmra.mrb[16].mxu1 %v3276_v21  ;;  %2630 = vmatmul.mubr.bf16.vlgmr.msra.gmra.mrb[16].mxu0 %v2953_v50 }
  0x8a   : > { %1095 = vmatpush1.bf16.msra.mxu1 %v2928_v42  ;;  %2601 = vmatprep.mubr.bf16.mxu1 %v2915_v27 }
  0x8b   : > { %1096 = vmatprep.subr.bf16.mxu1 %v2933_v43  ;;  %2633 = vmatprep.mubr.bf16.mxu0 %v2954_v53 }
  0x8c   : > { %2646 = vmatpush3.bf16.msra.mxu0 %v2968_v47 }
  0x8d   : > { %2647 = vmatprep.subr.bf16.mxu0 %v2969_v51 }
  0x8e   : > { %1097 = vmatpush1.bf16.msra.mxu1 %v2931_v45 }
  0x8f   : > { %1098 = vmatprep.subr.bf16.mxu1 %v2936_v46 }
  0x90   : > { %2648 = vmatpush3.bf16.msra.mxu0 %v2969_v51 }
  0x91   : > { %2602 = vmatmul.mubr.bf16.gmra.mrb[20].mxu1 %v2917_v33  ;;  %2649 = vmatprep.subr.bf16.mxu0 %v2970_v55 }
  0x92   : > { %1099 = vmatpush1.bf16.msra.mxu1 %v2934_v48  ;;  %2605 = vmatprep.mubr.bf16.mxu1 %v3260_v19 }
  0x93   : > { %1100 = vmatprep.subr.bf16.mxu1 %v2939_v49  ;;  %2634 = vmatmul.mubr.bf16.gmra.mrb[20].mxu0 %v2955_v58 }
  0x94   : > { %2637 = vmatprep.mubr.bf16.mxu0 %v2958_v61  ;;  %2650 = vmatpush3.bf16.msra.mxu0 %v2970_v55 }
  0x95   : > { %2651 = vmatprep.subr.bf16.mxu0 %v2971_v59 }
  0x96   : > { %1101 = vmatpush1.bf16.msra.mxu1 %v2937_v52 }
  0x97   : > { %1102 = vmatprep.subr.bf16.mxu1 %v2942_v54 }
  0x98   : > { %2652 = vmatpush3.bf16.msra.mxu0 %v2971_v59 }
  0x99   : > { %2606 = vmatmul.mubr.bf16.gmra.mrb[24].mxu1 %v3282_v23  ;;  %2653 = vmatprep.subr.bf16.mxu0 %v2972_v6 }
  0x9a   : > { %1103 = vmatpush1.bf16.msra.mxu1 %v2940_v56  ;;  %2609 = vmatprep.mubr.bf16.mxu1 %v3296_v29 }
  0x9b   : > { %1104 = vmatprep.subr.bf16.mxu1 %v2945_v57  ;;  %2638 = vmatmul.mubr.bf16.gmra.mrb[24].mxu0 %v2961_v2 }
  0x9c   : > { %2641 = vmatprep.mubr.bf16.mxu0 %v2964_v4  ;;  %2654 = vmatpush3.bf16.msra.mxu0 %v2972_v6 }
  0x9d   : > { %2655 = vmatprep.subr.bf16.mxu0 %v2973_v7 }
  0x9e   : > { %1105 = vmatpush1.bf16.msra.mxu1 %v2943_v60 }
  0x9f   : > { %1106 = vmatprep.subr.bf16.mxu1 %v2948_v62 }
  0xa0   : > { %2656 = vmatpush3.bf16.msra.mxu0 %v2973_v7 }
  0xa1   : > { %2610 = vmatmul.mubr.bf16.gmra.mrb[28].mxu1 %v3309_v35  ;;  %2657 = vmatprep.subr.bf16.mxu0 %v2974_v8 }
  0xa2   : > { %1107 = vmatpush1.bf16.msra.mxu1 %v2946_v63  ;;  %1126 = vmatprep.mubr.bf16.mxu1 %v3070_v0 }
  0xa3   : > { %1108 = vmatprep.subr.bf16.mxu1 %v2951_v1  ;;  %2642 = vmatmul.mubr.bf16.gmra.mrb[28].mxu0 %v2967_v5 }
  0xa4   : > { %2658 = vmatpush3.bf16.msra.mxu0 %v2974_v8  ;;  %v2977_v8 = vld [vmem:[#allocation4 + $0x48] sm:$0xff]  }
  0xa5   : > { %2659 = vmatprep.subr.bf16.mxu0 %v2975_v9 }
  0xa6   : > { %1109 = vmatpush1.bf16.msra.mxu1 %v2949_v3 }
  0xa8   : > { %2660 = vmatpush3.bf16.msra.mxu0 %v2975_v9 }
  0xa9   : > { %1127 = vmatmul.mubr.bf16.vlgmr.msra.gmra.mrb[32].mxu1 %v3315_v38  ;;  %2709 = vmatprep.subr.bf16.mxu0 %v3339_v10 }
  0xaa   : > { %1136 = vmatprep.mubr.bf16.mxu1 %v3070_v0 }
  0xb1   : > { %1137 = vmatmul.mubr.bf16.gmra.mrb[36].mxu1 %v2953_v50 }
  0xb2   : > { %1146 = vmatprep.mubr.bf16.mxu1 %v3070_v0 }
  0xb9   : > { %1147 = vmatmul.mubr.bf16.gmra.mrb[40].mxu1 %v2954_v53 }
  0xba   : > { %1156 = vmatprep.mubr.bf16.mxu1 %v3070_v0 }
  0xc1   : > { %1157 = vmatmul.mubr.bf16.gmra.mrb[44].mxu1 %v2955_v58 }
  0xc2   : > { %1166 = vmatprep.mubr.bf16.mxu1 %v3070_v0 }
  0xc9   : > { %1167 = vmatmul.mubr.bf16.gmra.mrb[48].mxu1 %v2958_v61 }
  0xca   : > { %1176 = vmatprep.mubr.bf16.mxu1 %v3070_v0 }
  0xd1   : > { %1177 = vmatmul.mubr.bf16.gmra.mrb[52].mxu1 %v2961_v2 }
  0xd2   : > { %1186 = vmatprep.mubr.bf16.mxu1 %v3070_v0 }
  0xd9   : > { %1187 = vmatmul.mubr.bf16.gmra.mrb[56].mxu1 %v2964_v4 }
  0xda   : > { %1196 = vmatprep.mubr.bf16.mxu1 %v3070_v0  ;;  %v3360_v0 = vrot.slane %v3349_v14, %v386_v15 }
  0xe1   : > { %1197 = vmatmul.mubr.bf16.gmra.mrb[60].mxu1 %v2967_v5 }
 0x13b   : > { %v605_v17 = vpop.f32.mrb[0].mxu0  ;;  %v645_v18 = vpop.f32.mrb[0].mxu1 }
 0x13c   : > { %v606_v19 = vadd.f32 %v605_v17, %v3355_v16  ;;  %v607_v20 = vpop.f32.mrb[1].mxu0  ;;  %v646_v21 = vadd.f32 %v645_v18, %v3355_v16  ;;  %v647_v22 = vpop.f32.mrb[1].mxu1 }
 0x13d   : > { %v608_v23 = vadd.f32 %v607_v20, %v3360_v0  ;;  %v609_v24 = vpop.f32.mrb[2].mxu0  ;;  %v648_v25 = vadd.f32 %v647_v22, %v3360_v0  ;;  %v649_v26 = vpop.f32.mrb[2].mxu1 }
 0x13e   : > { %v610_v27 = vadd.f32 %v609_v24, %v3355_v16  ;;  %v611_v28 = vpop.f32.mrb[3].mxu0  ;;  %v805_v29 = vmax.f32 %v646_v21, 0.0  ;;  %v650_v30 = vadd.f32 %v649_v26, %v3355_v16  ;;  %v651_v31 = vpop.f32.mrb[3].mxu1  ;;  %v781_v35 = vmax.f32 %v606_v19, 0.0 }
 0x13f   : > { %v612_v32 = vadd.f32 %v611_v28, %v3360_v0  ;;  %v806_v33 = vmax.f32 %v648_v25, 0.0  ;;  %v652_v34 = vadd.f32 %v651_v31, %v3360_v0  ;;  %v782_v38 = vmax.f32 %v608_v23, 0.0 }
 0x140   : > { %v784_v36 = vmax.f32 %v610_v27, 0.0  ;;  %v808_v37 = vmax.f32 %v650_v30, 0.0 }
 0x141   : > { %v785_v39 = vmax.f32 %v612_v32, 0.0  ;;  %v809_v40 = vmax.f32 %v652_v34, 0.0  ;;  %v2978_v32 = vld [vmem:[#allocation4 + $0x50] sm:$0xff]  }
 0x142   : > { %v829_v41 = vpack.c.bf16 %v784_v36, %v781_v35  ;;  %v3370_v42 = vpack.c.bf16 %v808_v37, %v805_v29 }
 0x143   : > { %v3372_v43 = vpack.c.bf16 %v785_v39, %v782_v38  ;;  %v615_v44 = vpop.f32.mrb[4].mxu0  ;;  %v3374_v45 = vpack.c.bf16 %v809_v40, %v806_v33  ;;  %v655_v46 = vpop.f32.mrb[4].mxu1 }
 0x144   : > { %v616_v47 = vadd.f32 %v615_v44, %v3355_v16  ;;  %v617_v48 = vpop.f32.mrb[5].mxu0  ;;  %2661 = vmatprep.mubr.bf16.mxu0 %v829_v41  ;;  %v656_v49 = vadd.f32 %v655_v46, %v3355_v16  ;;  %v657_v50 = vpop.f32.mrb[5].mxu1  ;;  %v2979_v46 = vld [vmem:[#allocation4 + $0x58] sm:$0xff]  }
 0x145   : > { %v618_v51 = vadd.f32 %v617_v48, %v3360_v0  ;;  %v619_v52 = vpop.f32.mrb[6].mxu0  ;;  %v658_v53 = vadd.f32 %v657_v50, %v3360_v0  ;;  %v659_v54 = vpop.f32.mrb[6].mxu1 }
 0x146   : > { %v620_v55 = vadd.f32 %v619_v52, %v3355_v16  ;;  %v621_v56 = vpop.f32.mrb[7].mxu0  ;;  %v811_v57 = vmax.f32 %v656_v49, 0.0  ;;  %v660_v58 = vadd.f32 %v659_v54, %v3355_v16  ;;  %v661_v59 = vpop.f32.mrb[7].mxu1  ;;  %v787_v63 = vmax.f32 %v616_v47, 0.0 }
 0x147   : > { %v622_v60 = vadd.f32 %v621_v56, %v3360_v0  ;;  %v812_v61 = vmax.f32 %v658_v53, 0.0  ;;  %v662_v62 = vadd.f32 %v661_v59, %v3360_v0  ;;  %v788_v3 = vmax.f32 %v618_v51, 0.0 }
 0x148   : > { %v790_v1 = vmax.f32 %v620_v55, 0.0  ;;  %v814_v2 = vmax.f32 %v660_v58, 0.0  ;;  %v390_v59 = vsub.s32 2, %v3343_v12 }
 0x149   : > { %v791_v4 = vmax.f32 %v622_v60, 0.0  ;;  %v815_v5 = vmax.f32 %v662_v62, 0.0 }
 0x14a   : > { %v832_v6 = vpack.c.bf16 %v790_v1, %v787_v63  ;;  %v3384_v7 = vpack.c.bf16 %v814_v2, %v811_v57  ;;  %v2980_v2 = vld [vmem:[#allocation4 + $0x60] sm:$0xff]  }
 0x14b   : > { %v3386_v9 = vpack.c.bf16 %v791_v4, %v788_v3  ;;  %v625_v11 = vpop.f32.mrb[8].mxu0  ;;  %v3388_v17 = vpack.c.bf16 %v815_v5, %v812_v61  ;;  %v665_v18 = vpop.f32.mrb[8].mxu1 }
 0x14c   : > { %v626_v19 = vadd.f32 %v625_v11, %v3355_v16  ;;  %v627_v20 = vpop.f32.mrb[9].mxu0  ;;  %2662 = vmatmul.mubr.bf16.vlgmr.msra.gmra.mrb[32].mxu0 %v832_v6  ;;  %v666_v21 = vadd.f32 %v665_v18, %v3355_v16  ;;  %v667_v22 = vpop.f32.mrb[9].mxu1 }
 0x14d   : > { %v628_v23 = vadd.f32 %v627_v20, %v3360_v0  ;;  %v629_v24 = vpop.f32.mrb[10].mxu0  ;;  %2710 = vmatpush3.bf16.msra.mxu0 %v3339_v10  ;;  %v668_v25 = vadd.f32 %v667_v22, %v3360_v0  ;;  %v669_v26 = vpop.f32.mrb[10].mxu1 }
 0x14e   : > { %v630_v27 = vadd.f32 %v629_v24, %v3355_v16  ;;  %v631_v28 = vpop.f32.mrb[11].mxu0  ;;  %2711 = vmatprep.subr.bf16.mxu0 %v2977_v8  ;;  %v817_v29 = vmax.f32 %v666_v21, 0.0  ;;  %v670_v30 = vadd.f32 %v669_v26, %v3355_v16  ;;  %v671_v31 = vpop.f32.mrb[11].mxu1  ;;  %v793_v36 = vmax.f32 %v626_v19, 0.0 }
 0x14f   : > { %v632_v33 = vadd.f32 %v631_v28, %v3360_v0  ;;  %v818_v34 = vmax.f32 %v668_v25, 0.0  ;;  %v672_v35 = vadd.f32 %v671_v31, %v3360_v0  ;;  %v794_v38 = vmax.f32 %v628_v23, 0.0  ;;  %v2982_v28 = vld [vmem:[#allocation4 + $0x70] sm:$0xff]  }
 0x150   : > { %v796_v37 = vmax.f32 %v630_v27, 0.0  ;;  %v820_v10 = vmax.f32 %v670_v30, 0.0  ;;  %v3415_v21 = vrot.slane %v3349_v14, %v390_v59 }
 0x151   : > { %v797_v39 = vmax.f32 %v632_v33, 0.0  ;;  %2712 = vmatpush3.bf16.msra.mxu0 %v2977_v8  ;;  %v821_v40 = vmax.f32 %v672_v35, 0.0 }
 0x152   : > { %v835_v41 = vpack.c.bf16 %v796_v37, %v793_v36  ;;  %v3399_v44 = vpack.c.bf16 %v820_v10, %v817_v29  ;;  %2713 = vmatprep.subr.bf16.mxu0 %v2978_v32  ;;  %v3431_v10 = vld [vmem:[%s3664_s5] sm:$0x7] }
 0x153   : > { %v3401_v47 = vpack.c.bf16 %v797_v39, %v794_v38  ;;  %v635_v48 = vpop.f32.mrb[12].mxu0  ;;  %v3403_v49 = vpack.c.bf16 %v821_v40, %v818_v34  ;;  %v675_v50 = vpop.f32.mrb[12].mxu1  ;;  %v3437_v40 = vrot.slane %v3431_v10, %v390_v59 }
 0x154   : > { %v636_v51 = vadd.f32 %v635_v48, %v3355_v16  ;;  %v637_v52 = vpop.f32.mrb[13].mxu0  ;;  %2665 = vmatprep.mubr.bf16.mxu0 %v835_v41  ;;  %v676_v53 = vadd.f32 %v675_v50, %v3355_v16  ;;  %v677_v54 = vpop.f32.mrb[13].mxu1  ;;  %v2984_v48 = vld [vmem:[#allocation4 + $0x80] sm:$0xff]  }
 0x155   : > { %v638_v55 = vadd.f32 %v637_v52, %v3360_v0  ;;  %v639_v56 = vpop.f32.mrb[14].mxu0  ;;  %2714 = vmatpush3.bf16.msra.mxu0 %v2978_v32  ;;  %v678_v57 = vadd.f32 %v677_v54, %v3360_v0  ;;  %v679_v58 = vpop.f32.mrb[14].mxu1 }
 0x156   : > { %v640_v60 = vadd.f32 %v639_v56, %v3355_v16  ;;  %v641_v61 = vpop.f32.mrb[15].mxu0  ;;  %2715 = vmatprep.subr.bf16.mxu0 %v2979_v46  ;;  %v823_v62 = vmax.f32 %v676_v53, 0.0  ;;  %v680_v63 = vadd.f32 %v679_v58, %v3355_v16  ;;  %v681_v1 = vpop.f32.mrb[15].mxu1  ;;  %v799_v6 = vmax.f32 %v636_v51, 0.0  ;;  %v2981_v16 = vld [vmem:[#allocation4 + $0x68] sm:$0xff]  }
 0x157   : > { %v642_v3 = vadd.f32 %v641_v61, %v3360_v0  ;;  %v824_v4 = vmax.f32 %v678_v57, 0.0  ;;  %v682_v5 = vadd.f32 %v681_v1, %v3360_v0  ;;  %v800_v18 = vmax.f32 %v638_v55, 0.0 }
 0x158   : > { %v802_v8 = vmax.f32 %v640_v60, 0.0  ;;  %v826_v11 = vmax.f32 %v680_v63, 0.0 }
 0x159   : > { %v803_v19 = vmax.f32 %v642_v3, 0.0  ;;  %2716 = vmatpush3.bf16.msra.mxu0 %v2979_v46  ;;  %v827_v20 = vmax.f32 %v682_v5, 0.0 }
 0x15a   : > { %v838_v22 = vpack.c.bf16 %v802_v8, %v799_v6  ;;  %v850_v23 = vpack.c.bf16 %v826_v11, %v823_v62  ;;  %2717 = vmatprep.subr.bf16.mxu0 %v2980_v2 }
 0x15b   : > { %v3417_v24 = vpack.c.bf16 %v803_v19, %v800_v18  ;;  %v3419_v25 = vpack.c.bf16 %v827_v20, %v824_v4 }
 0x15c   : > { %2666 = vmatmul.mubr.bf16.gmra.mrb[36].mxu0 %v838_v22  ;;  %v2599_v0 = vpop.f32.mrb[16].mxu1  ;;  %v2631_v52 = vpop.f32.mrb[16].mxu0 }
 0x15d   : > { %2669 = vmatprep.mubr.bf16.mxu0 %v3370_v42  ;;  %2718 = vmatpush3.bf16.msra.mxu0 %v2980_v2  ;;  %v727_v26 = vadd.f32 %v2599_v0, %v3415_v21  ;;  %v718_v27 = vpop.f32.mrb[17].mxu1  ;;  %v2983_v42 = vld [vmem:[#allocation4 + $0x78] sm:$0xff]   ;;  %v1250_v55 = vadd.f32 %v2631_v52, %v3437_v40  ;;  %v1241_v56 = vpop.f32.mrb[17].mxu0 }
 0x15e   : > { %2719 = vmatprep.subr.bf16.mxu0 %v2981_v16  ;;  %v719_v14 = vadd.f32 %v718_v27, %v3415_v21  ;;  %v2600_v29 = vpop.f32.mrb[18].mxu1  ;;  %v1242_v58 = vadd.f32 %v1241_v56, %v3437_v40  ;;  %v2632_v59 = vpop.f32.mrb[18].mxu0 }
 0x15f   : > { %v789_v30 = vmax.f32 %v727_v26, 0.0  ;;  %v730_v31 = vadd.f32 %v2600_v29, %v3415_v21  ;;  %v721_v32 = vpop.f32.mrb[19].mxu1  ;;  %v1312_v61 = vmax.f32 %v1250_v55, 0.0  ;;  %v1253_v62 = vadd.f32 %v2632_v59, %v3437_v40  ;;  %v1244_v63 = vpop.f32.mrb[19].mxu0 }
 0x160   : > { %v783_v33 = vmax.f32 %v719_v14, 0.0  ;;  %v722_v34 = vadd.f32 %v721_v32, %v3415_v21  ;;  %v1306_v2 = vmax.f32 %v1242_v58, 0.0  ;;  %v1245_v3 = vadd.f32 %v1244_v63, %v3437_v40 }
 0x161   : > { %2720 = vmatpush3.bf16.msra.mxu0 %v2981_v16  ;;  %v792_v35 = vmax.f32 %v730_v31, 0.0  ;;  %v1315_v5 = vmax.f32 %v1253_v62, 0.0 }
 0x162   : > { %2721 = vmatprep.subr.bf16.mxu0 %v2982_v28  ;;  %v786_v36 = vmax.f32 %v722_v34, 0.0  ;;  %v1309_v11 = vmax.f32 %v1245_v3, 0.0 }
 0x163   : > { %v3426_v37 = vpack.c.bf16 %v792_v35, %v789_v30  ;;  %v3454_v20 = vpack.c.bf16 %v1315_v5, %v1312_v61 }
 0x164   : > { %2670 = vmatmul.mubr.bf16.gmra.mrb[40].mxu0 %v3384_v7  ;;  %v3434_v38 = vpack.c.bf16 %v786_v36, %v783_v33  ;;  %v2603_v39 = vpop.f32.mrb[20].mxu1  ;;  %v3457_v0 = vpack.c.bf16 %v1309_v11, %v1306_v2  ;;  %v2985_v36 = vld [vmem:[#allocation4 + $0x88] sm:$0xff]  }
 0x165   : > { %2673 = vmatprep.mubr.bf16.mxu0 %v3399_v44  ;;  %2722 = vmatpush3.bf16.msra.mxu0 %v2982_v28  ;;  %v743_v41 = vadd.f32 %v2603_v39, %v3415_v21  ;;  %v734_v46 = vpop.f32.mrb[21].mxu1 }
 0x166   : > { %2723 = vmatprep.subr.bf16.mxu0 %v2983_v42  ;;  %v735_v50 = vadd.f32 %v734_v46, %v3415_v21  ;;  %v2604_v51 = vpop.f32.mrb[22].mxu1  ;;  %v2635_v26 = vpop.f32.mrb[20].mxu0 }
 0x167   : > { %v801_v53 = vmax.f32 %v743_v41, 0.0  ;;  %v746_v7 = vadd.f32 %v2604_v51, %v3415_v21  ;;  %v737_v54 = vpop.f32.mrb[23].mxu1  ;;  %v1266_v14 = vadd.f32 %v2635_v26, %v3437_v40  ;;  %v1257_v29 = vpop.f32.mrb[21].mxu0 }
 0x168   : > { %v795_v57 = vmax.f32 %v735_v50, 0.0  ;;  %v738_v44 = vadd.f32 %v737_v54, %v3415_v21  ;;  %v1258_v31 = vadd.f32 %v1257_v29, %v3437_v40  ;;  %v2636_v32 = vpop.f32.mrb[22].mxu0 }
 0x169   : > { %2724 = vmatpush3.bf16.msra.mxu0 %v2983_v42  ;;  %v804_v60 = vmax.f32 %v746_v7, 0.0  ;;  %v1324_v34 = vmax.f32 %v1266_v14, 0.0  ;;  %v1269_v35 = vadd.f32 %v2636_v32, %v3437_v40  ;;  %v1260_v42 = vpop.f32.mrb[23].mxu0 }
 0x16a   : > { %2773 = vmatprep.subr.bf16.mxu0 %v2984_v48  ;;  %v798_v1 = vmax.f32 %v738_v44, 0.0  ;;  %v1318_v41 = vmax.f32 %v1258_v31, 0.0  ;;  %v1261_v46 = vadd.f32 %v1260_v42, %v3437_v40 }
 0x16b   : > { %v3448_v4 = vpack.c.bf16 %v804_v60, %v801_v53  ;;  %v1327_v51 = vmax.f32 %v1269_v35, 0.0 }
 0x16c   : > { %2674 = vmatmul.mubr.bf16.gmra.mrb[44].mxu0 %v850_v23  ;;  %v3450_v6 = vpack.c.bf16 %v798_v1, %v795_v57  ;;  %v2607_v8 = vpop.f32.mrb[24].mxu1  ;;  %v1321_v7 = vmax.f32 %v1261_v46, 0.0  ;;  %v2986_v57 = vld [vmem:[#allocation4 + $0x90] sm:$0xff]  }
 0x16d   : > { %2725 = vmatprep.mubr.bf16.mxu0 %v3372_v43  ;;  %v759_v18 = vadd.f32 %v2607_v8, %v3415_v21  ;;  %v750_v19 = vpop.f32.mrb[25].mxu1  ;;  %v3472_v56 = vpack.c.bf16 %v1327_v51, %v1324_v34  ;;  %v3484_v8 = vrot.slane %v3431_v10, %v382_v13 }
 0x16e   : > { %v751_v22 = vadd.f32 %v750_v19, %v3415_v21  ;;  %v2608_v16 = vpop.f32.mrb[26].mxu1  ;;  %v3475_v59 = vpack.c.bf16 %v1321_v7, %v1318_v41 }
 0x16f   : > { %v813_v27 = vmax.f32 %v759_v18, 0.0  ;;  %v762_v23 = vadd.f32 %v2608_v16, %v3415_v21  ;;  %v753_v28 = vpop.f32.mrb[27].mxu1 }
 0x170   : > { %v807_v30 = vmax.f32 %v751_v22, 0.0  ;;  %v754_v43 = vadd.f32 %v753_v28, %v3415_v21  ;;  %v2987_v22 = vld [vmem:[#allocation4 + $0x98] sm:$0xff]  }
 0x171   : > { %v816_v33 = vmax.f32 %v762_v23, 0.0 }
 0x172   : > { %v810_v39 = vmax.f32 %v754_v43, 0.0 }
 0x173   : > { %v3465_v50 = vpack.c.bf16 %v816_v33, %v813_v27 }
 0x174   : > { %2726 = vmatmul.mubr.bf16.vlgmr.msra.gmra.mrb[48].mxu0 %v3386_v9  ;;  %v3468_v52 = vpack.c.bf16 %v810_v39, %v807_v30  ;;  %v2611_v53 = vpop.f32.mrb[28].mxu1  ;;  %v2639_v9 = vpop.f32.mrb[24].mxu0 }
 0x175   : > { %2774 = vmatpush3.bf16.msra.mxu0 %v2984_v48  ;;  %2729 = vmatprep.mubr.bf16.mxu0 %v3401_v47  ;;  %v775_v54 = vadd.f32 %v2611_v53, %v3415_v21  ;;  %v766_v55 = vpop.f32.mrb[29].mxu1  ;;  %v1282_v48 = vadd.f32 %v2639_v9, %v3437_v40  ;;  %v1273_v47 = vpop.f32.mrb[25].mxu0 }
 0x176   : > { %2775 = vmatprep.subr.bf16.mxu0 %v2985_v36  ;;  %v767_v44 = vadd.f32 %v766_v55, %v3415_v21  ;;  %v2612_v58 = vpop.f32.mrb[30].mxu1  ;;  %v1274_v2 = vadd.f32 %v1273_v47, %v3437_v40  ;;  %v2640_v3 = vpop.f32.mrb[26].mxu0  ;;  %v2989_v55 = vld [vmem:[#allocation4 + $0xa8] sm:$0xff]  }
 0x177   : > { %v825_v60 = vmax.f32 %v775_v54, 0.0  ;;  %v778_v61 = vadd.f32 %v2612_v58, %v3415_v21  ;;  %v769_v62 = vpop.f32.mrb[31].mxu1  ;;  %v1336_v11 = vmax.f32 %v1282_v48, 0.0  ;;  %v1285_v18 = vadd.f32 %v2640_v3, %v3437_v40  ;;  %v1276_v19 = vpop.f32.mrb[27].mxu0 }
 0x178   : > { %v819_v63 = vmax.f32 %v767_v44, 0.0  ;;  %v770_v1 = vadd.f32 %v769_v62, %v3415_v21  ;;  %v3490_v21 = vrot.slane %v3431_v10, %v386_v15  ;;  %v1330_v26 = vmax.f32 %v1274_v2, 0.0  ;;  %v2988_v10 = vld [vmem:[#allocation4 + $0xa0] sm:$0xff]   ;;  %v2990_v2 = vld [vmem:[#allocation4 + $0xb0] sm:$0xff]  }
 0x179   : > { %2776 = vmatpush3.bf16.msra.mxu0 %v2985_v36  ;;  %v828_v5 = vmax.f32 %v778_v61, 0.0  ;;  %v1277_v27 = vadd.f32 %v1276_v19, %v3437_v40  ;;  %v1339_v28 = vmax.f32 %v1285_v18, 0.0 }
 0x17a   : > { %2777 = vmatprep.subr.bf16.mxu0 %v2986_v57  ;;  %v822_v16 = vmax.f32 %v770_v1, 0.0 }
 0x17b   : > { %v3493_v23 = vpack.c.bf16 %v828_v5, %v825_v60  ;;  %v1333_v29 = vmax.f32 %v1277_v27, 0.0  ;;  %v3500_v15 = vpack.c.bf16 %v1339_v28, %v1336_v11 }
 0x17c   : > { %2730 = vmatmul.mubr.bf16.gmra.mrb[52].mxu0 %v3417_v24  ;;  %v3496_v13 = vpack.c.bf16 %v822_v16, %v819_v63  ;;  %v1128_v14 = vpop.f32.mrb[32].mxu1  ;;  %v2643_v24 = vpop.f32.mrb[28].mxu0  ;;  %v2991_v16 = vld [vmem:[#allocation4 + $0xb8] sm:$0xff]  }
 0x17d   : > { %2778 = vmatpush3.bf16.msra.mxu0 %v2986_v57  ;;  %2733 = vmatprep.mubr.bf16.mxu0 %v3374_v45  ;;  %v1129_v12 = vadd.f32 %v1128_v14, %v3484_v8  ;;  %v1130_v30 = vpop.f32.mrb[33].mxu1  ;;  %v3503_v32 = vpack.c.bf16 %v1333_v29, %v1330_v26  ;;  %v1298_v42 = vadd.f32 %v2643_v24, %v3437_v40  ;;  %v1289_v45 = vpop.f32.mrb[29].mxu0 }
 0x17e   : > { %2779 = vmatprep.subr.bf16.mxu0 %v2987_v22  ;;  %v1131_v43 = vadd.f32 %v1130_v30, %v3490_v21  ;;  %v1132_v31 = vpop.f32.mrb[34].mxu1  ;;  %v1290_v41 = vadd.f32 %v1289_v45, %v3437_v40  ;;  %v2644_v46 = vpop.f32.mrb[30].mxu0 }
 0x17f   : > { %v1304_v33 = vmax.f32 %v1129_v12, 0.0  ;;  %v1133_v34 = vadd.f32 %v1132_v31, %v3484_v8  ;;  %v1134_v35 = vpop.f32.mrb[35].mxu1  ;;  %v1348_v53 = vmax.f32 %v1298_v42, 0.0  ;;  %v1301_v7 = vadd.f32 %v2644_v46, %v3437_v40  ;;  %v1292_v54 = vpop.f32.mrb[31].mxu0 }
 0x180   : > { %v1305_v36 = vmax.f32 %v1131_v43, 0.0  ;;  %v1135_v39 = vadd.f32 %v1134_v35, %v3490_v21  ;;  %v1342_v44 = vmax.f32 %v1290_v41, 0.0  ;;  %v1293_v58 = vadd.f32 %v1292_v54, %v3437_v40 }
 0x181   : > { %2780 = vmatpush3.bf16.msra.mxu0 %v2987_v22  ;;  %v1307_v51 = vmax.f32 %v1133_v34, 0.0  ;;  %v1351_v60 = vmax.f32 %v1301_v7, 0.0 }
 0x182   : > { %2781 = vmatprep.subr.bf16.mxu0 %v2988_v10  ;;  %v1308_v57 = vmax.f32 %v1135_v39, 0.0  ;;  %v1345_v48 = vmax.f32 %v1293_v58, 0.0 }
 0x183   : > { %v1352_v9 = vpack.c.bf16 %v1307_v51, %v1304_v33  ;;  %v3516_v1 = vpack.c.bf16 %v1351_v60, %v1348_v53 }
 0x184   : > { %2734 = vmatmul.mubr.bf16.gmra.mrb[56].mxu0 %v3388_v17  ;;  %v3512_v61 = vpack.c.bf16 %v1308_v57, %v1305_v36  ;;  %v1138_v62 = vpop.f32.mrb[36].mxu1  ;;  %v3519_v5 = vpack.c.bf16 %v1345_v48, %v1342_v44 }
 0x185   : > { %2782 = vmatpush3.bf16.msra.mxu0 %v2988_v10  ;;  %2737 = vmatprep.mubr.bf16.mxu0 %v3403_v49  ;;  %v1139_v47 = vadd.f32 %v1138_v62, %v3484_v8  ;;  %v1140_v63 = vpop.f32.mrb[37].mxu1 }
 0x186   : > { %2783 = vmatprep.subr.bf16.mxu0 %v2989_v55  ;;  %v1141_v40 = vadd.f32 %v1140_v63, %v3490_v21  ;;  %2677 = vmatprep.subr.bf16.mxu1 %v1352_v9  ;;  %v1142_v3 = vpop.f32.mrb[38].mxu1 }
 0x187   : > { %v1310_v17 = vmax.f32 %v1139_v47, 0.0  ;;  %v1143_v11 = vadd.f32 %v1142_v3, %v3484_v8  ;;  %2678 = vmatpush3.bf16.xpose.msra.mxu1 %v1352_v9  ;;  %v1144_v18 = vpop.f32.mrb[39].mxu1 }
 0x188   : > { %v1311_v19 = vmax.f32 %v1141_v40, 0.0  ;;  %v1145_v49 = vadd.f32 %v1144_v18, %v3490_v21 }
 0x189   : > { %2784 = vmatpush3.bf16.msra.mxu0 %v2989_v55  ;;  %v1313_v22 = vmax.f32 %v1143_v11, 0.0 }
 0x18a   : > { %2785 = vmatprep.subr.bf16.mxu0 %v2990_v2  ;;  %v1314_v26 = vmax.f32 %v1145_v49, 0.0 }
 0x18b   : > { %v1355_v27 = vpack.c.bf16 %v1313_v22, %v1310_v17 }
 0x18c   : > { %2738 = vmatmul.mubr.bf16.gmra.mrb[60].mxu0 %v3419_v25  ;;  %v3524_v28 = vpack.c.bf16 %v1314_v26, %v1311_v19  ;;  %v1148_v14 = vpop.f32.mrb[40].mxu1 }
 0x18d   : > { %2786 = vmatpush3.bf16.msra.mxu0 %v2990_v2  ;;  %2789 = vmatprep.mubr.bf16.mxu0 %v3434_v38  ;;  %v1149_v29 = vadd.f32 %v1148_v14, %v3484_v8  ;;  %v1150_v12 = vpop.f32.mrb[41].mxu1 }
 0x18e   : > { %2787 = vmatprep.subr.bf16.mxu0 %v2991_v16  ;;  %v1151_v30 = vadd.f32 %v1150_v12, %v3490_v21  ;;  %2679 = vmatprep.subr.bf16.mxu1 %v1355_v27  ;;  %v1152_v10 = vpop.f32.mrb[42].mxu1 }
 0x18f   : > { %v1316_v43 = vmax.f32 %v1149_v29, 0.0  ;;  %v1153_v31 = vadd.f32 %v1152_v10, %v3484_v8  ;;  %2680 = vmatpush3.bf16.xpose.msra.mxu1 %v1355_v27  ;;  %v1154_v24 = vpop.f32.mrb[43].mxu1 }
 0x190   : > { %v1317_v25 = vmax.f32 %v1151_v30, 0.0  ;;  %v1155_v33 = vadd.f32 %v1154_v24, %v3490_v21 }
 0x191   : > { %2788 = vmatpush3.bf16.msra.mxu0 %v2991_v16  ;;  %v1319_v34 = vmax.f32 %v1153_v31, 0.0 }
 0x192   : > { %v1320_v35 = vmax.f32 %v1155_v33, 0.0  ;;  %2805 = vmatprep.subr.bf16.mxu0 %v3457_v0 }
 0x193   : > { %v1358_v38 = vpack.c.bf16 %v1319_v34, %v1316_v43 }
 0x194   : > { %2790 = vmatmul.mubr.bf16.vlgmr.msra.gmra.mrb[64].mxu0 %v3426_v37  ;;  %v3533_v42 = vpack.c.bf16 %v1320_v35, %v1317_v25  ;;  %v1158_v45 = vpop.f32.mrb[44].mxu1 }
 0x195   : > { %2793 = vmatprep.mubr.bf16.mxu0 %v3450_v6  ;;  %v1159_v36 = vadd.f32 %v1158_v45, %v3484_v8  ;;  %v1160_v39 = vpop.f32.mrb[45].mxu1  ;;  %2681 = vmatprep.subr.bf16.mxu1 %v1358_v38 }
 0x196   : > { %v1161_v41 = vadd.f32 %v1160_v39, %v3490_v21  ;;  %v1162_v46 = vpop.f32.mrb[46].mxu1 }
 0x197   : > { %v1322_v51 = vmax.f32 %v1159_v36, 0.0  ;;  %v1163_v53 = vadd.f32 %v1162_v46, %v3484_v8  ;;  %2682 = vmatpush3.bf16.xpose.msra.mxu1 %v1358_v38  ;;  %v1164_v7 = vpop.f32.mrb[47].mxu1 }
 0x198   : > { %v1323_v54 = vmax.f32 %v1161_v41, 0.0  ;;  %v1165_v37 = vadd.f32 %v1164_v7, %v3490_v21 }
 0x199   : > { %v1325_v55 = vmax.f32 %v1163_v53, 0.0 }
 0x19a   : > { %v1326_v57 = vmax.f32 %v1165_v37, 0.0  ;;  %2806 = vmatpush3.bf16.xpose.msra.mxu0 %v3457_v0 }
 0x19b   : > { %v1361_v6 = vpack.c.bf16 %v1325_v55, %v1322_v51  ;;  %2807 = vmatprep.subr.bf16.mxu0 %v3454_v20 }
 0x19c   : > { %2794 = vmatmul.mubr.bf16.gmra.mrb[68].mxu0 %v3448_v4  ;;  %v3543_v44 = vpack.c.bf16 %v1326_v57, %v1323_v54  ;;  %v1168_v58 = vpop.f32.mrb[48].mxu1 }
 0x19d   : > { %2797 = vmatprep.mubr.bf16.mxu0 %v3468_v52  ;;  %v1169_v9 = vadd.f32 %v1168_v58, %v3484_v8  ;;  %v1170_v60 = vpop.f32.mrb[49].mxu1  ;;  %2683 = vmatprep.subr.bf16.mxu1 %v1361_v6 }
 0x19e   : > { %v1171_v62 = vadd.f32 %v1170_v60, %v3490_v21  ;;  %v1172_v48 = vpop.f32.mrb[50].mxu1 }
 0x19f   : > { %v1328_v47 = vmax.f32 %v1169_v9, 0.0  ;;  %v1173_v0 = vadd.f32 %v1172_v48, %v3484_v8  ;;  %2684 = vmatpush3.bf16.xpose.msra.mxu1 %v1361_v6  ;;  %v1174_v63 = vpop.f32.mrb[51].mxu1 }
 0x1a0   : > { %v1329_v2 = vmax.f32 %v1171_v62, 0.0  ;;  %v1175_v4 = vadd.f32 %v1174_v63, %v3490_v21 }
 0x1a1   : > { %v1331_v40 = vmax.f32 %v1173_v0, 0.0 }
 0x1a2   : > { %v1332_v3 = vmax.f32 %v1175_v4, 0.0  ;;  %2808 = vmatpush3.bf16.xpose.msra.mxu0 %v3454_v20 }
 0x1a3   : > { %v1364_v52 = vpack.c.bf16 %v1331_v40, %v1328_v47  ;;  %2809 = vmatprep.subr.bf16.mxu0 %v3475_v59 }
 0x1a4   : > { %2798 = vmatmul.mubr.bf16.gmra.mrb[72].mxu0 %v3465_v50  ;;  %v3553_v17 = vpack.c.bf16 %v1332_v3, %v1329_v2  ;;  %v1178_v11 = vpop.f32.mrb[52].mxu1 }
 0x1a5   : > { %2801 = vmatprep.mubr.bf16.mxu0 %v3496_v13  ;;  %v1179_v18 = vadd.f32 %v1178_v11, %v3484_v8  ;;  %v1180_v19 = vpop.f32.mrb[53].mxu1  ;;  %2685 = vmatprep.subr.bf16.mxu1 %v1364_v52 }
 0x1a6   : > { %v1181_v49 = vadd.f32 %v1180_v19, %v3490_v21  ;;  %v1182_v22 = vpop.f32.mrb[54].mxu1 }
 0x1a7   : > { %v1334_v16 = vmax.f32 %v1179_v18, 0.0  ;;  %v1183_v20 = vadd.f32 %v1182_v22, %v3484_v8  ;;  %2686 = vmatpush3.bf16.xpose.msra.mxu1 %v1364_v52  ;;  %v1184_v26 = vpop.f32.mrb[55].mxu1 }
 0x1a8   : > { %v1335_v27 = vmax.f32 %v1181_v49, 0.0  ;;  %v1185_v50 = vadd.f32 %v1184_v26, %v3490_v21 }
 0x1a9   : > { %v1337_v14 = vmax.f32 %v1183_v20, 0.0 }
 0x1aa   : > { %v1338_v29 = vmax.f32 %v1185_v50, 0.0  ;;  %2810 = vmatpush3.bf16.xpose.msra.mxu0 %v3475_v59 }
 0x1ab   : > { %v1367_v13 = vpack.c.bf16 %v1337_v14, %v1334_v16  ;;  %2811 = vmatprep.subr.bf16.mxu0 %v3472_v56 }
 0x1ac   : > { %2802 = vmatmul.mubr.bf16.gmra.mrb[76].mxu0 %v3493_v23  ;;  %v3563_v12 = vpack.c.bf16 %v1338_v29, %v1335_v27  ;;  %v1188_v30 = vpop.f32.mrb[56].mxu1 }
 0x1ad   : > { %v1189_v10 = vadd.f32 %v1188_v30, %v3484_v8  ;;  %v1190_v43 = vpop.f32.mrb[57].mxu1  ;;  %2687 = vmatprep.subr.bf16.mxu1 %v1367_v13 }
 0x1ae   : > { %v1191_v31 = vadd.f32 %v1190_v43, %v3490_v21  ;;  %v1192_v24 = vpop.f32.mrb[58].mxu1 }
 0x1af   : > { %v1340_v25 = vmax.f32 %v1189_v10, 0.0  ;;  %v1193_v33 = vadd.f32 %v1192_v24, %v3484_v8  ;;  %2688 = vmatpush3.bf16.xpose.msra.mxu1 %v1367_v13  ;;  %v1194_v59 = vpop.f32.mrb[59].mxu1 }
 0x1b0   : > { %v1341_v34 = vmax.f32 %v1191_v31, 0.0  ;;  %v1195_v35 = vadd.f32 %v1194_v59, %v3490_v21 }
 0x1b1   : > { %v1343_v38 = vmax.f32 %v1193_v33, 0.0 }
 0x1b2   : > { %v1344_v23 = vmax.f32 %v1195_v35, 0.0  ;;  %2812 = vmatpush3.bf16.xpose.msra.mxu0 %v3472_v56 }
 0x1b3   : > { %v1370_v45 = vpack.c.bf16 %v1343_v38, %v1340_v25  ;;  %2813 = vmatprep.subr.bf16.mxu0 %v3503_v32 }
 0x1b4   : > { %v3571_v36 = vpack.c.bf16 %v1344_v23, %v1341_v34  ;;  %v1198_v39 = vpop.f32.mrb[60].mxu1 }
 0x1b5   : > { %v1199_v41 = vadd.f32 %v1198_v39, %v3484_v8  ;;  %v1200_v46 = vpop.f32.mrb[61].mxu1  ;;  %2689 = vmatprep.subr.bf16.mxu1 %v1370_v45 }
 0x1b6   : > { %v1201_v51 = vadd.f32 %v1200_v46, %v3490_v21  ;;  %v1202_v53 = vpop.f32.mrb[62].mxu1 }
 0x1b7   : > { %v1346_v7 = vmax.f32 %v1199_v41, 0.0  ;;  %v1203_v54 = vadd.f32 %v1202_v53, %v3484_v8  ;;  %2690 = vmatpush3.bf16.xpose.msra.mxu1 %v1370_v45  ;;  %v1204_v37 = vpop.f32.mrb[63].mxu1 }
 0x1b8   : > { %v1347_v55 = vmax.f32 %v1201_v51, 0.0  ;;  %v1205_v56 = vadd.f32 %v1204_v37, %v3490_v21 }
 0x1b9   : > { %v1349_v57 = vmax.f32 %v1203_v54, 0.0 }
 0x1ba   : > { %2814 = vmatpush3.bf16.xpose.msra.mxu0 %v3503_v32  ;;  %v1350_v6 = vmax.f32 %v1205_v56, 0.0 }
 0x1bb   : > { %v1373_v58 = vpack.c.bf16 %v1349_v57, %v1346_v7  ;;  %2815 = vmatprep.subr.bf16.mxu0 %v3500_v15 }
 0x1bc   : > { %v3579_v9 = vpack.c.bf16 %v1350_v6, %v1347_v55 }
 0x1bd   : > { %2691 = vmatprep.subr.bf16.mxu1 %v1373_v58 }
 0x1bf   : > { %2692 = vmatpush3.bf16.xpose.msra.mxu1 %v1373_v58 }
 0x1c0   : > { %2741 = vmatprep.subr.bf16.mxu1 %v3512_v61 }
 0x1c2   : > { %2816 = vmatpush3.bf16.xpose.msra.mxu0 %v3500_v15 }
 0x1c3   : > { %2817 = vmatprep.subr.bf16.mxu0 %v3519_v5 }
 0x1ca   : > { %2818 = vmatpush3.bf16.xpose.msra.mxu0 %v3519_v5 }
 0x1cb   : > { %2819 = vmatprep.subr.bf16.mxu0 %v3516_v1 }
 0x1d2   : > { %2820 = vmatpush3.bf16.xpose.msra.mxu0 %v3516_v1 }
 0x21f   : > { %v2663_v8 = vpop.f32.mrb[32].mxu0 }
 0x220   : > { %v1474_v21 = vpop.f32.mrb[33].mxu0 }
 0x221   : > { %v2664_v32 = vpop.f32.mrb[34].mxu0 }
 0x222   : > { %v1538_v60 = vpack.c.bf16 %v2664_v32, %v2663_v8  ;;  %v1477_v62 = vpop.f32.mrb[35].mxu0 }
 0x223   : > { %v1537_v48 = vpack.c.bf16 %v1477_v62, %v1474_v21 }
 0x225   : > { %2693 = vmatprep.mubr.bf16.mxu1 %v1537_v48 }
 0x226   : > { %2694 = vmatmul.mubr.bf16.vlgmr.msra.gmra.mrb[64].mxu1 %v1538_v60 }
 0x227   : > { %2742 = vmatpush3.bf16.xpose.msra.mxu1 %v3512_v61 }
 0x228   : > { %2743 = vmatprep.subr.bf16.mxu1 %v3524_v28 }
 0x22f   : > { %2744 = vmatpush3.bf16.xpose.msra.mxu1 %v3524_v28  ;;  %v2667_v15 = vpop.f32.mrb[36].mxu0 }
 0x230   : > { %2745 = vmatprep.subr.bf16.mxu1 %v3533_v42  ;;  %v1490_v5 = vpop.f32.mrb[37].mxu0 }
 0x231   : > { %v2668_v47 = vpop.f32.mrb[38].mxu0 }
 0x232   : > { %v1540_v1 = vpack.c.bf16 %v2668_v47, %v2667_v15  ;;  %v1493_v0 = vpop.f32.mrb[39].mxu0 }
 0x233   : > { %v1539_v63 = vpack.c.bf16 %v1493_v0, %v1490_v5 }
 0x235   : > { %2697 = vmatprep.mubr.bf16.mxu1 %v1539_v63 }
 0x236   : > { %2698 = vmatmul.mubr.bf16.gmra.mrb[68].mxu1 %v1540_v1 }
 0x237   : > { %2746 = vmatpush3.bf16.xpose.msra.mxu1 %v3533_v42  ;;  %v2671_v2 = vpop.f32.mrb[40].mxu0 }
 0x238   : > { %2747 = vmatprep.subr.bf16.mxu1 %v3543_v44  ;;  %v1506_v61 = vpop.f32.mrb[41].mxu0 }
 0x239   : > { %v2672_v4 = vpop.f32.mrb[42].mxu0 }
 0x23a   : > { %v1542_v40 = vpack.c.bf16 %v2672_v4, %v2671_v2  ;;  %v1509_v3 = vpop.f32.mrb[43].mxu0 }
 0x23b   : > { %v1541_v28 = vpack.c.bf16 %v1509_v3, %v1506_v61 }
 0x23d   : > { %2701 = vmatprep.mubr.bf16.mxu1 %v1541_v28 }
 0x23e   : > { %2702 = vmatmul.mubr.bf16.gmra.mrb[72].mxu1 %v1542_v40 }
 0x23f   : > { %2748 = vmatpush3.bf16.xpose.msra.mxu1 %v3543_v44  ;;  %v2675_v52 = vpop.f32.mrb[44].mxu0 }
 0x240   : > { %2749 = vmatprep.subr.bf16.mxu1 %v3553_v17  ;;  %v1522_v11 = vpop.f32.mrb[45].mxu0 }
 0x241   : > { %v2676_v18 = vpop.f32.mrb[46].mxu0 }
 0x242   : > { %v1544_v19 = vpack.c.bf16 %v2676_v18, %v2675_v52  ;;  %v1525_v49 = vpop.f32.mrb[47].mxu0 }
 0x243   : > { %v1543_v42 = vpack.c.bf16 %v1525_v49, %v1522_v11 }
 0x245   : > { %2705 = vmatprep.mubr.bf16.mxu1 %v1543_v42 }
 0x246   : > { %2706 = vmatmul.mubr.bf16.gmra.mrb[76].mxu1 %v1544_v19 }
 0x247   : > { %2750 = vmatpush3.bf16.xpose.msra.mxu1 %v3553_v17  ;;  %v2727_v22 = vpop.f32.mrb[48].mxu0 }
 0x248   : > { %2751 = vmatprep.subr.bf16.mxu1 %v3563_v12  ;;  %v1757_v16 = vpop.f32.mrb[49].mxu0 }
 0x249   : > { %v2728_v20 = vpop.f32.mrb[50].mxu0 }
 0x24a   : > { %v1821_v26 = vpack.c.bf16 %v2728_v20, %v2727_v22  ;;  %v1760_v27 = vpop.f32.mrb[51].mxu0 }
 0x24b   : > { %v1820_v44 = vpack.c.bf16 %v1760_v27, %v1757_v16 }
 0x24d   : > { %2757 = vmatprep.mubr.bf16.mxu1 %v1820_v44 }
 0x24f   : > { %2752 = vmatpush3.bf16.xpose.msra.mxu1 %v3563_v12  ;;  %v2731_v50 = vpop.f32.mrb[52].mxu0 }
 0x250   : > { %2753 = vmatprep.subr.bf16.mxu1 %v3571_v36  ;;  %v1773_v14 = vpop.f32.mrb[53].mxu0 }
 0x251   : > { %v2732_v29 = vpop.f32.mrb[54].mxu0 }
 0x252   : > { %v1823_v13 = vpack.c.bf16 %v2732_v29, %v2731_v50  ;;  %v1776_v30 = vpop.f32.mrb[55].mxu0 }
 0x253   : > { %v1822_v10 = vpack.c.bf16 %v1776_v30, %v1773_v14 }
 0x257   : > { %2754 = vmatpush3.bf16.xpose.msra.mxu1 %v3571_v36  ;;  %v2735_v17 = vpop.f32.mrb[56].mxu0 }
 0x258   : > { %2755 = vmatprep.subr.bf16.mxu1 %v3579_v9  ;;  %v1789_v43 = vpop.f32.mrb[57].mxu0 }
 0x259   : > { %v2736_v31 = vpop.f32.mrb[58].mxu0 }
 0x25a   : > { %v1825_v24 = vpack.c.bf16 %v2736_v31, %v2735_v17  ;;  %v1792_v25 = vpop.f32.mrb[59].mxu0 }
 0x25b   : > { %v1824_v33 = vpack.c.bf16 %v1792_v25, %v1789_v43 }
 0x25f   : > { %2756 = vmatpush3.bf16.xpose.msra.mxu1 %v3579_v9  ;;  %v2739_v12 = vpop.f32.mrb[60].mxu0 }
 0x260   : > { %v1805_v59 = vpop.f32.mrb[61].mxu0 }
 0x261   : > { %v2740_v34 = vpop.f32.mrb[62].mxu0 }
 0x262   : > { %v1827_v35 = vpack.c.bf16 %v2740_v34, %v2739_v12  ;;  %v1808_v38 = vpop.f32.mrb[63].mxu0 }
 0x263   : > { %v1826_v23 = vpack.c.bf16 %v1808_v38, %v1805_v59 }
 0x266   : > { %2758 = vmatmul.mubr.bf16.vlgmr.msra.gmra.mrb[80].mxu1 %v1821_v26 }
 0x267   : > { %2761 = vmatprep.mubr.bf16.mxu1 %v1822_v10  ;;  %v2791_v45 = vpop.f32.mrb[64].mxu0 }
 0x268   : > { %v2041_v36 = vpop.f32.mrb[65].mxu0 }
 0x269   : > { %v2792_v39 = vpop.f32.mrb[66].mxu0 }
 0x26a   : > { %v2105_v41 = vpack.c.bf16 %v2792_v39, %v2791_v45  ;;  %v2044_v46 = vpop.f32.mrb[67].mxu0 }
 0x26b   : > { %v2104_v51 = vpack.c.bf16 %v2044_v46, %v2041_v36 }
 0x26d   : > { %2821 = vmatprep.mubr.bf16.mxu0 %v2104_v51 }
 0x26e   : > { %2762 = vmatmul.mubr.bf16.gmra.mrb[84].mxu1 %v1823_v13  ;;  %2822 = vmatmul.mubr.bf16.vlgmr.msra.gmra.mrb[80].mxu0 %v2105_v41 }
 0x26f   : > { %2765 = vmatprep.mubr.bf16.mxu1 %v1824_v33  ;;  %v2795_v53 = vpop.f32.mrb[68].mxu0 }
 0x270   : > { %v2057_v7 = vpop.f32.mrb[69].mxu0 }
 0x271   : > { %v2796_v54 = vpop.f32.mrb[70].mxu0 }
 0x272   : > { %v2107_v37 = vpack.c.bf16 %v2796_v54, %v2795_v53  ;;  %v2060_v55 = vpop.f32.mrb[71].mxu0 }
 0x273   : > { %v2106_v56 = vpack.c.bf16 %v2060_v55, %v2057_v7 }
 0x275   : > { %2825 = vmatprep.mubr.bf16.mxu0 %v2106_v56 }
 0x276   : > { %2766 = vmatmul.mubr.bf16.gmra.mrb[88].mxu1 %v1825_v24  ;;  %2826 = vmatmul.mubr.bf16.gmra.mrb[84].mxu0 %v2107_v37 }
 0x277   : > { %2769 = vmatprep.mubr.bf16.mxu1 %v1826_v23  ;;  %v2799_v57 = vpop.f32.mrb[72].mxu0 }
 0x278   : > { %v2073_v6 = vpop.f32.mrb[73].mxu0 }
 0x279   : > { %v2800_v58 = vpop.f32.mrb[74].mxu0 }
 0x27a   : > { %v2109_v9 = vpack.c.bf16 %v2800_v58, %v2799_v57  ;;  %v2076_v8 = vpop.f32.mrb[75].mxu0 }
 0x27b   : > { %v2108_v21 = vpack.c.bf16 %v2076_v8, %v2073_v6 }
 0x27d   : > { %2829 = vmatprep.mubr.bf16.mxu0 %v2108_v21 }
 0x27e   : > { %2770 = vmatmul.mubr.bf16.gmra.mrb[92].mxu1 %v1827_v35  ;;  %2830 = vmatmul.mubr.bf16.gmra.mrb[88].mxu0 %v2109_v9 }
 0x27f   : > { %v2803_v32 = vpop.f32.mrb[76].mxu0 }
 0x280   : > { %v2089_v60 = vpop.f32.mrb[77].mxu0 }
 0x281   : > { %v2804_v62 = vpop.f32.mrb[78].mxu0 }
 0x282   : > { %v2111_v48 = vpack.c.bf16 %v2804_v62, %v2803_v32  ;;  %v2092_v15 = vpop.f32.mrb[79].mxu0 }
 0x283   : > { %v2110_v5 = vpack.c.bf16 %v2092_v15, %v2089_v60 }
 0x285   : > { %2833 = vmatprep.mubr.bf16.mxu0 %v2110_v5 }
 0x286   : > { %2834 = vmatmul.mubr.bf16.gmra.mrb[92].mxu0 %v2111_v48 }
 0x2f9   : > { %v2695_v47 = vpop.f32.mrb[64].mxu1 }
 0x2fa   : > { %1644 = vst [vmem:[%s3606_s30 + $0x10] sm:$0xff] %v2695_v47  ;;  %v1579_v1 = vpop.f32.mrb[65].mxu1 }
 0x2fb   : > { %1642 = vst [vmem:[%s3606_s30] sm:$0xff] %v1579_v1  ;;  %v2696_v0 = vpop.f32.mrb[66].mxu1 }
 0x2fc   : > { %1645 = vst [vmem:[%s3606_s30 + $0x18] sm:$0xff] %v2696_v0  ;;  %v1582_v63 = vpop.f32.mrb[67].mxu1 }
 0x2fd   : > { %1643 = vst [vmem:[%s3606_s30 + $0x8] sm:$0xff] %v1582_v63 }
 0x309   : > { %v2699_v2 = vpop.f32.mrb[68].mxu1 }
 0x30a   : > { %1648 = vst [vmem:[%s3606_s30 + $0x30] sm:$0xff] %v2699_v2  ;;  %v1595_v61 = vpop.f32.mrb[69].mxu1 }
 0x30b   : > { %1646 = vst [vmem:[%s3606_s30 + $0x20] sm:$0xff] %v1595_v61  ;;  %v2700_v4 = vpop.f32.mrb[70].mxu1 }
 0x30c   : > { %1649 = vst [vmem:[%s3606_s30 + $0x38] sm:$0xff] %v2700_v4  ;;  %v1598_v40 = vpop.f32.mrb[71].mxu1 }
 0x30d   : > { %1647 = vst [vmem:[%s3606_s30 + $0x28] sm:$0xff] %v1598_v40 }
 0x311   : > { %v2703_v3 = vpop.f32.mrb[72].mxu1 }
 0x312   : > { %1652 = vst [vmem:[%s3606_s30 + $0x50] sm:$0xff] %v2703_v3  ;;  %v1611_v28 = vpop.f32.mrb[73].mxu1 }
 0x313   : > { %1650 = vst [vmem:[%s3606_s30 + $0x40] sm:$0xff] %v1611_v28  ;;  %v2704_v52 = vpop.f32.mrb[74].mxu1 }
 0x314   : > { %1653 = vst [vmem:[%s3606_s30 + $0x58] sm:$0xff] %v2704_v52  ;;  %v1614_v11 = vpop.f32.mrb[75].mxu1 }
 0x315   : > { %1651 = vst [vmem:[%s3606_s30 + $0x48] sm:$0xff] %v1614_v11 }
 0x319   : > { %v2707_v18 = vpop.f32.mrb[76].mxu1 }
 0x31a   : > { %1656 = vst [vmem:[%s3606_s30 + $0x70] sm:$0xff] %v2707_v18  ;;  %v1627_v19 = vpop.f32.mrb[77].mxu1 }
 0x31b   : > { %1654 = vst [vmem:[%s3606_s30 + $0x60] sm:$0xff] %v1627_v19  ;;  %v2708_v49 = vpop.f32.mrb[78].mxu1 }
 0x31c   : > { %1657 = vst [vmem:[%s3606_s30 + $0x78] sm:$0xff] %v2708_v49  ;;  %v1630_v42 = vpop.f32.mrb[79].mxu1 }
 0x31d   : > { %1655 = vst [vmem:[%s3606_s30 + $0x68] sm:$0xff] %v1630_v42 }
 0x339   : > { %v2759_v22 = vpop.f32.mrb[80].mxu1 }
 0x33a   : > { %2411 = vst [vmem:[%s3606_s30 + $0x90] sm:$0xff] %v2759_v22  ;;  %v1862_v16 = vpop.f32.mrb[81].mxu1 }
 0x33b   : > { %2409 = vst [vmem:[%s3606_s30 + $0x80] sm:$0xff] %v1862_v16  ;;  %v2760_v20 = vpop.f32.mrb[82].mxu1 }
 0x33c   : > { %2412 = vst [vmem:[%s3606_s30 + $0x98] sm:$0xff] %v2760_v20  ;;  %v1865_v26 = vpop.f32.mrb[83].mxu1 }
 0x33d   : > { %2410 = vst [vmem:[%s3606_s30 + $0x88] sm:$0xff] %v1865_v26 }
 0x341   : > { %v2763_v27 = vpop.f32.mrb[84].mxu1  ;;  %v2823_v44 = vpop.f32.mrb[80].mxu0 }
 0x342   : > { %2415 = vst [vmem:[%s3606_s30 + $0xb0] sm:$0xff] %v2763_v27  ;;  %v1878_v50 = vpop.f32.mrb[85].mxu1  ;;  %2435 = vst [vmem:[%s3606_s30 + $0x110] sm:$0xff] %v2823_v44  ;;  %v2146_v14 = vpop.f32.mrb[81].mxu0 }
 0x343   : > { %2413 = vst [vmem:[%s3606_s30 + $0xa0] sm:$0xff] %v1878_v50  ;;  %v2764_v29 = vpop.f32.mrb[86].mxu1  ;;  %2433 = vst [vmem:[%s3606_s30 + $0x100] sm:$0xff] %v2146_v14  ;;  %v2824_v13 = vpop.f32.mrb[82].mxu0 }
 0x344   : > { %2416 = vst [vmem:[%s3606_s30 + $0xb8] sm:$0xff] %v2764_v29  ;;  %v1881_v30 = vpop.f32.mrb[87].mxu1  ;;  %2436 = vst [vmem:[%s3606_s30 + $0x118] sm:$0xff] %v2824_v13  ;;  %v2149_v10 = vpop.f32.mrb[83].mxu0 }
 0x345   : > { %2414 = vst [vmem:[%s3606_s30 + $0xa8] sm:$0xff] %v1881_v30  ;;  %2434 = vst [vmem:[%s3606_s30 + $0x108] sm:$0xff] %v2149_v10 }
 0x349   : > { %v2767_v17 = vpop.f32.mrb[88].mxu1  ;;  %v2827_v43 = vpop.f32.mrb[84].mxu0 }
 0x34a   : > { %2419 = vst [vmem:[%s3606_s30 + $0xd0] sm:$0xff] %v2767_v17  ;;  %v1894_v31 = vpop.f32.mrb[89].mxu1  ;;  %2439 = vst [vmem:[%s3606_s30 + $0x130] sm:$0xff] %v2827_v43  ;;  %v2162_v24 = vpop.f32.mrb[85].mxu0 }
 0x34b   : > { %2417 = vst [vmem:[%s3606_s30 + $0xc0] sm:$0xff] %v1894_v31  ;;  %v2768_v25 = vpop.f32.mrb[90].mxu1  ;;  %2437 = vst [vmem:[%s3606_s30 + $0x120] sm:$0xff] %v2162_v24  ;;  %v2828_v33 = vpop.f32.mrb[86].mxu0 }
 0x34c   : > { %2420 = vst [vmem:[%s3606_s30 + $0xd8] sm:$0xff] %v2768_v25  ;;  %v1897_v12 = vpop.f32.mrb[91].mxu1  ;;  %2440 = vst [vmem:[%s3606_s30 + $0x138] sm:$0xff] %v2828_v33  ;;  %v2165_v59 = vpop.f32.mrb[87].mxu0 }
 0x34d   : > { %2418 = vst [vmem:[%s3606_s30 + $0xc8] sm:$0xff] %v1897_v12  ;;  %2438 = vst [vmem:[%s3606_s30 + $0x128] sm:$0xff] %v2165_v59 }
 0x351   : > { %v2771_v34 = vpop.f32.mrb[92].mxu1  ;;  %v2831_v35 = vpop.f32.mrb[88].mxu0 }
 0x352   : > { %2423 = vst [vmem:[%s3606_s30 + $0xf0] sm:$0xff] %v2771_v34  ;;  %v1910_v38 = vpop.f32.mrb[93].mxu1  ;;  %2443 = vst [vmem:[%s3606_s30 + $0x150] sm:$0xff] %v2831_v35  ;;  %v2178_v23 = vpop.f32.mrb[89].mxu0 }
 0x353   : > { %2421 = vst [vmem:[%s3606_s30 + $0xe0] sm:$0xff] %v1910_v38  ;;  %v2772_v45 = vpop.f32.mrb[94].mxu1  ;;  %2441 = vst [vmem:[%s3606_s30 + $0x140] sm:$0xff] %v2178_v23  ;;  %v2832_v36 = vpop.f32.mrb[90].mxu0 }
 0x354   : > { %2424 = vst [vmem:[%s3606_s30 + $0xf8] sm:$0xff] %v2772_v45  ;;  %v1913_v39 = vpop.f32.mrb[95].mxu1  ;;  %2444 = vst [vmem:[%s3606_s30 + $0x158] sm:$0xff] %v2832_v36  ;;  %v2181_v41 = vpop.f32.mrb[91].mxu0 }
 0x355   : > { %2422 = vst [vmem:[%s3606_s30 + $0xe8] sm:$0xff] %v1913_v39  ;;  %2442 = vst [vmem:[%s3606_s30 + $0x148] sm:$0xff] %v2181_v41 }
 0x359   : > { %v2835_v46 = vpop.f32.mrb[92].mxu0 }
 0x35a   : > { %2447 = vst [vmem:[%s3606_s30 + $0x170] sm:$0xff] %v2835_v46  ;;  %v2194_v51 = vpop.f32.mrb[93].mxu0 }
 0x35b   : > { %2445 = vst [vmem:[%s3606_s30 + $0x160] sm:$0xff] %v2194_v51  ;;  %v2836_v53 = vpop.f32.mrb[94].mxu0 }
 0x35c   : > { %2448 = vst [vmem:[%s3606_s30 + $0x178] sm:$0xff] %v2836_v53  ;;  %v2197_v7 = vpop.f32.mrb[95].mxu0 }
 0x35d   : > { %2446 = vst [vmem:[%s3606_s30 + $0x168] sm:$0xff] %v2197_v7 }
 0x35e PF: > { %s19_s24 = sadd.s32 1, %s3062_s24  }
 0x35f   : > { %p16_p9 = scmp.ge.s32.totalorder %s19_s24, 4  }
 0x361   :  { %18 = sbr.rel (!%p16_p9) target bundleno = 2 (0x2), region = 94 }
 0x368   :  { %2247 = vsyncpa [#allocation3], 1 }
 0x369   :  { %2249 = vsyncpa [#allocation3 + $0x1], 1 }
 0x36a   :  { %2250 = vsyncpa [#allocation5], 1 }

// kernel: _forward_core.3
= control target key start
LH: loop header
LB: loop body
LE: loop exit
PB: predicated region body
PF: predicated region fallthrough
CT: control target
= control target key end

     0   :  { %s6039_s2 = inlined_call_operand.vmem [shape: bf16[128,128], index: 2, kind: input, shape index: {}]   ;;  %s6040_s0 = inlined_call_operand.vmem [shape: bf16[2,128,128], index: 0, kind: input, shape index: {}]   ;;  %s6041_s4 = inlined_call_operand.vmem [shape: bf16[128,128], index: 4, kind: input, shape index: {}]   ;;  %s6042_s1 = inlined_call_operand.vmem [shape: bf16[2,128,128], index: 1, kind: input, shape index: {}]   ;;  %s6043_s6 = inlined_call_operand.vmem [shape: bf16[1,128,512], index: 6, kind: input, shape index: {}]   ;;  %s6044_s3 = inlined_call_operand.vmem [shape: f32[1,128], index: 3, kind: input, shape index: {}]   ;;  %s6045_s5 = inlined_call_operand.vmem [shape: f32[1,128], index: 5, kind: input, shape index: {}]   ;;  %s6046_s7 = inlined_call_operand.vmem [shape: bf16[2,4,128,128], index: 7, kind: output, shape index: {}]  }
   0x1   :  { %v4720_v0 = vld [vmem:[%s6039_s2] sm:$0xff]   ;;  %v4721_v1 = vld [vmem:[%s6039_s2 + $0x8] sm:$0xff]   ;;  %v4722_v2 = vld [vmem:[%s6039_s2 + $0x10] sm:$0xff]  }
   0x2   :  { %4335 = vmatprep.subr.bf16.mxu0 %v4720_v0  ;;  %v4723_v3 = vld [vmem:[%s6039_s2 + $0x18] sm:$0xff]   ;;  %v4728_v4 = vld [vmem:[%s6040_s0] sm:$0xff]   ;;  %v4725_v6 = vld [vmem:[%s6039_s2 + $0x28] sm:$0xff]  }
   0x3   :  { %4336 = vmatpush3.bf16.msra.mxu0 %v4720_v0  ;;  %4351 = vmatprep.mubr.bf16.mxu0 %v4728_v4  ;;  %v4724_v5 = vld [vmem:[%s6039_s2 + $0x20] sm:$0xff]   ;;  %v4737_v8 = vld [vmem:[%s6041_s4 + $0x8] sm:$0xff]   ;;  %v4726_v9 = vld [vmem:[%s6039_s2 + $0x30] sm:$0xff]  }
   0x4   :  { %4337 = vmatprep.subr.bf16.mxu0 %v4721_v1  ;;  %v4736_v7 = vld [vmem:[%s6041_s4] sm:$0xff]   ;;  %v4738_v10 = vld [vmem:[%s6041_s4 + $0x10] sm:$0xff]   ;;  %v4727_v11 = vld [vmem:[%s6039_s2 + $0x38] sm:$0xff]  }
   0x5   :  { %4367 = vmatprep.subr.bf16.mxu1 %v4736_v7  ;;  %v4739_v12 = vld [vmem:[%s6041_s4 + $0x18] sm:$0xff]   ;;  %v4744_v13 = vld [vmem:[%s6042_s1] sm:$0xff]   ;;  %v4729_v15 = vld [vmem:[%s6040_s0 + $0x8] sm:$0xff]  }
   0x6   :  { %4368 = vmatpush3.bf16.msra.mxu1 %v4736_v7  ;;  %4383 = vmatprep.mubr.bf16.mxu1 %v4744_v13  ;;  %v4740_v14 = vld [vmem:[%s6041_s4 + $0x20] sm:$0xff]   ;;  %v4730_v16 = vld [vmem:[%s6040_s0 + $0x10] sm:$0xff]   ;;  %v4741_v17 = vld [vmem:[%s6041_s4 + $0x28] sm:$0xff]  }
   0x7   :  { %4338 = vmatpush3.bf16.msra.mxu0 %v4721_v1  ;;  %4369 = vmatprep.subr.bf16.mxu1 %v4737_v8  ;;  %v4752_v18 = vld [vmem:[%s6039_s2] sm:$0xff]   ;;  %v4754_v19 = vld [vmem:[%s6039_s2 + $0x8] sm:$0xff]   ;;  %v4742_v20 = vld [vmem:[%s6041_s4 + $0x30] sm:$0xff]  }
   0x8   :  { %4339 = vmatprep.subr.bf16.mxu0 %v4722_v2  ;;  %v4756_v21 = vld [vmem:[%s6039_s2 + $0x10] sm:$0xff]   ;;  %v4731_v22 = vld [vmem:[%s6040_s0 + $0x18] sm:$0xff]   ;;  %v4732_v23 = vld [vmem:[%s6040_s0 + $0x20] sm:$0xff]  }
   0x9   :  { %v4743_v24 = vld [vmem:[%s6041_s4 + $0x38] sm:$0xff]   ;;  %v4733_v26 = vld [vmem:[%s6040_s0 + $0x28] sm:$0xff]   ;;  %v4753_v27 = vld [vmem:[%s6041_s4] sm:$0xff]  }
   0xa   :  { %4370 = vmatpush3.bf16.msra.mxu1 %v4737_v8  ;;  %v4758_v25 = vld [vmem:[%s6039_s2 + $0x18] sm:$0xff]   ;;  %v4734_v28 = vld [vmem:[%s6040_s0 + $0x30] sm:$0xff]   ;;  %v4760_v29 = vld [vmem:[%s6039_s2 + $0x20] sm:$0xff]  }
   0xb   :  { %4340 = vmatpush3.bf16.msra.mxu0 %v4722_v2  ;;  %4371 = vmatprep.subr.bf16.mxu1 %v4738_v10  ;;  %v4745_v30 = vld [vmem:[%s6042_s1 + $0x8] sm:$0xff]   ;;  %v4746_v31 = vld [vmem:[%s6042_s1 + $0x10] sm:$0xff]   ;;  %v4735_v34 = vld [vmem:[%s6040_s0 + $0x38] sm:$0xff]  }
   0xc   :  { %4341 = vmatprep.subr.bf16.mxu0 %v4723_v3  ;;  %v4755_v32 = vld [vmem:[%s6041_s4 + $0x8] sm:$0xff]   ;;  %v4757_v35 = vld [vmem:[%s6041_s4 + $0x10] sm:$0xff]   ;;  %v4747_v37 = vld [vmem:[%s6042_s1 + $0x18] sm:$0xff]  }
   0xd   :  { %v4762_v33 = vld [vmem:[%s6039_s2 + $0x28] sm:$0xff]   ;;  %v4764_v36 = vld [vmem:[%s6039_s2 + $0x30] sm:$0xff]   ;;  %v4748_v38 = vld [vmem:[%s6042_s1 + $0x20] sm:$0xff]  }
   0xe   :  { %4372 = vmatpush3.bf16.msra.mxu1 %v4738_v10  ;;  %v4767_v39 = vld [vmem:[%s6040_s0 + $0x40] sm:$0xff]   ;;  %v4759_v40 = vld [vmem:[%s6041_s4 + $0x18] sm:$0xff]   ;;  %v4749_v44 = vld [vmem:[%s6042_s1 + $0x28] sm:$0xff]  }
   0xf   :  { %4342 = vmatpush3.bf16.msra.mxu0 %v4723_v3  ;;  %4373 = vmatprep.subr.bf16.mxu1 %v4739_v12  ;;  %v4766_v41 = vld [vmem:[%s6039_s2 + $0x38] sm:$0xff]   ;;  %v4761_v42 = vld [vmem:[%s6041_s4 + $0x20] sm:$0xff]   ;;  %v4750_v45 = vld [vmem:[%s6042_s1 + $0x30] sm:$0xff]  }
  0x10   :  { %4343 = vmatprep.subr.bf16.mxu0 %v4724_v5  ;;  %v4774_v43 = vld [vmem:[%s6043_s6 + $0x4] ss:$16 sps:$4 sm:$0xff]   ;;  %v4763_v46 = vld [vmem:[%s6041_s4 + $0x28] sm:$0xff]   ;;  %v4772_v48 = vld [vmem:[%s6043_s6] ss:$16 sps:$4 sm:$0xff]  }
  0x11   :  { %v4769_v47 = vld [vmem:[%s6040_s0 + $0x48] sm:$0xff]   ;;  %v4778_v49 = vld [vmem:[%s6040_s0 + $0x50] sm:$0xff]   ;;  %v4751_v54 = vld [vmem:[%s6042_s1 + $0x38] sm:$0xff]  }
  0x12   :  { %4374 = vmatpush3.bf16.msra.mxu1 %v4739_v12  ;;  %v4781_v50 = vld [vmem:[%s6043_s6 + $0x24] ss:$16 sps:$4 sm:$0xff]   ;;  %v4779_v52 = vld [vmem:[%s6043_s6 + $0x20] ss:$16 sps:$4 sm:$0xff]   ;;  %v4768_v55 = vld [vmem:[%s6041_s4 + $0x38] sm:$0xff]  }
  0x13   :  { %4344 = vmatpush3.bf16.msra.mxu0 %v4724_v5  ;;  %4375 = vmatprep.subr.bf16.mxu1 %v4740_v14  ;;  %v4765_v51 = vld [vmem:[%s6041_s4 + $0x30] sm:$0xff]   ;;  %v4770_v56 = vld [vmem:[%s6042_s1 + $0x40] sm:$0xff]   ;;  %v4785_v57 = vld [vmem:[%s6040_s0 + $0x58] sm:$0xff]  }
  0x14   :  { %4345 = vmatprep.subr.bf16.mxu0 %v4725_v6  ;;  %v4790_v53 = vld [vmem:[%s6043_s6 + $0x44] ss:$16 sps:$4 sm:$0xff]   ;;  %v4788_v58 = vld [vmem:[%s6043_s6 + $0x40] ss:$16 sps:$4 sm:$0xff]   ;;  %v4777_v61 = vld [vmem:[%s6043_s6 + $0xc] ss:$16 sps:$4 sm:$0xff]  }
  0x15   :  { %v4794_v59 = vld [vmem:[%s6040_s0 + $0x60] sm:$0xff]   ;;  %v4771_v63 = vld [vmem:[%s6042_s1 + $0x48] sm:$0xff]   ;;  %v4786_v3 = vld [vmem:[%s6042_s1 + $0x50] sm:$0xff]  }
  0x16   :  { %4376 = vmatpush3.bf16.msra.mxu1 %v4740_v14  ;;  %v4797_v60 = vld [vmem:[%s6043_s6 + $0x64] ss:$16 sps:$4 sm:$0xff]   ;;  %v4795_v62 = vld [vmem:[%s6043_s6 + $0x60] ss:$16 sps:$4 sm:$0xff]   ;;  %v4801_v0 = vld [vmem:[%s6040_s0 + $0x68] sm:$0xff]  }
  0x17   :  { %4346 = vmatpush3.bf16.msra.mxu0 %v4725_v6  ;;  %4377 = vmatprep.subr.bf16.mxu1 %v4741_v17  ;;  %v4806_v1 = vld [vmem:[%s6043_s6 + $0x84] ss:$16 sps:$4 sm:$0xff]   ;;  %v4775_v2 = vld [vmem:[%s6043_s6 + $0x8] ss:$16 sps:$4 sm:$0xff]   ;;  %v4784_v4 = vld [vmem:[%s6043_s6 + $0x2c] ss:$16 sps:$4 sm:$0xff]  }
  0x18   :  { %4347 = vmatprep.subr.bf16.mxu0 %v4726_v9  ;;  %v4804_v5 = vld [vmem:[%s6043_s6 + $0x80] ss:$16 sps:$4 sm:$0xff]   ;;  %v4813_v7 = vld [vmem:[%s6043_s6 + $0xa4] ss:$16 sps:$4 sm:$0xff]   ;;  %v5107_v8 = vld [vmem:[%s6043_s6 + $0x28] ss:$16 sps:$4 sm:$0xff]  }
  0x19   :  { %v4810_v6 = vld [vmem:[%s6040_s0 + $0x70] sm:$0xff]   ;;  %v4817_v12 = vld [vmem:[%s6040_s0 + $0x78] sm:$0xff]   ;;  %v4802_v14 = vld [vmem:[%s6042_s1 + $0x60] sm:$0xff]  }
  0x1a   :  { %4378 = vmatpush3.bf16.msra.mxu1 %v4741_v17  ;;  %v4811_v10 = vld [vmem:[%s6043_s6 + $0xa0] ss:$16 sps:$4 sm:$0xff]   ;;  %v5127_v13 = vld [vmem:[%s6043_s6 + $0x48] ss:$16 sps:$4 sm:$0xff]   ;;  %v5148_v17 = vld [vmem:[%s6043_s6 + $0x8c] ss:$16 sps:$4 sm:$0xff]  }
  0x1b   :  { %4348 = vmatpush3.bf16.msra.mxu0 %v4726_v9  ;;  %4379 = vmatprep.subr.bf16.mxu1 %v4742_v20  ;;  %v5112_v9 = vld [vmem:[%s6043_s6 + $0x4c] ss:$16 sps:$4 sm:$0xff]  }
  0x1c   :  { %4349 = vmatprep.subr.bf16.mxu0 %v4727_v11 }
  0x1e   :  { %4380 = vmatpush3.bf16.msra.mxu1 %v4742_v20  ;;  %v5163_v20 = vld [vmem:[%s6043_s6 + $0xac] ss:$16 sps:$4 sm:$0xff]  }
  0x1f   :  { %4350 = vmatpush3.bf16.msra.mxu0 %v4727_v11  ;;  %4381 = vmatprep.subr.bf16.mxu1 %v4743_v24  ;;  %v4787_v11 = vld [vmem:[%s6042_s1 + $0x58] sm:$0xff]  }
  0x20   :  { %4399 = vmatprep.subr.bf16.mxu0 %v4752_v18 }
  0x22   :  { %4352 = vmatmul.mubr.bf16.vlgmr.msra.gmra.mrb[0].mxu0 %v4729_v15  ;;  %4382 = vmatpush3.bf16.msra.mxu1 %v4743_v24  ;;  %v5136_v15 = vld [vmem:[%s6043_s6 + $0x6c] ss:$16 sps:$4 sm:$0xff]   ;;  %v5182_v24 = vld [vmem:[%s6043_s6 + $0xc4] ss:$16 sps:$4 sm:$0xff]  }
  0x23   :  { %4355 = vmatprep.mubr.bf16.mxu0 %v4730_v16  ;;  %4400 = vmatpush3.bf16.msra.mxu0 %v4752_v18  ;;  %v5142_v16 = vld [vmem:[%s6043_s6 + $0x68] ss:$16 sps:$4 sm:$0xff]  }
  0x24   :  { %4401 = vmatprep.subr.bf16.mxu0 %v4754_v19  ;;  %4431 = vmatprep.subr.bf16.mxu1 %v4753_v27  ;;  %v4803_v18 = vld [vmem:[%s6042_s1 + $0x68] sm:$0xff]  }
  0x25   :  { %4384 = vmatmul.mubr.bf16.vlgmr.msra.gmra.mrb[0].mxu1 %v4745_v30  ;;  %v5216_v30 = vld [vmem:[%s6043_s6 + $0xe0] ss:$16 sps:$4 sm:$0xff]  }
  0x26   :  { %4387 = vmatprep.mubr.bf16.mxu1 %v4746_v31  ;;  %4432 = vmatpush3.bf16.msra.mxu1 %v4753_v27  ;;  %v5197_v27 = vld [vmem:[%s6043_s6 + $0xcc] ss:$16 sps:$4 sm:$0xff]   ;;  %v5221_v31 = vld [vmem:[%s6043_s6 + $0xe8] ss:$16 sps:$4 sm:$0xff]  }
  0x27   :  { %4402 = vmatpush3.bf16.msra.mxu0 %v4754_v19  ;;  %4433 = vmatprep.subr.bf16.mxu1 %v4755_v32  ;;  %v5157_v19 = vld [vmem:[%s6043_s6 + $0x88] ss:$16 sps:$4 sm:$0xff]  }
  0x28   :  { %4403 = vmatprep.subr.bf16.mxu0 %v4756_v21 }
  0x2a   :  { %4356 = vmatmul.mubr.bf16.gmra.mrb[4].mxu0 %v4731_v22  ;;  %4434 = vmatpush3.bf16.msra.mxu1 %v4755_v32  ;;  %v4818_v22 = vld [vmem:[%s6042_s1 + $0x70] sm:$0xff]   ;;  %v6047_v32 = vmov 0  }
  0x2b   :  { %4359 = vmatprep.mubr.bf16.mxu0 %v4732_v23  ;;  %4404 = vmatpush3.bf16.msra.mxu0 %v4756_v21  ;;  %v5169_v21 = vld [vmem:[%s6043_s6 + $0xa8] ss:$16 sps:$4 sm:$0xff]  }
  0x2c   :  { %4405 = vmatprep.subr.bf16.mxu0 %v4758_v25  ;;  %4435 = vmatprep.subr.bf16.mxu1 %v4757_v35  ;;  %v4819_v23 = vld [vmem:[%s6042_s1 + $0x78] sm:$0xff]  }
  0x2d   :  { %4388 = vmatmul.mubr.bf16.gmra.mrb[4].mxu1 %v4747_v37 }
  0x2e   :  { %4391 = vmatprep.mubr.bf16.mxu1 %v4748_v38  ;;  %4436 = vmatpush3.bf16.msra.mxu1 %v4757_v35 }
  0x2f   :  { %4406 = vmatpush3.bf16.msra.mxu0 %v4758_v25  ;;  %4437 = vmatprep.subr.bf16.mxu1 %v4759_v40  ;;  %v5187_v25 = vld [vmem:[%s6043_s6 + $0xc0] ss:$16 sps:$4 sm:$0xff]  }
  0x30   :  { %4407 = vmatprep.subr.bf16.mxu0 %v4760_v29 }
  0x32   :  { %4360 = vmatmul.mubr.bf16.gmra.mrb[8].mxu0 %v4733_v26  ;;  %4438 = vmatpush3.bf16.msra.mxu1 %v4759_v40  ;;  %v5192_v26 = vld [vmem:[%s6043_s6 + $0xc8] ss:$16 sps:$4 sm:$0xff]  }
  0x33   :  { %4363 = vmatprep.mubr.bf16.mxu0 %v4734_v28  ;;  %4408 = vmatpush3.bf16.msra.mxu0 %v4760_v29  ;;  %v5206_v28 = vld [vmem:[%s6043_s6 + $0xe4] ss:$16 sps:$4 sm:$0xff]   ;;  %v5211_v29 = vld [vmem:[%s6043_s6 + $0xec] ss:$16 sps:$4 sm:$0xff]  }
  0x34   :  { %4409 = vmatprep.subr.bf16.mxu0 %v4762_v33  ;;  %4439 = vmatprep.subr.bf16.mxu1 %v4761_v42 }
  0x35   :  { %4392 = vmatmul.mubr.bf16.gmra.mrb[8].mxu1 %v4749_v44 }
  0x36   :  { %4395 = vmatprep.mubr.bf16.mxu1 %v4750_v45  ;;  %4440 = vmatpush3.bf16.msra.mxu1 %v4761_v42 }
  0x37   :  { %4410 = vmatpush3.bf16.msra.mxu0 %v4762_v33  ;;  %4441 = vmatprep.subr.bf16.mxu1 %v4763_v46  ;;  %v5232_v33 = vld [vmem:[%s6044_s3] ss:$0 sm:$0xff] }
  0x38   :  { %4411 = vmatprep.subr.bf16.mxu0 %v4764_v36 }
  0x3a   :  { %4364 = vmatmul.mubr.bf16.gmra.mrb[12].mxu0 %v4735_v34  ;;  %4442 = vmatpush3.bf16.msra.mxu1 %v4763_v46 }
  0x3b   :  { %4415 = vmatprep.mubr.bf16.mxu0 %v4767_v39  ;;  %4412 = vmatpush3.bf16.msra.mxu0 %v4764_v36 }
  0x3c   :  { %4413 = vmatprep.subr.bf16.mxu0 %v4766_v41  ;;  %4443 = vmatprep.subr.bf16.mxu1 %v4765_v51 }
  0x3d   :  { %4396 = vmatmul.mubr.bf16.gmra.mrb[12].mxu1 %v4751_v54 }
  0x3e   :  { %4447 = vmatprep.mubr.bf16.mxu1 %v4770_v56  ;;  %4444 = vmatpush3.bf16.msra.mxu1 %v4765_v51 }
  0x3f   :  { %4414 = vmatpush3.bf16.msra.mxu0 %v4766_v41  ;;  %4445 = vmatprep.subr.bf16.mxu1 %v4768_v55 }
  0x40   :  { %1291 = vmatprep.subr.bf16.mxu0 %v4774_v43 }
  0x42   :  { %4416 = vmatmul.mubr.bf16.vlgmr.msra.gmra.mrb[16].mxu0 %v4769_v47  ;;  %4446 = vmatpush3.bf16.msra.mxu1 %v4768_v55 }
  0x43   :  { %1292 = vmatpush1.bf16.msra.mxu0 %v4772_v48  ;;  %4419 = vmatprep.mubr.bf16.mxu0 %v4778_v49 }
  0x44   :  { %1293 = vmatprep.subr.bf16.mxu0 %v4781_v50  ;;  %1404 = vmatprep.subr.bf16.mxu1 %v4777_v61  ;;  %v5249_v61 = vld [vmem:[%s6045_s5] ss:$0 sm:$0xff] }
  0x45   :  { %4448 = vmatmul.mubr.bf16.vlgmr.msra.gmra.mrb[16].mxu1 %v4771_v63 }
  0x46   :  { %1405 = vmatpush1.bf16.msra.mxu1 %v4775_v2  ;;  %4451 = vmatprep.mubr.bf16.mxu1 %v4786_v3 }
  0x47   :  { %1294 = vmatpush1.bf16.msra.mxu0 %v4779_v52  ;;  %1406 = vmatprep.subr.bf16.mxu1 %v4784_v4 }
  0x48   :  { %1295 = vmatprep.subr.bf16.mxu0 %v4790_v53 }
  0x4a   :  { %4420 = vmatmul.mubr.bf16.gmra.mrb[20].mxu0 %v4785_v57  ;;  %1407 = vmatpush1.bf16.msra.mxu1 %v5107_v8 }
  0x4b   :  { %1296 = vmatpush1.bf16.msra.mxu0 %v4788_v58  ;;  %4423 = vmatprep.mubr.bf16.mxu0 %v4794_v59 }
  0x4c   :  { %1297 = vmatprep.subr.bf16.mxu0 %v4797_v60  ;;  %1408 = vmatprep.subr.bf16.mxu1 %v5112_v9 }
  0x4d   :  { %4452 = vmatmul.mubr.bf16.gmra.mrb[20].mxu1 %v4787_v11 }
  0x4e   :  { %1409 = vmatpush1.bf16.msra.mxu1 %v5127_v13  ;;  %4455 = vmatprep.mubr.bf16.mxu1 %v4802_v14 }
  0x4f   :  { %1298 = vmatpush1.bf16.msra.mxu0 %v4795_v62  ;;  %1410 = vmatprep.subr.bf16.mxu1 %v5136_v15 }
  0x50   :  { %1299 = vmatprep.subr.bf16.mxu0 %v4806_v1 }
  0x52   :  { %4424 = vmatmul.mubr.bf16.gmra.mrb[24].mxu0 %v4801_v0  ;;  %1411 = vmatpush1.bf16.msra.mxu1 %v5142_v16 }
  0x53   :  { %1300 = vmatpush1.bf16.msra.mxu0 %v4804_v5  ;;  %4427 = vmatprep.mubr.bf16.mxu0 %v4810_v6 }
  0x54   :  { %1301 = vmatprep.subr.bf16.mxu0 %v4813_v7  ;;  %1412 = vmatprep.subr.bf16.mxu1 %v5148_v17 }
  0x55   :  { %4456 = vmatmul.mubr.bf16.gmra.mrb[24].mxu1 %v4803_v18 }
  0x56   :  { %1413 = vmatpush1.bf16.msra.mxu1 %v5157_v19  ;;  %4459 = vmatprep.mubr.bf16.mxu1 %v4818_v22 }
  0x57   :  { %1302 = vmatpush1.bf16.msra.mxu0 %v4811_v10  ;;  %1414 = vmatprep.subr.bf16.mxu1 %v5163_v20 }
  0x58   :  { %1303 = vmatprep.subr.bf16.mxu0 %v5182_v24 }
  0x5a   :  { %4428 = vmatmul.mubr.bf16.gmra.mrb[28].mxu0 %v4817_v12  ;;  %1415 = vmatpush1.bf16.msra.mxu1 %v5169_v21 }
  0x5b   :  { %1416 = vmatprep.subr.bf16.mxu1 %v5197_v27  ;;  %1304 = vmatpush1.bf16.msra.mxu0 %v5187_v25 }
  0x5c   :  { %1305 = vmatprep.subr.bf16.mxu0 %v5206_v28  ;;  %1323 = vmatprep.mubr.bf16.mxu0 %v6047_v32 }
  0x5d   :  { %4460 = vmatmul.mubr.bf16.gmra.mrb[28].mxu1 %v4819_v23 }
  0x5e   :  { %1417 = vmatpush1.bf16.msra.mxu1 %v5192_v26  ;;  %1436 = vmatprep.mubr.bf16.mxu1 %v6047_v32 }
  0x5f   :  { %1418 = vmatprep.subr.bf16.mxu1 %v5211_v29  ;;  %1306 = vmatpush1.bf16.msra.mxu0 %v5216_v30 }
  0x62   :  { %1419 = vmatpush1.bf16.msra.mxu1 %v5221_v31 }
  0xf5   :  { %v4353_v34 = vpop.f32.mrb[0].mxu0 }
  0xf6   :  { %v209_v35 = vadd.f32 %v4353_v34, %v5232_v33  ;;  %v200_v36 = vpop.f32.mrb[1].mxu0 }
  0xf7   :  { %v201_v37 = vadd.f32 %v5232_v33, %v200_v36  ;;  %v4354_v38 = vpop.f32.mrb[2].mxu0 }
  0xf8   :  { %v212_v39 = vadd.f32 %v4354_v38, %v5232_v33  ;;  %v203_v40 = vpop.f32.mrb[3].mxu0  ;;  %v497_v42 = vmax.f32 %v209_v35, 0.0  ;;  %v4385_v0 = vpop.f32.mrb[0].mxu1 }
  0xf9   :  { %v204_v41 = vadd.f32 %v5232_v33, %v203_v40  ;;  %v495_v44 = vmax.f32 %v201_v37, 0.0  ;;  %v441_v3 = vadd.f32 %v4385_v0, %v5249_v61  ;;  %v432_v4 = vpop.f32.mrb[1].mxu1 }
  0xfa   :  { %v498_v43 = vmax.f32 %v212_v39, 0.0  ;;  %v433_v7 = vadd.f32 %v5249_v61, %v432_v4  ;;  %v4386_v10 = vpop.f32.mrb[2].mxu1 }
  0xfb   :  { %v496_v45 = vmax.f32 %v204_v41, 0.0  ;;  %v529_v18 = vmax.f32 %v441_v3, 0.0  ;;  %v444_v22 = vadd.f32 %v4386_v10, %v5249_v61  ;;  %v435_v23 = vpop.f32.mrb[3].mxu1 }
  0xfc   :  { %v512_v46 = vpack.c.bf16 %v498_v43, %v497_v42  ;;  %v527_v36 = vmax.f32 %v433_v7, 0.0  ;;  %v436_v37 = vadd.f32 %v5249_v61, %v435_v23 }
  0xfd   :  { %v511_v47 = vpack.c.bf16 %v496_v45, %v495_v44  ;;  %v4357_v48 = vpop.f32.mrb[4].mxu0  ;;  %v530_v39 = vmax.f32 %v444_v22, 0.0 }
  0xfe   :  { %v225_v49 = vadd.f32 %v4357_v48, %v5232_v33  ;;  %v216_v50 = vpop.f32.mrb[5].mxu0  ;;  %v528_v41 = vmax.f32 %v436_v37, 0.0 }
  0xff   :  { %1324 = vmatmul.mubr.bf16.vlgmr.msra.gmra.mrb[32].mxu0 %v511_v47  ;;  %1437 = vmatmul.mubr.bf16.vlgmr.msra.gmra.mrb[32].mxu1 %v511_v47  ;;  %v217_v51 = vadd.f32 %v5232_v33, %v216_v50  ;;  %v4358_v52 = vpop.f32.mrb[6].mxu0  ;;  %v5263_v43 = vpack.c.bf16 %v530_v39, %v529_v18 }
 0x100   :  { %v501_v53 = vmax.f32 %v225_v49, 0.0  ;;  %1333 = vmatprep.mubr.bf16.mxu0 %v6047_v32  ;;  %1446 = vmatprep.mubr.bf16.mxu1 %v6047_v32  ;;  %v228_v54 = vadd.f32 %v4358_v52, %v5232_v33  ;;  %v219_v55 = vpop.f32.mrb[7].mxu0  ;;  %v4389_v47 = vpop.f32.mrb[4].mxu1 }
 0x101   :  { %v499_v56 = vmax.f32 %v217_v51, 0.0  ;;  %v220_v57 = vadd.f32 %v5232_v33, %v219_v55  ;;  %v457_v50 = vadd.f32 %v4389_v47, %v5249_v61  ;;  %v448_v51 = vpop.f32.mrb[5].mxu1 }
 0x102   :  { %v502_v58 = vmax.f32 %v228_v54, 0.0  ;;  %v449_v54 = vadd.f32 %v5249_v61, %v448_v51  ;;  %v4390_v55 = vpop.f32.mrb[6].mxu1 }
 0x103   :  { %v500_v59 = vmax.f32 %v220_v57, 0.0  ;;  %v451_v0 = vpop.f32.mrb[7].mxu1 }
 0x104   :  { %v5244_v60 = vpack.c.bf16 %v502_v58, %v501_v53  ;;  %v452_v3 = vadd.f32 %v5249_v61, %v451_v0 }
 0x105   :  { %v513_v62 = vpack.c.bf16 %v500_v59, %v499_v56  ;;  %v4361_v63 = vpop.f32.mrb[8].mxu0  ;;  %v533_v59 = vmax.f32 %v457_v50, 0.0 }
 0x106   :  { %v241_v1 = vadd.f32 %v4361_v63, %v5232_v33  ;;  %v232_v2 = vpop.f32.mrb[9].mxu0  ;;  %v460_v63 = vadd.f32 %v4390_v55, %v5249_v61  ;;  %v532_v7 = vmax.f32 %v452_v3, 0.0 }
 0x107   :  { %1334 = vmatmul.mubr.bf16.gmra.mrb[36].mxu0 %v512_v46  ;;  %1447 = vmatmul.mubr.bf16.gmra.mrb[36].mxu1 %v512_v46  ;;  %v233_v5 = vadd.f32 %v5232_v33, %v232_v2  ;;  %v4362_v6 = vpop.f32.mrb[10].mxu0  ;;  %v5267_v46 = vpack.c.bf16 %v528_v41, %v527_v36  ;;  %v531_v2 = vmax.f32 %v449_v54, 0.0 }
 0x108   :  { %1343 = vmatprep.mubr.bf16.mxu0 %v6047_v32  ;;  %1456 = vmatprep.mubr.bf16.mxu1 %v6047_v32  ;;  %v505_v11 = vmax.f32 %v241_v1, 0.0  ;;  %v244_v12 = vadd.f32 %v4362_v6, %v5232_v33  ;;  %v235_v14 = vpop.f32.mrb[11].mxu0  ;;  %v4393_v18 = vpop.f32.mrb[8].mxu1 }
 0x109   :  { %v503_v34 = vmax.f32 %v233_v5, 0.0  ;;  %v236_v35 = vadd.f32 %v5232_v33, %v235_v14  ;;  %4463 = vmatprep.subr.bf16.mxu0 %v5267_v46  ;;  %4495 = vmatprep.subr.bf16.mxu1 %v5267_v46  ;;  %v534_v5 = vmax.f32 %v460_v63, 0.0  ;;  %v5291_v14 = vpack.c.bf16 %v532_v7, %v531_v2  ;;  %v464_v23 = vpop.f32.mrb[9].mxu1 }
 0x10a   :  { %v506_v38 = vmax.f32 %v244_v12, 0.0  ;;  %4464 = vmatpush3.bf16.xpose.msra.mxu0 %v5267_v46  ;;  %4496 = vmatpush3.bf16.xpose.msra.mxu1 %v5267_v46  ;;  %v473_v22 = vadd.f32 %v4393_v18, %v5249_v61  ;;  %v4394_v36 = vpop.f32.mrb[10].mxu1 }
 0x10b   :  { %v504_v40 = vmax.f32 %v236_v35, 0.0  ;;  %4465 = vmatprep.subr.bf16.mxu0 %v5263_v43  ;;  %4497 = vmatprep.subr.bf16.mxu1 %v5263_v43  ;;  %v465_v35 = vadd.f32 %v5249_v61, %v464_v23  ;;  %v467_v41 = vpop.f32.mrb[11].mxu1 }
 0x10c   :  { %v5261_v42 = vpack.c.bf16 %v506_v38, %v505_v11  ;;  %v5287_v11 = vpack.c.bf16 %v534_v5, %v533_v59  ;;  %v537_v39 = vmax.f32 %v473_v22, 0.0 }
 0x10d   :  { %v5265_v44 = vpack.c.bf16 %v504_v40, %v503_v34  ;;  %v4365_v45 = vpop.f32.mrb[12].mxu0  ;;  %v476_v40 = vadd.f32 %v4394_v36, %v5249_v61 }
 0x10e   :  { %v257_v48 = vadd.f32 %v4365_v45, %v5232_v33  ;;  %v248_v49 = vpop.f32.mrb[13].mxu0 }
 0x10f   :  { %1344 = vmatmul.mubr.bf16.gmra.mrb[40].mxu0 %v513_v62  ;;  %1457 = vmatmul.mubr.bf16.gmra.mrb[40].mxu1 %v513_v62  ;;  %v249_v52 = vadd.f32 %v5232_v33, %v248_v49  ;;  %v4366_v53 = vpop.f32.mrb[14].mxu0 }
 0x110   :  { %1353 = vmatprep.mubr.bf16.mxu0 %v6047_v32  ;;  %1466 = vmatprep.mubr.bf16.mxu1 %v6047_v32  ;;  %v509_v56 = vmax.f32 %v257_v48, 0.0  ;;  %v260_v57 = vadd.f32 %v4366_v53, %v5232_v33  ;;  %v251_v58 = vpop.f32.mrb[15].mxu0  ;;  %v535_v48 = vmax.f32 %v465_v35, 0.0  ;;  %v4397_v63 = vpop.f32.mrb[12].mxu1 }
 0x111   :  { %v507_v1 = vmax.f32 %v249_v52, 0.0  ;;  %v252_v62 = vadd.f32 %v5232_v33, %v251_v58  ;;  %v538_v52 = vmax.f32 %v476_v40, 0.0 }
 0x112   :  { %v510_v4 = vmax.f32 %v260_v57, 0.0  ;;  %4466 = vmatpush3.bf16.xpose.msra.mxu0 %v5263_v43  ;;  %4498 = vmatpush3.bf16.xpose.msra.mxu1 %v5263_v43 }
 0x113   :  { %v508_v6 = vmax.f32 %v252_v62, 0.0  ;;  %4467 = vmatprep.subr.bf16.mxu0 %v5291_v14  ;;  %4499 = vmatprep.subr.bf16.mxu1 %v5291_v14  ;;  %v5309_v57 = vpack.c.bf16 %v538_v52, %v537_v39  ;;  %v480_v62 = vpop.f32.mrb[13].mxu1 }
 0x114   :  { %v5285_v10 = vpack.c.bf16 %v510_v4, %v509_v56  ;;  %v481_v4 = vadd.f32 %v5249_v61, %v480_v62  ;;  %v4398_v5 = vpop.f32.mrb[14].mxu1 }
 0x115   :  { %v5289_v12 = vpack.c.bf16 %v508_v6, %v507_v1  ;;  %v4417_v34 = vpop.f32.mrb[16].mxu0  ;;  %v489_v1 = vadd.f32 %v4397_v63, %v5249_v61  ;;  %v492_v22 = vadd.f32 %v4398_v5, %v5249_v61  ;;  %v483_v23 = vpop.f32.mrb[15].mxu1 }
 0x116   :  { %v738_v37 = vadd.f32 %v4417_v34, %v5232_v33  ;;  %v729_v38 = vpop.f32.mrb[17].mxu0  ;;  %v539_v36 = vmax.f32 %v481_v4, 0.0 }
 0x117   :  { %1354 = vmatmul.mubr.bf16.gmra.mrb[44].mxu0 %v5244_v60  ;;  %1467 = vmatmul.mubr.bf16.gmra.mrb[44].mxu1 %v5244_v60  ;;  %v730_v45 = vadd.f32 %v5232_v33, %v729_v38  ;;  %v4418_v47 = vpop.f32.mrb[18].mxu0  ;;  %v468_v60 = vadd.f32 %v5249_v61, %v467_v41  ;;  %v541_v18 = vmax.f32 %v489_v1, 0.0  ;;  %v542_v40 = vmax.f32 %v492_v22, 0.0 }
 0x118   :  { %1363 = vmatprep.mubr.bf16.mxu0 %v6047_v32  ;;  %1476 = vmatprep.mubr.bf16.mxu1 %v6047_v32  ;;  %v1027_v49 = vmax.f32 %v738_v37, 0.0  ;;  %v741_v50 = vadd.f32 %v4418_v47, %v5232_v33  ;;  %v732_v51 = vpop.f32.mrb[19].mxu0 }
 0x119   :  { %v1025_v53 = vmax.f32 %v730_v45, 0.0  ;;  %v733_v54 = vadd.f32 %v5232_v33, %v732_v51  ;;  %v536_v55 = vmax.f32 %v468_v60, 0.0  ;;  %v5333_v60 = vpack.c.bf16 %v542_v40, %v541_v18 }
 0x11a   :  { %v1028_v56 = vmax.f32 %v741_v50, 0.0  ;;  %4468 = vmatpush3.bf16.xpose.msra.mxu0 %v5291_v14  ;;  %4500 = vmatpush3.bf16.xpose.msra.mxu1 %v5291_v14 }
 0x11b   :  { %v1026_v58 = vmax.f32 %v733_v54, 0.0  ;;  %v5311_v59 = vpack.c.bf16 %v536_v55, %v535_v48  ;;  %4469 = vmatprep.subr.bf16.mxu0 %v5287_v11  ;;  %4501 = vmatprep.subr.bf16.mxu1 %v5287_v11  ;;  %v4449_v54 = vpop.f32.mrb[16].mxu1 }
 0x11c   :  { %v5313_v0 = vpack.c.bf16 %v1028_v56, %v1027_v49  ;;  %v962_v63 = vpop.f32.mrb[17].mxu1 }
 0x11d   :  { %v5316_v2 = vpack.c.bf16 %v1026_v58, %v1025_v53  ;;  %v4421_v3 = vpop.f32.mrb[20].mxu0  ;;  %v971_v58 = vadd.f32 %v4449_v54, %v5249_v61  ;;  %v4450_v4 = vpop.f32.mrb[18].mxu1 }
 0x11e   :  { %v754_v6 = vadd.f32 %v4421_v3, %v5232_v33  ;;  %v745_v7 = vpop.f32.mrb[21].mxu0  ;;  %v963_v3 = vadd.f32 %v5249_v61, %v962_v63  ;;  %v974_v18 = vadd.f32 %v4450_v4, %v5249_v61  ;;  %v965_v22 = vpop.f32.mrb[19].mxu1 }
 0x11f   :  { %1364 = vmatmul.mubr.bf16.gmra.mrb[48].mxu0 %v5265_v44  ;;  %1477 = vmatmul.mubr.bf16.gmra.mrb[48].mxu1 %v5265_v44  ;;  %v746_v34 = vadd.f32 %v5232_v33, %v745_v7  ;;  %v4422_v35 = vpop.f32.mrb[22].mxu0  ;;  %v484_v44 = vadd.f32 %v5249_v61, %v483_v23  ;;  %v1060_v7 = vmax.f32 %v971_v58, 0.0 }
 0x120   :  { %1373 = vmatprep.mubr.bf16.mxu0 %v6047_v32  ;;  %1486 = vmatprep.mubr.bf16.mxu1 %v6047_v32  ;;  %v1031_v37 = vmax.f32 %v754_v6, 0.0  ;;  %v757_v38 = vadd.f32 %v4422_v35, %v5232_v33  ;;  %v748_v39 = vpop.f32.mrb[23].mxu0  ;;  %v1058_v35 = vmax.f32 %v963_v3, 0.0 }
 0x121   :  { %v1029_v41 = vmax.f32 %v746_v34, 0.0  ;;  %v749_v45 = vadd.f32 %v5232_v33, %v748_v39  ;;  %v540_v47 = vmax.f32 %v484_v44, 0.0 }
 0x122   :  { %v1032_v48 = vmax.f32 %v757_v38, 0.0  ;;  %4470 = vmatpush3.bf16.xpose.msra.mxu0 %v5287_v11  ;;  %4502 = vmatpush3.bf16.xpose.msra.mxu1 %v5287_v11 }
 0x123   :  { %v1030_v49 = vmax.f32 %v749_v45, 0.0  ;;  %v5335_v50 = vpack.c.bf16 %v540_v47, %v539_v36  ;;  %v966_v36 = vadd.f32 %v5249_v61, %v965_v22  ;;  %4471 = vmatprep.subr.bf16.mxu0 %v5311_v59  ;;  %4503 = vmatprep.subr.bf16.mxu1 %v5311_v59 }
 0x124   :  { %v5337_v51 = vpack.c.bf16 %v1032_v48, %v1031_v37  ;;  %v1061_v37 = vmax.f32 %v974_v18, 0.0  ;;  %v4453_v48 = vpop.f32.mrb[20].mxu1 }
 0x125   :  { %v5339_v52 = vpack.c.bf16 %v1030_v49, %v1029_v41  ;;  %v4425_v53 = vpop.f32.mrb[24].mxu0  ;;  %v1059_v39 = vmax.f32 %v966_v36, 0.0 }
 0x126   :  { %6061 = vst [vmem:[#allocation4_spill] sm:$0xff] %v5337_v51  ;;  %v770_v55 = vadd.f32 %v4425_v53, %v5232_v33  ;;  %v761_v56 = vpop.f32.mrb[25].mxu0  ;;  %v5359_v41 = vpack.c.bf16 %v1061_v37, %v1060_v7  ;;  %v987_v53 = vadd.f32 %v4453_v48, %v5249_v61 }
 0x127   :  { %6062 = vst [vmem:[#allocation5_spill] sm:$0xff] %v5339_v52  ;;  %1374 = vmatmul.mubr.bf16.gmra.mrb[52].mxu0 %v5261_v42  ;;  %1487 = vmatmul.mubr.bf16.gmra.mrb[52].mxu1 %v5261_v42  ;;  %v762_v1 = vadd.f32 %v5232_v33, %v761_v56  ;;  %v4426_v62 = vpop.f32.mrb[26].mxu0  ;;  %v5363_v47 = vpack.c.bf16 %v1059_v39, %v1058_v35 }
 0x128   :  { %1383 = vmatprep.mubr.bf16.mxu0 %v6047_v32  ;;  %1496 = vmatprep.mubr.bf16.mxu1 %v6047_v32  ;;  %v1035_v5 = vmax.f32 %v770_v55, 0.0  ;;  %v773_v6 = vadd.f32 %v4426_v62, %v5232_v33  ;;  %v764_v42 = vpop.f32.mrb[27].mxu0  ;;  %v978_v55 = vpop.f32.mrb[21].mxu1  ;;  %v1064_v3 = vmax.f32 %v987_v53, 0.0 }
 0x129   :  { %v1033_v23 = vmax.f32 %v762_v1, 0.0  ;;  %v765_v34 = vadd.f32 %v5232_v33, %v764_v42  ;;  %v979_v58 = vadd.f32 %v5249_v61, %v978_v55  ;;  %v4454_v1 = vpop.f32.mrb[22].mxu1 }
 0x12a   :  { %v1036_v44 = vmax.f32 %v773_v6, 0.0  ;;  %v981_v6 = vpop.f32.mrb[23].mxu1  ;;  %4472 = vmatpush3.bf16.xpose.msra.mxu0 %v5311_v59  ;;  %4504 = vmatpush3.bf16.xpose.msra.mxu1 %v5311_v59 }
 0x12b   :  { %v1034_v38 = vmax.f32 %v765_v34, 0.0  ;;  %v1062_v7 = vmax.f32 %v979_v58, 0.0  ;;  %v982_v22 = vadd.f32 %v5249_v61, %v981_v6  ;;  %4473 = vmatprep.subr.bf16.mxu0 %v5309_v57  ;;  %4505 = vmatprep.subr.bf16.mxu1 %v5309_v57 }
 0x12c   :  { %v5357_v40 = vpack.c.bf16 %v1036_v44, %v1035_v5 }
 0x12d   :  { %v5361_v45 = vpack.c.bf16 %v1034_v38, %v1033_v23  ;;  %v4429_v49 = vpop.f32.mrb[28].mxu0  ;;  %v1063_v36 = vmax.f32 %v982_v22, 0.0 }
 0x12e   :  { %6063 = vst [vmem:[#allocation6_spill] sm:$0xff] %v5357_v40  ;;  %v786_v54 = vadd.f32 %v4429_v49, %v5232_v33  ;;  %v777_v56 = vpop.f32.mrb[29].mxu0  ;;  %v4457_v49 = vpop.f32.mrb[24].mxu1 }
 0x12f   :  { %6064 = vst [vmem:[#allocation7_spill] sm:$0xff] %v5361_v45  ;;  %1384 = vmatmul.mubr.bf16.gmra.mrb[56].mxu0 %v5289_v12  ;;  %1497 = vmatmul.mubr.bf16.gmra.mrb[56].mxu1 %v5289_v12  ;;  %v778_v63 = vadd.f32 %v5232_v33, %v777_v56  ;;  %v4430_v62 = vpop.f32.mrb[30].mxu0  ;;  %v990_v12 = vadd.f32 %v4454_v1, %v5249_v61  ;;  %v994_v53 = vpop.f32.mrb[25].mxu1 }
 0x130   :  { %1393 = vmatprep.mubr.bf16.mxu0 %v6047_v32  ;;  %1506 = vmatprep.mubr.bf16.mxu1 %v6047_v32  ;;  %v1039_v4 = vmax.f32 %v786_v54, 0.0  ;;  %v789_v5 = vadd.f32 %v4430_v62, %v5232_v33  ;;  %v780_v42 = vpop.f32.mrb[31].mxu0  ;;  %v5385_v39 = vpack.c.bf16 %v1063_v36, %v1062_v7  ;;  %v995_v54 = vadd.f32 %v5249_v61, %v994_v53  ;;  %v4458_v55 = vpop.f32.mrb[26].mxu1 }
 0x131   :  { %v1037_v18 = vmax.f32 %v778_v63, 0.0  ;;  %v781_v23 = vadd.f32 %v5232_v33, %v780_v42  ;;  %v1065_v34 = vmax.f32 %v990_v12, 0.0  ;;  %v1003_v33 = vadd.f32 %v4457_v49, %v5249_v61  ;;  %v997_v63 = vpop.f32.mrb[27].mxu1 }
 0x132   :  { %v1040_v35 = vmax.f32 %v789_v5, 0.0  ;;  %6067 = vst [vmem:[#allocation10_spill] sm:$0xff] %v5385_v39  ;;  %v1006_v58 = vadd.f32 %v4458_v55, %v5249_v61  ;;  %4474 = vmatpush3.bf16.xpose.msra.mxu0 %v5309_v57  ;;  %4506 = vmatpush3.bf16.xpose.msra.mxu1 %v5309_v57  ;;  %v1066_v1 = vmax.f32 %v995_v54, 0.0  ;;  %v998_v62 = vadd.f32 %v5249_v61, %v997_v63  ;;  %v4461_v5 = vpop.f32.mrb[28].mxu1 }
 0x133   :  { %v1038_v44 = vmax.f32 %v781_v23, 0.0  ;;  %v5381_v37 = vpack.c.bf16 %v1065_v34, %v1064_v3  ;;  %v1068_v56 = vmax.f32 %v1003_v33, 0.0  ;;  %4475 = vmatprep.subr.bf16.mxu0 %v5335_v50  ;;  %4507 = vmatprep.subr.bf16.mxu1 %v5335_v50  ;;  %v1019_v6 = vadd.f32 %v4461_v5, %v5249_v61  ;;  %v1010_v42 = vpop.f32.mrb[29].mxu1 }
 0x134   :  { %v5383_v38 = vpack.c.bf16 %v1040_v35, %v1039_v4  ;;  %v1067_v3 = vmax.f32 %v998_v62, 0.0  ;;  %v1011_v7 = vadd.f32 %v5249_v61, %v1010_v42 }
 0x135   :  { %6065 = vst [vmem:[#allocation8_spill] sm:$0xff] %v5381_v37  ;;  %v5387_v48 = vpack.c.bf16 %v1038_v44, %v1037_v18  ;;  %v4462_v18 = vpop.f32.mrb[30].mxu1  ;;  %v1072_v22 = vmax.f32 %v1019_v6, 0.0 }
 0x136   :  { %6066 = vst [vmem:[#allocation9_spill] sm:$0xff] %v5383_v38  ;;  %v5401_v12 = vpack.c.bf16 %v1067_v3, %v1066_v1  ;;  %v1022_v23 = vadd.f32 %v4462_v18, %v5249_v61  ;;  %v1013_v34 = vpop.f32.mrb[31].mxu1  ;;  %v1070_v35 = vmax.f32 %v1011_v7, 0.0 }
 0x137   :  { %6068 = vst [vmem:[#allocation11_spill] sm:$0xff] %v5387_v48  ;;  %1394 = vmatmul.mubr.bf16.gmra.mrb[60].mxu0 %v5285_v10  ;;  %1507 = vmatmul.mubr.bf16.gmra.mrb[60].mxu1 %v5285_v10  ;;  %v1069_v10 = vmax.f32 %v1006_v58, 0.0  ;;  %v1014_v36 = vadd.f32 %v5249_v61, %v1013_v34 }
 0x138   :  { %6070 = vst [vmem:[#allocation13_spill] sm:$0xff] %v5401_v12  ;;  %v1073_v44 = vmax.f32 %v1022_v23, 0.0 }
 0x139   :  { %v5399_v4 = vpack.c.bf16 %v1069_v10, %v1068_v56  ;;  %v1071_v49 = vmax.f32 %v1014_v36, 0.0 }
 0x13a   :  { %4476 = vmatpush3.bf16.xpose.msra.mxu0 %v5335_v50  ;;  %4508 = vmatpush3.bf16.xpose.msra.mxu1 %v5335_v50  ;;  %v5415_v33 = vpack.c.bf16 %v1073_v44, %v1072_v22 }
 0x13b   :  { %6069 = vst [vmem:[#allocation12_spill] sm:$0xff] %v5399_v4  ;;  %4477 = vmatprep.subr.bf16.mxu0 %v5333_v60  ;;  %4509 = vmatprep.subr.bf16.mxu1 %v5333_v60  ;;  %v5417_v53 = vpack.c.bf16 %v1071_v49, %v1070_v35 }
 0x13c   :  { %6071 = vst [vmem:[#allocation14_spill] sm:$0xff] %v5415_v33 }
 0x13d   :  { %6072 = vst [vmem:[#allocation15_spill] sm:$0xff] %v5417_v53 }
 0x142   :  { %4478 = vmatpush3.bf16.xpose.msra.mxu0 %v5333_v60  ;;  %4510 = vmatpush3.bf16.xpose.msra.mxu1 %v5333_v60 }
 0x143   :  { %4527 = vmatprep.subr.bf16.mxu0 %v5267_v46  ;;  %4559 = vmatprep.subr.bf16.mxu1 %v5267_v46 }
 0x1d2   :  { %v1325_v54 = vpop.f32.mrb[32].mxu0  ;;  %v5419_v55 = vpop.f32.mrb[32].mxu1 }
 0x1d3   :  { %v1327_v56 = vpop.f32.mrb[33].mxu0  ;;  %v5421_v58 = vpop.f32.mrb[33].mxu1 }
 0x1d4   :  { %v1329_v63 = vpop.f32.mrb[34].mxu0  ;;  %v5423_v1 = vpop.f32.mrb[34].mxu1 }
 0x1d5   :  { %v1517_v62 = vpack.c.bf16 %v1329_v63, %v1325_v54  ;;  %v1331_v61 = vpop.f32.mrb[35].mxu0  ;;  %v5427_v3 = vpop.f32.mrb[35].mxu1  ;;  %v6073_v39 = vpack.c.bf16 %v5423_v1, %v5419_v55  ;;  %v4835_v1 = vld [vmem:[%s6043_s6 + $0x24] ss:$16 sps:$4 sm:$0xff]  }
 0x1d6   :  { %v1518_v5 = vpack.c.bf16 %v1331_v61, %v1327_v56 }
 0x1d7   :  { %4479 = vmatprep.mubr.bf16.mxu0 %v1517_v62 }
 0x1d8   :  { %4511 = vmatprep.mubr.bf16.mxu1 %v1518_v5 }
 0x1da   :  { %v1335_v42 = vpop.f32.mrb[36].mxu0  ;;  %v5431_v7 = vpop.f32.mrb[36].mxu1 }
 0x1db   :  { %v1337_v18 = vpop.f32.mrb[37].mxu0  ;;  %v5433_v22 = vpop.f32.mrb[37].mxu1 }
 0x1dc   :  { %v1339_v23 = vpop.f32.mrb[38].mxu0  ;;  %v5435_v34 = vpop.f32.mrb[38].mxu1 }
 0x1dd   :  { %v1521_v35 = vpack.c.bf16 %v1339_v23, %v1335_v42  ;;  %v1341_v44 = vpop.f32.mrb[39].mxu0  ;;  %v5439_v49 = vpop.f32.mrb[39].mxu1 }
 0x1de   :  { %v1522_v54 = vpack.c.bf16 %v1341_v44, %v1337_v18 }
 0x1df   :  { %4480 = vmatmul.mubr.bf16.vlgmr.msra.gmra.mrb[64].mxu0 %v1521_v35 }
 0x1e0   :  { %4528 = vmatpush3.bf16.xpose.msra.mxu0 %v5267_v46  ;;  %4512 = vmatmul.mubr.bf16.vlgmr.msra.gmra.mrb[64].mxu1 %v1522_v54 }
 0x1e1   :  { %4529 = vmatprep.subr.bf16.mxu0 %v5263_v43  ;;  %4560 = vmatpush3.bf16.xpose.msra.mxu1 %v5267_v46 }
 0x1e2   :  { %4561 = vmatprep.subr.bf16.mxu1 %v5263_v43  ;;  %v1345_v63 = vpop.f32.mrb[40].mxu0  ;;  %v5447_v62 = vpop.f32.mrb[40].mxu1 }
 0x1e3   :  { %v1347_v61 = vpop.f32.mrb[41].mxu0  ;;  %v5449_v5 = vpop.f32.mrb[41].mxu1 }
 0x1e4   :  { %v1349_v42 = vpop.f32.mrb[42].mxu0  ;;  %v5451_v18 = vpop.f32.mrb[42].mxu1 }
 0x1e5   :  { %v1525_v23 = vpack.c.bf16 %v1349_v42, %v1345_v63  ;;  %v1351_v44 = vpop.f32.mrb[43].mxu0  ;;  %v5455_v54 = vpop.f32.mrb[43].mxu1  ;;  %v6076_v55 = vpack.c.bf16 %v5451_v18, %v5447_v62  ;;  %v4840_v18 = vld [vmem:[%s6043_s6 + $0x40] ss:$16 sps:$4 sm:$0xff]  }
 0x1e6   :  { %v1526_v32 = vpack.c.bf16 %v1351_v44, %v1347_v61 }
 0x1e7   :  { %4483 = vmatprep.mubr.bf16.mxu0 %v1525_v23 }
 0x1e8   :  { %4530 = vmatpush3.bf16.xpose.msra.mxu0 %v5263_v43  ;;  %4515 = vmatprep.mubr.bf16.mxu1 %v1526_v32 }
 0x1e9   :  { %4531 = vmatprep.subr.bf16.mxu0 %v5291_v14  ;;  %4562 = vmatpush3.bf16.xpose.msra.mxu1 %v5263_v43 }
 0x1ea   :  { %4563 = vmatprep.subr.bf16.mxu1 %v5291_v14  ;;  %v1355_v63 = vpop.f32.mrb[44].mxu0  ;;  %v5463_v42 = vpop.f32.mrb[44].mxu1 }
 0x1eb   :  { %v1357_v56 = vpop.f32.mrb[45].mxu0  ;;  %v5465_v35 = vpop.f32.mrb[45].mxu1 }
 0x1ec   :  { %v1359_v61 = vpop.f32.mrb[46].mxu0  ;;  %v5467_v44 = vpop.f32.mrb[46].mxu1 }
 0x1ed   :  { %v1529_v46 = vpack.c.bf16 %v1359_v61, %v1355_v63  ;;  %v1361_v32 = vpop.f32.mrb[47].mxu0  ;;  %v5471_v36 = vpop.f32.mrb[47].mxu1  ;;  %v6079_v62 = vpack.c.bf16 %v5467_v44, %v5463_v42  ;;  %v4842_v42 = vld [vmem:[%s6043_s6 + $0x60] ss:$16 sps:$4 sm:$0xff]  }
 0x1ee   :  { %v1530_v6 = vpack.c.bf16 %v1361_v32, %v1357_v56 }
 0x1ef   :  { %4484 = vmatmul.mubr.bf16.gmra.mrb[68].mxu0 %v1529_v46 }
 0x1f0   :  { %4532 = vmatpush3.bf16.xpose.msra.mxu0 %v5291_v14  ;;  %4516 = vmatmul.mubr.bf16.gmra.mrb[68].mxu1 %v1530_v6 }
 0x1f1   :  { %4533 = vmatprep.subr.bf16.mxu0 %v5287_v11  ;;  %4564 = vmatpush3.bf16.xpose.msra.mxu1 %v5291_v14 }
 0x1f2   :  { %4565 = vmatprep.subr.bf16.mxu1 %v5287_v11  ;;  %v1365_v63 = vpop.f32.mrb[48].mxu0  ;;  %v5479_v61 = vpop.f32.mrb[48].mxu1 }
 0x1f3   :  { %v1367_v23 = vpop.f32.mrb[49].mxu0  ;;  %v5481_v10 = vpop.f32.mrb[49].mxu1 }
 0x1f4   :  { %v1369_v56 = vpop.f32.mrb[50].mxu0  ;;  %v5483_v32 = vpop.f32.mrb[50].mxu1 }
 0x1f5   :  { %v1533_v43 = vpack.c.bf16 %v1369_v56, %v1365_v63  ;;  %v1371_v6 = vpop.f32.mrb[51].mxu0  ;;  %v5487_v38 = vpop.f32.mrb[51].mxu1 }
 0x1f6   :  { %v1534_v33 = vpack.c.bf16 %v1371_v6, %v1367_v23 }
 0x1f7   :  { %4487 = vmatprep.mubr.bf16.mxu0 %v1533_v43 }
 0x1f8   :  { %4534 = vmatpush3.bf16.xpose.msra.mxu0 %v5287_v11  ;;  %4519 = vmatprep.mubr.bf16.mxu1 %v1534_v33 }
 0x1f9   :  { %4535 = vmatprep.subr.bf16.mxu0 %v5311_v59  ;;  %4566 = vmatpush3.bf16.xpose.msra.mxu1 %v5287_v11 }
 0x1fa   :  { %4567 = vmatprep.subr.bf16.mxu1 %v5311_v59  ;;  %v1375_v63 = vpop.f32.mrb[52].mxu0  ;;  %v5495_v56 = vpop.f32.mrb[52].mxu1 }
 0x1fb   :  { %v1377_v46 = vpop.f32.mrb[53].mxu0  ;;  %v5497_v48 = vpop.f32.mrb[53].mxu1 }
 0x1fc   :  { %v1379_v23 = vpop.f32.mrb[54].mxu0  ;;  %v5499_v6 = vpop.f32.mrb[54].mxu1 }
 0x1fd   :  { %v1537_v14 = vpack.c.bf16 %v1379_v23, %v1375_v63  ;;  %v1381_v33 = vpop.f32.mrb[55].mxu0  ;;  %v5503_v53 = vpop.f32.mrb[55].mxu1 }
 0x1fe   :  { %v1538_v40 = vpack.c.bf16 %v1381_v33, %v1377_v46 }
 0x1ff   :  { %4488 = vmatmul.mubr.bf16.gmra.mrb[72].mxu0 %v1537_v14 }
 0x200   :  { %4536 = vmatpush3.bf16.xpose.msra.mxu0 %v5311_v59  ;;  %4520 = vmatmul.mubr.bf16.gmra.mrb[72].mxu1 %v1538_v40 }
 0x201   :  { %4537 = vmatprep.subr.bf16.mxu0 %v5309_v57  ;;  %4568 = vmatpush3.bf16.xpose.msra.mxu1 %v5311_v59 }
 0x202   :  { %4569 = vmatprep.subr.bf16.mxu1 %v5309_v57  ;;  %v1385_v63 = vpop.f32.mrb[56].mxu0  ;;  %v5511_v23 = vpop.f32.mrb[56].mxu1 }
 0x203   :  { %v1387_v43 = vpop.f32.mrb[57].mxu0  ;;  %v5513_v4 = vpop.f32.mrb[57].mxu1 }
 0x204   :  { %v1389_v46 = vpop.f32.mrb[58].mxu0  ;;  %v5515_v33 = vpop.f32.mrb[58].mxu1 }
 0x205   :  { %v1541_v11 = vpack.c.bf16 %v1389_v46, %v1385_v63  ;;  %v1391_v40 = vpop.f32.mrb[59].mxu0  ;;  %v5519_v45 = vpop.f32.mrb[59].mxu1 }
 0x206   :  { %v1542_v12 = vpack.c.bf16 %v1391_v40, %v1387_v43 }
 0x207   :  { %4491 = vmatprep.mubr.bf16.mxu0 %v1541_v11 }
 0x208   :  { %4538 = vmatpush3.bf16.xpose.msra.mxu0 %v5309_v57  ;;  %4523 = vmatprep.mubr.bf16.mxu1 %v1542_v12 }
 0x209   :  { %4539 = vmatprep.subr.bf16.mxu0 %v5335_v50  ;;  %4570 = vmatpush3.bf16.xpose.msra.mxu1 %v5309_v57 }
 0x20a   :  { %4571 = vmatprep.subr.bf16.mxu1 %v5335_v50  ;;  %v1395_v63 = vpop.f32.mrb[60].mxu0  ;;  %v5527_v46 = vpop.f32.mrb[60].mxu1 }
 0x20b   :  { %v1397_v14 = vpop.f32.mrb[61].mxu0  ;;  %v5529_v51 = vpop.f32.mrb[61].mxu1 }
 0x20c   :  { %v1399_v43 = vpop.f32.mrb[62].mxu0  ;;  %v5531_v40 = vpop.f32.mrb[62].mxu1 }
 0x20d   :  { %v1545_v59 = vpack.c.bf16 %v1399_v43, %v1395_v63  ;;  %v1547_v11 = vpack.c.bf16 %v5531_v40, %v5527_v46  ;;  %v1401_v12 = vpop.f32.mrb[63].mxu0  ;;  %v5535_v37 = vpop.f32.mrb[63].mxu1  ;;  %v6074_v63 = vpack.c.bf16 %v5427_v3, %v5421_v58  ;;  %v4834_v58 = vld [vmem:[%s6043_s6] ss:$16 sps:$4 sm:$0xff]   ;;  %v6078_v3 = vpack.c.bf16 %v5455_v54, %v5449_v5 }
 0x20e   :  { %v1546_v52 = vpack.c.bf16 %v1401_v12, %v1397_v14  ;;  %v1548_v57 = vpack.c.bf16 %v5535_v37, %v5529_v51  ;;  %v6080_v5 = vpack.c.bf16 %v5483_v32, %v5479_v61  ;;  %v6081_v54 = vpack.c.bf16 %v5471_v36, %v5465_v35  ;;  %v4843_v36 = vld [vmem:[%s6043_s6 + $0x84] ss:$16 sps:$4 sm:$0xff]   ;;  %v4846_v35 = vld [vmem:[%s6043_s6 + $0xa0] ss:$16 sps:$4 sm:$0xff]  }
 0x20f   :  { %4492 = vmatmul.mubr.bf16.gmra.mrb[76].mxu0 %v1545_v59 }
 0x210   :  { %4540 = vmatpush3.bf16.xpose.msra.mxu0 %v5335_v50  ;;  %4524 = vmatmul.mubr.bf16.gmra.mrb[76].mxu1 %v1546_v52  ;;  %v4832_v52 = vld [vmem:[%s6043_s6 + $0x4] ss:$16 sps:$4 sm:$0xff]  }
 0x211   :  { %4541 = vmatprep.subr.bf16.mxu0 %v5333_v60  ;;  %4543 = vmatprep.mubr.bf16.mxu0 %v6073_v39  ;;  %v4833_v39 = vld [vmem:[%s6043_s6 + $0xc] ss:$16 sps:$4 sm:$0xff]  }
 0x212   :  { %4572 = vmatpush3.bf16.xpose.msra.mxu1 %v5335_v50  ;;  %4575 = vmatprep.mubr.bf16.mxu1 %v6074_v63  ;;  %v6075_v50 = vpack.c.bf16 %v5435_v34, %v5431_v7  ;;  %v4836_v7 = vld [vmem:[%s6043_s6 + $0x8] ss:$16 sps:$4 sm:$0xff]   ;;  %v4837_v34 = vld [vmem:[%s6043_s6 + $0x2c] ss:$16 sps:$4 sm:$0xff]  }
 0x213   :  { %4573 = vmatprep.subr.bf16.mxu1 %v5333_v60 }
 0x218   :  { %4542 = vmatpush3.bf16.xpose.msra.mxu0 %v5333_v60 }
 0x219   :  { %2277 = vmatprep.subr.bf16.mxu0 %v4832_v52 }
 0x21a   :  { %4574 = vmatpush3.bf16.xpose.msra.mxu1 %v5333_v60  ;;  %v6077_v60 = vpack.c.bf16 %v5439_v49, %v5433_v22  ;;  %v4838_v22 = vld [vmem:[%s6043_s6 + $0x20] ss:$16 sps:$4 sm:$0xff]   ;;  %v4839_v49 = vld [vmem:[%s6043_s6 + $0x44] ss:$16 sps:$4 sm:$0xff]  }
 0x21b   :  { %2390 = vmatprep.subr.bf16.mxu1 %v4833_v39 }
 0x21f   :  { %4544 = vmatmul.mubr.bf16.vlgmr.msra.gmra.mrb[80].mxu0 %v6075_v50 }
 0x220   :  { %4547 = vmatprep.mubr.bf16.mxu0 %v6076_v55  ;;  %2278 = vmatpush1.bf16.msra.mxu0 %v4834_v58 }
 0x221   :  { %4576 = vmatmul.mubr.bf16.vlgmr.msra.gmra.mrb[80].mxu1 %v6077_v60  ;;  %2279 = vmatprep.subr.bf16.mxu0 %v4835_v1 }
 0x222   :  { %4579 = vmatprep.mubr.bf16.mxu1 %v6078_v3  ;;  %2391 = vmatpush1.bf16.msra.mxu1 %v4836_v7 }
 0x223   :  { %2392 = vmatprep.subr.bf16.mxu1 %v4837_v34 }
 0x224   :  { %2280 = vmatpush1.bf16.msra.mxu0 %v4838_v22 }
 0x225   :  { %2281 = vmatprep.subr.bf16.mxu0 %v4839_v49 }
 0x226   :  { %2393 = vmatpush1.bf16.msra.mxu1 %v5107_v8  ;;  %v4841_v8 = vld [vmem:[%s6043_s6 + $0x64] ss:$16 sps:$4 sm:$0xff]  }
 0x227   :  { %4548 = vmatmul.mubr.bf16.gmra.mrb[84].mxu0 %v6079_v62  ;;  %2394 = vmatprep.subr.bf16.mxu1 %v5112_v9  ;;  %v6082_v9 = vpack.c.bf16 %v5487_v38, %v5481_v10  ;;  %v6083_v38 = vpack.c.bf16 %v5499_v6, %v5495_v56  ;;  %v6085_v10 = vpack.c.bf16 %v5503_v53, %v5497_v48 }
 0x228   :  { %4551 = vmatprep.mubr.bf16.mxu0 %v6080_v5  ;;  %2282 = vmatpush1.bf16.msra.mxu0 %v4840_v18 }
 0x229   :  { %4580 = vmatmul.mubr.bf16.gmra.mrb[84].mxu1 %v6081_v54  ;;  %2283 = vmatprep.subr.bf16.mxu0 %v4841_v8 }
 0x22a   :  { %4583 = vmatprep.mubr.bf16.mxu1 %v6082_v9  ;;  %2395 = vmatpush1.bf16.msra.mxu1 %v5127_v13  ;;  %v6084_v13 = vpack.c.bf16 %v5515_v33, %v5511_v23 }
 0x22b   :  { %2396 = vmatprep.subr.bf16.mxu1 %v5136_v15  ;;  %v4844_v15 = vld [vmem:[%s6043_s6 + $0x80] ss:$16 sps:$4 sm:$0xff]  }
 0x22c   :  { %2284 = vmatpush1.bf16.msra.mxu0 %v4842_v42 }
 0x22d   :  { %2285 = vmatprep.subr.bf16.mxu0 %v4843_v36 }
 0x22e   :  { %2397 = vmatpush1.bf16.msra.mxu1 %v5142_v16  ;;  %v4845_v16 = vld [vmem:[%s6043_s6 + $0xa4] ss:$16 sps:$4 sm:$0xff]  }
 0x22f   :  { %4552 = vmatmul.mubr.bf16.gmra.mrb[88].mxu0 %v6083_v38  ;;  %2398 = vmatprep.subr.bf16.mxu1 %v5148_v17  ;;  %v6086_v17 = vpack.c.bf16 %v5519_v45, %v5513_v4 }
 0x230   :  { %4555 = vmatprep.mubr.bf16.mxu0 %v6084_v13  ;;  %2286 = vmatpush1.bf16.msra.mxu0 %v4844_v15 }
 0x231   :  { %4584 = vmatmul.mubr.bf16.gmra.mrb[88].mxu1 %v6085_v10  ;;  %2287 = vmatprep.subr.bf16.mxu0 %v4845_v16 }
 0x232   :  { %4587 = vmatprep.mubr.bf16.mxu1 %v6086_v17  ;;  %2399 = vmatpush1.bf16.msra.mxu1 %v5157_v19  ;;  %v6087_v19 = vmov 0  }
 0x233   :  { %2400 = vmatprep.subr.bf16.mxu1 %v5163_v20  ;;  %v6088_v20 = vld [vmem:[#allocation10_spill] sm:$0xff] }
 0x234   :  { %2288 = vmatpush1.bf16.msra.mxu0 %v4846_v35 }
 0x235   :  { %2289 = vmatprep.subr.bf16.mxu0 %v5182_v24  ;;  %v6090_v24 = vld [vmem:[#allocation8_spill] sm:$0xff] }
 0x236   :  { %2401 = vmatpush1.bf16.msra.mxu1 %v5169_v21  ;;  %v6089_v21 = vld [vmem:[#allocation5_spill] sm:$0xff] }
 0x237   :  { %4556 = vmatmul.mubr.bf16.gmra.mrb[92].mxu0 %v1547_v11  ;;  %2402 = vmatprep.subr.bf16.mxu1 %v5197_v27  ;;  %v6093_v27 = vld [vmem:[#allocation7_spill] sm:$0xff] }
 0x238   :  { %2290 = vmatpush1.bf16.msra.mxu0 %v5187_v25  ;;  %2309 = vmatprep.mubr.bf16.mxu0 %v6087_v19  ;;  %v6091_v25 = vld [vmem:[#allocation4_spill] sm:$0xff] }
 0x239   :  { %4588 = vmatmul.mubr.bf16.gmra.mrb[92].mxu1 %v1548_v57  ;;  %2291 = vmatprep.subr.bf16.mxu0 %v5206_v28  ;;  %v6094_v28 = vld [vmem:[#allocation12_spill] sm:$0xff] }
 0x23a   :  { %2403 = vmatpush1.bf16.msra.mxu1 %v5192_v26  ;;  %2422 = vmatprep.mubr.bf16.mxu1 %v6087_v19  ;;  %v6092_v26 = vld [vmem:[#allocation13_spill] sm:$0xff] }
 0x23b   :  { %2404 = vmatprep.subr.bf16.mxu1 %v5211_v29  ;;  %v6095_v29 = vld [vmem:[#allocation6_spill] sm:$0xff] }
 0x23c   :  { %2292 = vmatpush1.bf16.msra.mxu0 %v5216_v30  ;;  %v6096_v30 = vld [vmem:[#allocation15_spill] sm:$0xff] }
 0x23d   :  { %4591 = vmatprep.subr.bf16.mxu0 %v5363_v47 }
 0x23e   :  { %2405 = vmatpush1.bf16.msra.mxu1 %v5221_v31  ;;  %v6097_v31 = vld [vmem:[#allocation11_spill] sm:$0xff] }
 0x23f   :  { %4623 = vmatprep.subr.bf16.mxu1 %v5363_v47  ;;  %2310 = vmatmul.mubr.bf16.vlgmr.msra.gmra.mrb[96].mxu0 %v5316_v2 }
 0x240   :  { %2319 = vmatprep.mubr.bf16.mxu0 %v6087_v19 }
 0x241   :  { %2423 = vmatmul.mubr.bf16.vlgmr.msra.gmra.mrb[96].mxu1 %v5316_v2  ;;  %v6099_v2 = vld [vmem:[#allocation9_spill] sm:$0xff] }
 0x242   :  { %2432 = vmatprep.mubr.bf16.mxu1 %v6087_v19 }
 0x245   :  { %4592 = vmatpush3.bf16.xpose.msra.mxu0 %v5363_v47 }
 0x246   :  { %4593 = vmatprep.subr.bf16.mxu0 %v5359_v41 }
 0x247   :  { %4624 = vmatpush3.bf16.xpose.msra.mxu1 %v5363_v47  ;;  %2320 = vmatmul.mubr.bf16.gmra.mrb[100].mxu0 %v5313_v0 }
 0x248   :  { %4625 = vmatprep.subr.bf16.mxu1 %v5359_v41  ;;  %2329 = vmatprep.mubr.bf16.mxu0 %v6087_v19 }
 0x249   :  { %2433 = vmatmul.mubr.bf16.gmra.mrb[100].mxu1 %v5313_v0  ;;  %v6098_v0 = vld [vmem:[#allocation14_spill] sm:$0xff] }
 0x24a   :  { %2442 = vmatprep.mubr.bf16.mxu1 %v6087_v19 }
 0x24d   :  { %4594 = vmatpush3.bf16.xpose.msra.mxu0 %v5359_v41 }
 0x24e   :  { %4595 = vmatprep.subr.bf16.mxu0 %v6088_v20 }
 0x24f   :  { %4626 = vmatpush3.bf16.xpose.msra.mxu1 %v5359_v41  ;;  %2330 = vmatmul.mubr.bf16.gmra.mrb[104].mxu0 %v6089_v21 }
 0x250   :  { %4627 = vmatprep.subr.bf16.mxu1 %v6088_v20  ;;  %2339 = vmatprep.mubr.bf16.mxu0 %v6087_v19 }
 0x251   :  { %2443 = vmatmul.mubr.bf16.gmra.mrb[104].mxu1 %v6089_v21 }
 0x252   :  { %2452 = vmatprep.mubr.bf16.mxu1 %v6087_v19 }
 0x255   :  { %4596 = vmatpush3.bf16.xpose.msra.mxu0 %v6088_v20 }
 0x256   :  { %4597 = vmatprep.subr.bf16.mxu0 %v6090_v24 }
 0x257   :  { %4628 = vmatpush3.bf16.xpose.msra.mxu1 %v6088_v20  ;;  %2340 = vmatmul.mubr.bf16.gmra.mrb[108].mxu0 %v6091_v25 }
 0x258   :  { %4629 = vmatprep.subr.bf16.mxu1 %v6090_v24  ;;  %2349 = vmatprep.mubr.bf16.mxu0 %v6087_v19 }
 0x259   :  { %2453 = vmatmul.mubr.bf16.gmra.mrb[108].mxu1 %v6091_v25 }
 0x25a   :  { %2462 = vmatprep.mubr.bf16.mxu1 %v6087_v19 }
 0x25d   :  { %4598 = vmatpush3.bf16.xpose.msra.mxu0 %v6090_v24 }
 0x25e   :  { %4599 = vmatprep.subr.bf16.mxu0 %v6092_v26 }
 0x25f   :  { %4630 = vmatpush3.bf16.xpose.msra.mxu1 %v6090_v24  ;;  %2350 = vmatmul.mubr.bf16.gmra.mrb[112].mxu0 %v6093_v27 }
 0x260   :  { %4631 = vmatprep.subr.bf16.mxu1 %v6092_v26  ;;  %2359 = vmatprep.mubr.bf16.mxu0 %v6087_v19 }
 0x261   :  { %2463 = vmatmul.mubr.bf16.gmra.mrb[112].mxu1 %v6093_v27 }
 0x262   :  { %2472 = vmatprep.mubr.bf16.mxu1 %v6087_v19 }
 0x265   :  { %4600 = vmatpush3.bf16.xpose.msra.mxu0 %v6092_v26 }
 0x266   :  { %4601 = vmatprep.subr.bf16.mxu0 %v6094_v28 }
 0x267   :  { %4632 = vmatpush3.bf16.xpose.msra.mxu1 %v6092_v26  ;;  %2360 = vmatmul.mubr.bf16.gmra.mrb[116].mxu0 %v6095_v29 }
 0x268   :  { %4633 = vmatprep.subr.bf16.mxu1 %v6094_v28  ;;  %2369 = vmatprep.mubr.bf16.mxu0 %v6087_v19 }
 0x269   :  { %2473 = vmatmul.mubr.bf16.gmra.mrb[116].mxu1 %v6095_v29 }
 0x26a   :  { %2482 = vmatprep.mubr.bf16.mxu1 %v6087_v19 }
 0x26d   :  { %4602 = vmatpush3.bf16.xpose.msra.mxu0 %v6094_v28 }
 0x26e   :  { %4603 = vmatprep.subr.bf16.mxu0 %v6096_v30 }
 0x26f   :  { %4634 = vmatpush3.bf16.xpose.msra.mxu1 %v6094_v28  ;;  %2370 = vmatmul.mubr.bf16.gmra.mrb[120].mxu0 %v6097_v31 }
 0x270   :  { %4635 = vmatprep.subr.bf16.mxu1 %v6096_v30  ;;  %2379 = vmatprep.mubr.bf16.mxu0 %v6087_v19 }
 0x271   :  { %2483 = vmatmul.mubr.bf16.gmra.mrb[120].mxu1 %v6097_v31 }
 0x272   :  { %2492 = vmatprep.mubr.bf16.mxu1 %v6087_v19 }
 0x275   :  { %4604 = vmatpush3.bf16.xpose.msra.mxu0 %v6096_v30 }
 0x276   :  { %4605 = vmatprep.subr.bf16.mxu0 %v6098_v0 }
 0x277   :  { %4636 = vmatpush3.bf16.xpose.msra.mxu1 %v6096_v30  ;;  %2380 = vmatmul.mubr.bf16.gmra.mrb[124].mxu0 %v6099_v2 }
 0x278   :  { %4637 = vmatprep.subr.bf16.mxu1 %v6098_v0 }
 0x279   :  { %2493 = vmatmul.mubr.bf16.gmra.mrb[124].mxu1 %v6099_v2 }
 0x27d   :  { %4606 = vmatpush3.bf16.xpose.msra.mxu0 %v6098_v0 }
 0x27e   :  { %4655 = vmatprep.subr.bf16.mxu0 %v5363_v47 }
 0x27f   :  { %4638 = vmatpush3.bf16.xpose.msra.mxu1 %v6098_v0 }
 0x280   :  { %4687 = vmatprep.subr.bf16.mxu1 %v5363_v47 }
 0x2b2   :  { %v4481_v51 = vpop.f32.mrb[64].mxu0 }
 0x2b3   :  { %v1591_v45 = vpop.f32.mrb[65].mxu0  ;;  %v4513_v37 = vpop.f32.mrb[64].mxu1 }
 0x2b4   :  { %v4482_v48 = vpop.f32.mrb[66].mxu0  ;;  %v1768_v4 = vpop.f32.mrb[65].mxu1 }
 0x2b5   :  { %v3768_v53 = vpack.c.bf16 %v4482_v48, %v4481_v51  ;;  %v1594_v44 = vpop.f32.mrb[67].mxu0  ;;  %v4514_v61 = vpop.f32.mrb[66].mxu1 }
 0x2b6   :  { %v3763_v32 = vpack.c.bf16 %v1594_v44, %v1591_v45  ;;  %v3808_v56 = vpack.c.bf16 %v4514_v61, %v4513_v37  ;;  %v1771_v6 = vpop.f32.mrb[67].mxu1 }
 0x2b7   :  { %4080 = vst [vmem:[%s6046_s7 + $0x8] sm:$0xff] %v3768_v53   ;;  %v3803_v23 = vpack.c.bf16 %v1771_v6, %v1768_v4 }
 0x2b8   :  { %3764 = vst [vmem:[%s6046_s7] sm:$0xff] %v3763_v32   ;;  %4088 = vst [vmem:[%s6046_s7 + $0x48] sm:$0xff] %v3808_v56  }
 0x2b9   :  { %4087 = vst [vmem:[%s6046_s7 + $0x40] sm:$0xff] %v3803_v23  }
 0x2c2   :  { %v4485_v33 = vpop.f32.mrb[68].mxu0 }
 0x2c3   :  { %v1607_v14 = vpop.f32.mrb[69].mxu0  ;;  %v4517_v59 = vpop.f32.mrb[68].mxu1 }
 0x2c4   :  { %v4486_v46 = vpop.f32.mrb[70].mxu0  ;;  %v1784_v43 = vpop.f32.mrb[69].mxu1 }
 0x2c5   :  { %v3778_v40 = vpack.c.bf16 %v4486_v46, %v4485_v33  ;;  %v1610_v11 = vpop.f32.mrb[71].mxu0  ;;  %v4518_v12 = vpop.f32.mrb[70].mxu1 }
 0x2c6   :  { %v3773_v57 = vpack.c.bf16 %v1610_v11, %v1607_v14  ;;  %v3818_v63 = vpack.c.bf16 %v4518_v12, %v4517_v59  ;;  %v1787_v52 = vpop.f32.mrb[71].mxu1 }
 0x2c7   :  { %4082 = vst [vmem:[%s6046_s7 + $0x18] sm:$0xff] %v3778_v40   ;;  %v3813_v39 = vpack.c.bf16 %v1787_v52, %v1784_v43 }
 0x2c8   :  { %4081 = vst [vmem:[%s6046_s7 + $0x10] sm:$0xff] %v3773_v57   ;;  %4090 = vst [vmem:[%s6046_s7 + $0x58] sm:$0xff] %v3818_v63  }
 0x2c9   :  { %4089 = vst [vmem:[%s6046_s7 + $0x50] sm:$0xff] %v3813_v39  }
 0x2d2   :  { %v4489_v50 = vpop.f32.mrb[72].mxu0 }
 0x2d3   :  { %v1623_v55 = vpop.f32.mrb[73].mxu0  ;;  %v4521_v58 = vpop.f32.mrb[72].mxu1 }
 0x2d4   :  { %v4490_v60 = vpop.f32.mrb[74].mxu0  ;;  %v1800_v1 = vpop.f32.mrb[73].mxu1 }
 0x2d5   :  { %v3788_v3 = vpack.c.bf16 %v4490_v60, %v4489_v50  ;;  %v1626_v7 = vpop.f32.mrb[75].mxu0  ;;  %v4522_v34 = vpop.f32.mrb[74].mxu1 }
 0x2d6   :  { %v3783_v22 = vpack.c.bf16 %v1626_v7, %v1623_v55  ;;  %v3828_v49 = vpack.c.bf16 %v4522_v34, %v4521_v58  ;;  %v1803_v62 = vpop.f32.mrb[75].mxu1 }
 0x2d7   :  { %4084 = vst [vmem:[%s6046_s7 + $0x28] sm:$0xff] %v3788_v3   ;;  %v3823_v5 = vpack.c.bf16 %v1803_v62, %v1800_v1 }
 0x2d8   :  { %4083 = vst [vmem:[%s6046_s7 + $0x20] sm:$0xff] %v3783_v22   ;;  %4092 = vst [vmem:[%s6046_s7 + $0x68] sm:$0xff] %v3828_v49  }
 0x2d9   :  { %4091 = vst [vmem:[%s6046_s7 + $0x60] sm:$0xff] %v3823_v5  }
 0x2e2   :  { %v4493_v18 = vpop.f32.mrb[76].mxu0 }
 0x2e3   :  { %v1639_v54 = vpop.f32.mrb[77].mxu0  ;;  %v4525_v8 = vpop.f32.mrb[76].mxu1 }
 0x2e4   :  { %v4494_v9 = vpop.f32.mrb[78].mxu0  ;;  %v1816_v42 = vpop.f32.mrb[77].mxu1 }
 0x2e5   :  { %v3798_v36 = vpack.c.bf16 %v4494_v9, %v4493_v18  ;;  %v1642_v38 = vpop.f32.mrb[79].mxu0  ;;  %v4526_v13 = vpop.f32.mrb[78].mxu1 }
 0x2e6   :  { %v3793_v15 = vpack.c.bf16 %v1642_v38, %v1639_v54  ;;  %v3838_v10 = vpack.c.bf16 %v4526_v13, %v4525_v8  ;;  %v1819_v16 = vpop.f32.mrb[79].mxu1 }
 0x2e7   :  { %4086 = vst [vmem:[%s6046_s7 + $0x38] sm:$0xff] %v3798_v36   ;;  %v3833_v17 = vpack.c.bf16 %v1819_v16, %v1816_v42 }
 0x2e8   :  { %4085 = vst [vmem:[%s6046_s7 + $0x30] sm:$0xff] %v3793_v15   ;;  %4094 = vst [vmem:[%s6046_s7 + $0x78] sm:$0xff] %v3838_v10  }
 0x2e9   :  { %4093 = vst [vmem:[%s6046_s7 + $0x70] sm:$0xff] %v3833_v17  }
 0x2f2   :  { %v4545_v35 = vpop.f32.mrb[80].mxu0 }
 0x2f3   :  { %v1946_v19 = vpop.f32.mrb[81].mxu0 }
 0x2f4   :  { %v4577_v21 = vpop.f32.mrb[80].mxu1  ;;  %v4546_v25 = vpop.f32.mrb[82].mxu0 }
 0x2f5   :  { %v3848_v27 = vpack.c.bf16 %v4546_v25, %v4545_v35  ;;  %v2124_v29 = vpop.f32.mrb[81].mxu1  ;;  %v1949_v31 = vpop.f32.mrb[83].mxu0 }
 0x2f6   :  { %v3843_v2 = vpack.c.bf16 %v1949_v31, %v1946_v19  ;;  %v4578_v51 = vpop.f32.mrb[82].mxu1 }
 0x2f7   :  { %4096 = vst [vmem:[%s6046_s7 + $0x88] sm:$0xff] %v3848_v27   ;;  %v3888_v45 = vpack.c.bf16 %v4578_v51, %v4577_v21  ;;  %v2127_v37 = vpop.f32.mrb[83].mxu1 }
 0x2f8   :  { %4095 = vst [vmem:[%s6046_s7 + $0x80] sm:$0xff] %v3843_v2   ;;  %v3883_v48 = vpack.c.bf16 %v2127_v37, %v2124_v29 }
 0x2f9   :  { %4104 = vst [vmem:[%s6046_s7 + $0xc8] sm:$0xff] %v3888_v45  }
 0x2fa   :  { %4103 = vst [vmem:[%s6046_s7 + $0xc0] sm:$0xff] %v3883_v48   ;;  %v4549_v4 = vpop.f32.mrb[84].mxu0 }
 0x2fb   :  { %v1962_v53 = vpop.f32.mrb[85].mxu0 }
 0x2fc   :  { %v4581_v44 = vpop.f32.mrb[84].mxu1  ;;  %v4550_v61 = vpop.f32.mrb[86].mxu0 }
 0x2fd   :  { %v3858_v32 = vpack.c.bf16 %v4550_v61, %v4549_v4  ;;  %v2140_v56 = vpop.f32.mrb[85].mxu1  ;;  %v1965_v6 = vpop.f32.mrb[87].mxu0 }
 0x2fe   :  { %v3853_v23 = vpack.c.bf16 %v1965_v6, %v1962_v53  ;;  %v4582_v33 = vpop.f32.mrb[86].mxu1 }
 0x2ff   :  { %4098 = vst [vmem:[%s6046_s7 + $0x98] sm:$0xff] %v3858_v32   ;;  %v3898_v14 = vpack.c.bf16 %v4582_v33, %v4581_v44  ;;  %v2143_v59 = vpop.f32.mrb[87].mxu1 }
 0x300   :  { %4097 = vst [vmem:[%s6046_s7 + $0x90] sm:$0xff] %v3853_v23   ;;  %v3893_v46 = vpack.c.bf16 %v2143_v59, %v2140_v56 }
 0x301   :  { %4106 = vst [vmem:[%s6046_s7 + $0xd8] sm:$0xff] %v3898_v14  }
 0x302   :  { %4105 = vst [vmem:[%s6046_s7 + $0xd0] sm:$0xff] %v3893_v46   ;;  %v4553_v43 = vpop.f32.mrb[88].mxu0 }
 0x303   :  { %v1978_v40 = vpop.f32.mrb[89].mxu0 }
 0x304   :  { %v4585_v11 = vpop.f32.mrb[88].mxu1  ;;  %v4554_v12 = vpop.f32.mrb[90].mxu0 }
 0x305   :  { %v3868_v57 = vpack.c.bf16 %v4554_v12, %v4553_v43  ;;  %v2156_v63 = vpop.f32.mrb[89].mxu1  ;;  %v1981_v52 = vpop.f32.mrb[91].mxu0 }
 0x306   :  { %v3863_v39 = vpack.c.bf16 %v1981_v52, %v1978_v40  ;;  %v4586_v50 = vpop.f32.mrb[90].mxu1 }
 0x307   :  { %4100 = vst [vmem:[%s6046_s7 + $0xa8] sm:$0xff] %v3868_v57   ;;  %v3908_v55 = vpack.c.bf16 %v4586_v50, %v4585_v11  ;;  %v2159_v58 = vpop.f32.mrb[91].mxu1 }
 0x308   :  { %4099 = vst [vmem:[%s6046_s7 + $0xa0] sm:$0xff] %v3863_v39   ;;  %v3903_v60 = vpack.c.bf16 %v2159_v58, %v2156_v63 }
 0x309   :  { %4108 = vst [vmem:[%s6046_s7 + $0xe8] sm:$0xff] %v3908_v55  }
 0x30a   :  { %4107 = vst [vmem:[%s6046_s7 + $0xe0] sm:$0xff] %v3903_v60   ;;  %v4557_v1 = vpop.f32.mrb[92].mxu0 }
 0x30b   :  { %v1994_v3 = vpop.f32.mrb[93].mxu0 }
 0x30c   :  { %v4589_v7 = vpop.f32.mrb[92].mxu1  ;;  %v4558_v34 = vpop.f32.mrb[94].mxu0 }
 0x30d   :  { %v3878_v22 = vpack.c.bf16 %v4558_v34, %v4557_v1  ;;  %v2172_v49 = vpop.f32.mrb[93].mxu1  ;;  %v1997_v62 = vpop.f32.mrb[95].mxu0 }
 0x30e   :  { %v3873_v5 = vpack.c.bf16 %v1997_v62, %v1994_v3  ;;  %v4590_v18 = vpop.f32.mrb[94].mxu1 }
 0x30f   :  { %4102 = vst [vmem:[%s6046_s7 + $0xb8] sm:$0xff] %v3878_v22   ;;  %v3918_v54 = vpack.c.bf16 %v4590_v18, %v4589_v7  ;;  %v2175_v8 = vpop.f32.mrb[95].mxu1 }
 0x310   :  { %4101 = vst [vmem:[%s6046_s7 + $0xb0] sm:$0xff] %v3873_v5   ;;  %v3913_v9 = vpack.c.bf16 %v2175_v8, %v2172_v49 }
 0x311   :  { %4110 = vst [vmem:[%s6046_s7 + $0xf8] sm:$0xff] %v3918_v54  }
 0x312   :  { %4109 = vst [vmem:[%s6046_s7 + $0xf0] sm:$0xff] %v3913_v9   ;;  %v2311_v42 = vpop.f32.mrb[96].mxu0 }
 0x313   :  { %v2313_v36 = vpop.f32.mrb[97].mxu0 }
 0x314   :  { %v5817_v38 = vpop.f32.mrb[96].mxu1  ;;  %v2315_v13 = vpop.f32.mrb[98].mxu0 }
 0x315   :  { %v2503_v15 = vpack.c.bf16 %v2315_v13, %v2311_v42  ;;  %v5819_v10 = vpop.f32.mrb[97].mxu1  ;;  %v2317_v16 = vpop.f32.mrb[99].mxu0 }
 0x316   :  { %v2504_v17 = vpack.c.bf16 %v2317_v16, %v2313_v36  ;;  %v5821_v35 = vpop.f32.mrb[98].mxu1 }
 0x317   :  { %v2505_v19 = vpack.c.bf16 %v5821_v35, %v5817_v38  ;;  %v5825_v21 = vpop.f32.mrb[99].mxu1  ;;  %4607 = vmatprep.mubr.bf16.mxu0 %v2503_v15 }
 0x318   :  { %v2506_v25 = vpack.c.bf16 %v5825_v21, %v5819_v10  ;;  %4639 = vmatprep.mubr.bf16.mxu1 %v2504_v17 }
 0x31a   :  { %v2321_v27 = vpop.f32.mrb[100].mxu0 }
 0x31b   :  { %v2323_v29 = vpop.f32.mrb[101].mxu0 }
 0x31c   :  { %v5829_v31 = vpop.f32.mrb[100].mxu1  ;;  %v2325_v2 = vpop.f32.mrb[102].mxu0 }
 0x31d   :  { %v2507_v51 = vpack.c.bf16 %v2325_v2, %v2321_v27  ;;  %v5831_v45 = vpop.f32.mrb[101].mxu1  ;;  %v2327_v37 = vpop.f32.mrb[103].mxu0 }
 0x31e   :  { %v2508_v48 = vpack.c.bf16 %v2327_v37, %v2323_v29  ;;  %v5833_v4 = vpop.f32.mrb[102].mxu1 }
 0x31f   :  { %v2509_v53 = vpack.c.bf16 %v5833_v4, %v5829_v31  ;;  %v5837_v44 = vpop.f32.mrb[103].mxu1  ;;  %4608 = vmatmul.mubr.bf16.vlgmr.msra.gmra.mrb[128].mxu0 %v2507_v51 }
 0x320   :  { %v2510_v61 = vpack.c.bf16 %v5837_v44, %v5831_v45  ;;  %4656 = vmatpush3.bf16.xpose.msra.mxu0 %v5363_v47  ;;  %4640 = vmatmul.mubr.bf16.vlgmr.msra.gmra.mrb[128].mxu1 %v2508_v48 }
 0x321   :  { %4657 = vmatprep.subr.bf16.mxu0 %v5359_v41  ;;  %4688 = vmatpush3.bf16.xpose.msra.mxu1 %v5363_v47 }
 0x322   :  { %4689 = vmatprep.subr.bf16.mxu1 %v5359_v41  ;;  %v2331_v32 = vpop.f32.mrb[104].mxu0 }
 0x323   :  { %v2333_v56 = vpop.f32.mrb[105].mxu0 }
 0x324   :  { %v5845_v6 = vpop.f32.mrb[104].mxu1  ;;  %v2335_v23 = vpop.f32.mrb[106].mxu0 }
 0x325   :  { %v2511_v33 = vpack.c.bf16 %v2335_v23, %v2331_v32  ;;  %v5847_v14 = vpop.f32.mrb[105].mxu1  ;;  %v2337_v59 = vpop.f32.mrb[107].mxu0 }
 0x326   :  { %v2512_v46 = vpack.c.bf16 %v2337_v59, %v2333_v56  ;;  %v5849_v43 = vpop.f32.mrb[106].mxu1 }
 0x327   :  { %v2513_v40 = vpack.c.bf16 %v5849_v43, %v5845_v6  ;;  %v5853_v11 = vpop.f32.mrb[107].mxu1  ;;  %4611 = vmatprep.mubr.bf16.mxu0 %v2511_v33 }
 0x328   :  { %v2514_v47 = vpack.c.bf16 %v5853_v11, %v5847_v14  ;;  %4658 = vmatpush3.bf16.xpose.msra.mxu0 %v5359_v41  ;;  %4643 = vmatprep.mubr.bf16.mxu1 %v2512_v46 }
 0x329   :  { %4659 = vmatprep.subr.bf16.mxu0 %v6088_v20  ;;  %4690 = vmatpush3.bf16.xpose.msra.mxu1 %v5359_v41 }
 0x32a   :  { %4691 = vmatprep.subr.bf16.mxu1 %v6088_v20  ;;  %v2341_v12 = vpop.f32.mrb[108].mxu0 }
 0x32b   :  { %v2343_v57 = vpop.f32.mrb[109].mxu0 }
 0x32c   :  { %v5861_v63 = vpop.f32.mrb[108].mxu1  ;;  %v2345_v52 = vpop.f32.mrb[110].mxu0 }
 0x32d   :  { %v2515_v39 = vpack.c.bf16 %v2345_v52, %v2341_v12  ;;  %v5863_v50 = vpop.f32.mrb[109].mxu1  ;;  %v2347_v55 = vpop.f32.mrb[111].mxu0 }
 0x32e   :  { %v2516_v58 = vpack.c.bf16 %v2347_v55, %v2343_v57  ;;  %v5865_v60 = vpop.f32.mrb[110].mxu1 }
 0x32f   :  { %v2517_v1 = vpack.c.bf16 %v5865_v60, %v5861_v63  ;;  %v5869_v3 = vpop.f32.mrb[111].mxu1  ;;  %4612 = vmatmul.mubr.bf16.gmra.mrb[132].mxu0 %v2515_v39 }
 0x330   :  { %v2518_v41 = vpack.c.bf16 %v5869_v3, %v5863_v50  ;;  %4660 = vmatpush3.bf16.xpose.msra.mxu0 %v6088_v20  ;;  %4644 = vmatmul.mubr.bf16.gmra.mrb[132].mxu1 %v2516_v58 }
 0x331   :  { %4661 = vmatprep.subr.bf16.mxu0 %v6090_v24  ;;  %4692 = vmatpush3.bf16.xpose.msra.mxu1 %v6088_v20 }
 0x332   :  { %4693 = vmatprep.subr.bf16.mxu1 %v6090_v24  ;;  %v2351_v7 = vpop.f32.mrb[112].mxu0 }
 0x333   :  { %v2353_v34 = vpop.f32.mrb[113].mxu0 }
 0x334   :  { %v5877_v22 = vpop.f32.mrb[112].mxu1  ;;  %v2355_v49 = vpop.f32.mrb[114].mxu0 }
 0x335   :  { %v2519_v62 = vpack.c.bf16 %v2355_v49, %v2351_v7  ;;  %v5879_v5 = vpop.f32.mrb[113].mxu1  ;;  %v2357_v18 = vpop.f32.mrb[115].mxu0 }
 0x336   :  { %v2520_v54 = vpack.c.bf16 %v2357_v18, %v2353_v34  ;;  %v5881_v8 = vpop.f32.mrb[114].mxu1 }
 0x337   :  { %v2521_v9 = vpack.c.bf16 %v5881_v8, %v5877_v22  ;;  %v5885_v42 = vpop.f32.mrb[115].mxu1  ;;  %4615 = vmatprep.mubr.bf16.mxu0 %v2519_v62 }
 0x338   :  { %v2522_v20 = vpack.c.bf16 %v5885_v42, %v5879_v5  ;;  %4662 = vmatpush3.bf16.xpose.msra.mxu0 %v6090_v24  ;;  %4647 = vmatprep.mubr.bf16.mxu1 %v2520_v54 }
 0x339   :  { %4663 = vmatprep.subr.bf16.mxu0 %v6092_v26  ;;  %4694 = vmatpush3.bf16.xpose.msra.mxu1 %v6090_v24 }
 0x33a   :  { %4695 = vmatprep.subr.bf16.mxu1 %v6092_v26  ;;  %v2361_v36 = vpop.f32.mrb[116].mxu0 }
 0x33b   :  { %v2363_v13 = vpop.f32.mrb[117].mxu0 }
 0x33c   :  { %v5893_v15 = vpop.f32.mrb[116].mxu1  ;;  %v2365_v16 = vpop.f32.mrb[118].mxu0 }
 0x33d   :  { %v2523_v17 = vpack.c.bf16 %v2365_v16, %v2361_v36  ;;  %v5895_v27 = vpop.f32.mrb[117].mxu1  ;;  %v2367_v29 = vpop.f32.mrb[119].mxu0 }
 0x33e   :  { %v2524_v2 = vpack.c.bf16 %v2367_v29, %v2363_v13  ;;  %v2478_v51 = vpop.f32.mrb[118].mxu1 }
 0x33f   :  { %v2525_v37 = vpack.c.bf16 %v2478_v51, %v5893_v15  ;;  %v2480_v48 = vpop.f32.mrb[119].mxu1  ;;  %4616 = vmatmul.mubr.bf16.gmra.mrb[136].mxu0 %v2523_v17 }
 0x340   :  { %v2526_v32 = vpack.c.bf16 %v2480_v48, %v5895_v27  ;;  %4664 = vmatpush3.bf16.xpose.msra.mxu0 %v6092_v26  ;;  %4648 = vmatmul.mubr.bf16.gmra.mrb[136].mxu1 %v2524_v2 }
 0x341   :  { %4665 = vmatprep.subr.bf16.mxu0 %v6094_v28  ;;  %4696 = vmatpush3.bf16.xpose.msra.mxu1 %v6092_v26 }
 0x342   :  { %4697 = vmatprep.subr.bf16.mxu1 %v6094_v28  ;;  %v2371_v24 = vpop.f32.mrb[120].mxu0 }
 0x343   :  { %v2373_v56 = vpop.f32.mrb[121].mxu0 }
 0x344   :  { %v2484_v23 = vpop.f32.mrb[120].mxu1  ;;  %v2375_v33 = vpop.f32.mrb[122].mxu0 }
 0x345   :  { %v2527_v59 = vpack.c.bf16 %v2375_v33, %v2371_v24  ;;  %v2486_v46 = vpop.f32.mrb[121].mxu1  ;;  %v2377_v12 = vpop.f32.mrb[123].mxu0 }
 0x346   :  { %v2528_v57 = vpack.c.bf16 %v2377_v12, %v2373_v56  ;;  %v2488_v52 = vpop.f32.mrb[122].mxu1 }
 0x347   :  { %v2529_v39 = vpack.c.bf16 %v2488_v52, %v2484_v23  ;;  %v2490_v55 = vpop.f32.mrb[123].mxu1  ;;  %4619 = vmatprep.mubr.bf16.mxu0 %v2527_v59 }
 0x348   :  { %v2530_v58 = vpack.c.bf16 %v2490_v55, %v2486_v46  ;;  %4666 = vmatpush3.bf16.xpose.msra.mxu0 %v6094_v28  ;;  %4651 = vmatprep.mubr.bf16.mxu1 %v2528_v57 }
 0x349   :  { %4667 = vmatprep.subr.bf16.mxu0 %v6096_v30  ;;  %4698 = vmatpush3.bf16.xpose.msra.mxu1 %v6094_v28 }
 0x34a   :  { %4699 = vmatprep.subr.bf16.mxu1 %v6096_v30  ;;  %v2381_v26 = vpop.f32.mrb[124].mxu0 }
 0x34b   :  { %v2383_v7 = vpop.f32.mrb[125].mxu0 }
 0x34c   :  { %v2494_v34 = vpop.f32.mrb[124].mxu1  ;;  %v2385_v49 = vpop.f32.mrb[126].mxu0 }
 0x34d   :  { %v2531_v62 = vpack.c.bf16 %v2385_v49, %v2381_v26  ;;  %v2496_v18 = vpop.f32.mrb[125].mxu1  ;;  %v2387_v54 = vpop.f32.mrb[127].mxu0 }
 0x34e   :  { %v2532_v36 = vpack.c.bf16 %v2387_v54, %v2383_v7  ;;  %v2498_v13 = vpop.f32.mrb[126].mxu1 }
 0x34f   :  { %v2533_v15 = vpack.c.bf16 %v2498_v13, %v2494_v34  ;;  %v2500_v16 = vpop.f32.mrb[127].mxu1  ;;  %4620 = vmatmul.mubr.bf16.gmra.mrb[140].mxu0 %v2531_v62 }
 0x350   :  { %v2534_v17 = vpack.c.bf16 %v2500_v16, %v2496_v18  ;;  %4668 = vmatpush3.bf16.xpose.msra.mxu0 %v6096_v30  ;;  %4652 = vmatmul.mubr.bf16.gmra.mrb[140].mxu1 %v2532_v36 }
 0x351   :  { %4669 = vmatprep.subr.bf16.mxu0 %v6098_v0  ;;  %4671 = vmatprep.mubr.bf16.mxu0 %v2505_v19 }
 0x352   :  { %4700 = vmatpush3.bf16.xpose.msra.mxu1 %v6096_v30  ;;  %4703 = vmatprep.mubr.bf16.mxu1 %v2506_v25 }
 0x353   :  { %4701 = vmatprep.subr.bf16.mxu1 %v6098_v0 }
 0x358   :  { %4670 = vmatpush3.bf16.xpose.msra.mxu0 %v6098_v0 }
 0x35a   :  { %4702 = vmatpush3.bf16.xpose.msra.mxu1 %v6098_v0 }
 0x35f   :  { %4672 = vmatmul.mubr.bf16.vlgmr.msra.gmra.mrb[144].mxu0 %v2509_v53 }
 0x360   :  { %4675 = vmatprep.mubr.bf16.mxu0 %v2513_v40 }
 0x361   :  { %4704 = vmatmul.mubr.bf16.vlgmr.msra.gmra.mrb[144].mxu1 %v2510_v61 }
 0x362   :  { %4707 = vmatprep.mubr.bf16.mxu1 %v2514_v47 }
 0x367   :  { %4676 = vmatmul.mubr.bf16.gmra.mrb[148].mxu0 %v2517_v1 }
 0x368   :  { %4679 = vmatprep.mubr.bf16.mxu0 %v2521_v9 }
 0x369   :  { %4708 = vmatmul.mubr.bf16.gmra.mrb[148].mxu1 %v2518_v41 }
 0x36a   :  { %4711 = vmatprep.mubr.bf16.mxu1 %v2522_v20 }
 0x36f   :  { %4680 = vmatmul.mubr.bf16.gmra.mrb[152].mxu0 %v2525_v37 }
 0x370   :  { %4683 = vmatprep.mubr.bf16.mxu0 %v2529_v39 }
 0x371   :  { %4712 = vmatmul.mubr.bf16.gmra.mrb[152].mxu1 %v2526_v32 }
 0x372   :  { %4715 = vmatprep.mubr.bf16.mxu1 %v2530_v58 }
 0x377   :  { %4684 = vmatmul.mubr.bf16.gmra.mrb[156].mxu0 %v2533_v15 }
 0x379   :  { %4716 = vmatmul.mubr.bf16.gmra.mrb[156].mxu1 %v2534_v17 }
 0x3f2   :  { %v4609_v28 = vpop.f32.mrb[128].mxu0 }
 0x3f3   :  { %v2578_v30 = vpop.f32.mrb[129].mxu0  ;;  %v4641_v0 = vpop.f32.mrb[128].mxu1 }
 0x3f4   :  { %v4610_v38 = vpop.f32.mrb[130].mxu0  ;;  %v2756_v10 = vpop.f32.mrb[129].mxu1 }
 0x3f5   :  { %v3928_v35 = vpack.c.bf16 %v4610_v38, %v4609_v28  ;;  %v2581_v19 = vpop.f32.mrb[131].mxu0  ;;  %v4642_v21 = vpop.f32.mrb[130].mxu1 }
 0x3f6   :  { %v3923_v25 = vpack.c.bf16 %v2581_v19, %v2578_v30  ;;  %v3968_v31 = vpack.c.bf16 %v4642_v21, %v4641_v0  ;;  %v2759_v45 = vpop.f32.mrb[131].mxu1 }
 0x3f7   :  { %4112 = vst [vmem:[%s6046_s7 + $0x108] sm:$0xff] %v3928_v35   ;;  %v3963_v4 = vpack.c.bf16 %v2759_v45, %v2756_v10 }
 0x3f8   :  { %4111 = vst [vmem:[%s6046_s7 + $0x100] sm:$0xff] %v3923_v25   ;;  %4120 = vst [vmem:[%s6046_s7 + $0x148] sm:$0xff] %v3968_v31  }
 0x3f9   :  { %4119 = vst [vmem:[%s6046_s7 + $0x140] sm:$0xff] %v3963_v4  }
 0x402   :  { %v4613_v53 = vpop.f32.mrb[132].mxu0 }
 0x403   :  { %v2594_v44 = vpop.f32.mrb[133].mxu0  ;;  %v4645_v61 = vpop.f32.mrb[132].mxu1 }
 0x404   :  { %v4614_v6 = vpop.f32.mrb[134].mxu0  ;;  %v2772_v14 = vpop.f32.mrb[133].mxu1 }
 0x405   :  { %v3938_v43 = vpack.c.bf16 %v4614_v6, %v4613_v53  ;;  %v2597_v40 = vpop.f32.mrb[135].mxu0  ;;  %v4646_v11 = vpop.f32.mrb[134].mxu1 }
 0x406   :  { %v3933_v47 = vpack.c.bf16 %v2597_v40, %v2594_v44  ;;  %v3978_v63 = vpack.c.bf16 %v4646_v11, %v4645_v61  ;;  %v2775_v50 = vpop.f32.mrb[135].mxu1 }
 0x407   :  { %4114 = vst [vmem:[%s6046_s7 + $0x118] sm:$0xff] %v3938_v43   ;;  %v3973_v60 = vpack.c.bf16 %v2775_v50, %v2772_v14 }
 0x408   :  { %4113 = vst [vmem:[%s6046_s7 + $0x110] sm:$0xff] %v3933_v47   ;;  %4122 = vst [vmem:[%s6046_s7 + $0x158] sm:$0xff] %v3978_v63  }
 0x409   :  { %4121 = vst [vmem:[%s6046_s7 + $0x150] sm:$0xff] %v3973_v60  }
 0x412   :  { %v4617_v1 = vpop.f32.mrb[136].mxu0 }
 0x413   :  { %v2610_v3 = vpop.f32.mrb[137].mxu0  ;;  %v4649_v41 = vpop.f32.mrb[136].mxu1 }
 0x414   :  { %v4618_v22 = vpop.f32.mrb[138].mxu0  ;;  %v2788_v5 = vpop.f32.mrb[137].mxu1 }
 0x415   :  { %v3948_v8 = vpack.c.bf16 %v4618_v22, %v4617_v1  ;;  %v2613_v9 = vpop.f32.mrb[139].mxu0  ;;  %v4650_v42 = vpop.f32.mrb[138].mxu1 }
 0x416   :  { %v3943_v20 = vpack.c.bf16 %v2613_v9, %v2610_v3  ;;  %v3988_v27 = vpack.c.bf16 %v4650_v42, %v4649_v41  ;;  %v2791_v29 = vpop.f32.mrb[139].mxu1 }
 0x417   :  { %4116 = vst [vmem:[%s6046_s7 + $0x128] sm:$0xff] %v3948_v8   ;;  %v3983_v2 = vpack.c.bf16 %v2791_v29, %v2788_v5 }
 0x418   :  { %4115 = vst [vmem:[%s6046_s7 + $0x120] sm:$0xff] %v3943_v20   ;;  %4124 = vst [vmem:[%s6046_s7 + $0x168] sm:$0xff] %v3988_v27  }
 0x419   :  { %4123 = vst [vmem:[%s6046_s7 + $0x160] sm:$0xff] %v3983_v2  }
 0x422   :  { %v4621_v51 = vpop.f32.mrb[140].mxu0 }
 0x423   :  { %v2626_v37 = vpop.f32.mrb[141].mxu0  ;;  %v4653_v48 = vpop.f32.mrb[140].mxu1 }
 0x424   :  { %v4622_v32 = vpop.f32.mrb[142].mxu0  ;;  %v2804_v24 = vpop.f32.mrb[141].mxu1 }
 0x425   :  { %v3958_v56 = vpack.c.bf16 %v4622_v32, %v4621_v51  ;;  %v2629_v23 = vpop.f32.mrb[143].mxu0  ;;  %v4654_v33 = vpop.f32.mrb[142].mxu1 }
 0x426   :  { %v3953_v59 = vpack.c.bf16 %v2629_v23, %v2626_v37  ;;  %v3998_v46 = vpack.c.bf16 %v4654_v33, %v4653_v48  ;;  %v2807_v12 = vpop.f32.mrb[143].mxu1 }
 0x427   :  { %4118 = vst [vmem:[%s6046_s7 + $0x138] sm:$0xff] %v3958_v56   ;;  %v3993_v57 = vpack.c.bf16 %v2807_v12, %v2804_v24 }
 0x428   :  { %4117 = vst [vmem:[%s6046_s7 + $0x130] sm:$0xff] %v3953_v59   ;;  %4126 = vst [vmem:[%s6046_s7 + $0x178] sm:$0xff] %v3998_v46  }
 0x429   :  { %4125 = vst [vmem:[%s6046_s7 + $0x170] sm:$0xff] %v3993_v57  }
 0x432   :  { %v4673_v52 = vpop.f32.mrb[144].mxu0 }
 0x433   :  { %v2934_v39 = vpop.f32.mrb[145].mxu0 }
 0x434   :  { %v4705_v55 = vpop.f32.mrb[144].mxu1  ;;  %v4674_v58 = vpop.f32.mrb[146].mxu0 }
 0x435   :  { %v4008_v26 = vpack.c.bf16 %v4674_v58, %v4673_v52  ;;  %v3112_v7 = vpop.f32.mrb[145].mxu1  ;;  %v2937_v34 = vpop.f32.mrb[147].mxu0 }
 0x436   :  { %v4003_v49 = vpack.c.bf16 %v2937_v34, %v2934_v39  ;;  %v4706_v62 = vpop.f32.mrb[146].mxu1 }
 0x437   :  { %4128 = vst [vmem:[%s6046_s7 + $0x188] sm:$0xff] %v4008_v26   ;;  %v4048_v18 = vpack.c.bf16 %v4706_v62, %v4705_v55  ;;  %v3115_v54 = vpop.f32.mrb[147].mxu1 }
 0x438   :  { %4127 = vst [vmem:[%s6046_s7 + $0x180] sm:$0xff] %v4003_v49   ;;  %v4043_v36 = vpack.c.bf16 %v3115_v54, %v3112_v7 }
 0x439   :  { %4136 = vst [vmem:[%s6046_s7 + $0x1c8] sm:$0xff] %v4048_v18  }
 0x43a   :  { %4135 = vst [vmem:[%s6046_s7 + $0x1c0] sm:$0xff] %v4043_v36   ;;  %v4677_v13 = vpop.f32.mrb[148].mxu0 }
 0x43b   :  { %v2950_v15 = vpop.f32.mrb[149].mxu0 }
 0x43c   :  { %v4709_v16 = vpop.f32.mrb[148].mxu1  ;;  %v4678_v17 = vpop.f32.mrb[150].mxu0 }
 0x43d   :  { %v4018_v28 = vpack.c.bf16 %v4678_v17, %v4677_v13  ;;  %v3128_v30 = vpop.f32.mrb[149].mxu1  ;;  %v2953_v0 = vpop.f32.mrb[151].mxu0 }
 0x43e   :  { %v4013_v38 = vpack.c.bf16 %v2953_v0, %v2950_v15  ;;  %v4710_v10 = vpop.f32.mrb[150].mxu1 }
 0x43f   :  { %4130 = vst [vmem:[%s6046_s7 + $0x198] sm:$0xff] %v4018_v28   ;;  %v4058_v35 = vpack.c.bf16 %v4710_v10, %v4709_v16  ;;  %v3131_v19 = vpop.f32.mrb[151].mxu1 }
 0x440   :  { %4129 = vst [vmem:[%s6046_s7 + $0x190] sm:$0xff] %v4013_v38   ;;  %v4053_v21 = vpack.c.bf16 %v3131_v19, %v3128_v30 }
 0x441   :  { %4138 = vst [vmem:[%s6046_s7 + $0x1d8] sm:$0xff] %v4058_v35  }
 0x442   :  { %4137 = vst [vmem:[%s6046_s7 + $0x1d0] sm:$0xff] %v4053_v21   ;;  %v4681_v25 = vpop.f32.mrb[152].mxu0 }
 0x443   :  { %v2966_v31 = vpop.f32.mrb[153].mxu0 }
 0x444   :  { %v4713_v45 = vpop.f32.mrb[152].mxu1  ;;  %v4682_v4 = vpop.f32.mrb[154].mxu0 }
 0x445   :  { %v4028_v53 = vpack.c.bf16 %v4682_v4, %v4681_v25  ;;  %v3144_v44 = vpop.f32.mrb[153].mxu1  ;;  %v2969_v61 = vpop.f32.mrb[155].mxu0 }
 0x446   :  { %v4023_v6 = vpack.c.bf16 %v2969_v61, %v2966_v31  ;;  %v4714_v14 = vpop.f32.mrb[154].mxu1 }
 0x447   :  { %4132 = vst [vmem:[%s6046_s7 + $0x1a8] sm:$0xff] %v4028_v53   ;;  %v4068_v43 = vpack.c.bf16 %v4714_v14, %v4713_v45  ;;  %v3147_v40 = vpop.f32.mrb[155].mxu1 }
 0x448   :  { %4131 = vst [vmem:[%s6046_s7 + $0x1a0] sm:$0xff] %v4023_v6   ;;  %v4063_v11 = vpack.c.bf16 %v3147_v40, %v3144_v44 }
 0x449   :  { %4140 = vst [vmem:[%s6046_s7 + $0x1e8] sm:$0xff] %v4068_v43  }
 0x44a   :  { %4139 = vst [vmem:[%s6046_s7 + $0x1e0] sm:$0xff] %v4063_v11   ;;  %v4685_v47 = vpop.f32.mrb[156].mxu0 }
 0x44b   :  { %v2982_v63 = vpop.f32.mrb[157].mxu0 }
 0x44c   :  { %v4717_v50 = vpop.f32.mrb[156].mxu1  ;;  %v4686_v60 = vpop.f32.mrb[158].mxu0 }
 0x44d   :  { %v4038_v1 = vpack.c.bf16 %v4686_v60, %v4685_v47  ;;  %v3160_v3 = vpop.f32.mrb[157].mxu1  ;;  %v2985_v41 = vpop.f32.mrb[159].mxu0 }
 0x44e   :  { %v4033_v22 = vpack.c.bf16 %v2985_v41, %v2982_v63  ;;  %v4718_v5 = vpop.f32.mrb[158].mxu1 }
 0x44f   :  { %4134 = vst [vmem:[%s6046_s7 + $0x1b8] sm:$0xff] %v4038_v1   ;;  %v4078_v8 = vpack.c.bf16 %v4718_v5, %v4717_v50  ;;  %v3163_v9 = vpop.f32.mrb[159].mxu1 }
 0x450   :  { %4133 = vst [vmem:[%s6046_s7 + $0x1b0] sm:$0xff] %v4033_v22   ;;  %v4073_v42 = vpack.c.bf16 %v3163_v9, %v3160_v3 }
 0x451   :  { %4142 = vst [vmem:[%s6046_s7 + $0x1f8] sm:$0xff] %v4078_v8  }
 0x452   :  { %4141 = vst [vmem:[%s6046_s7 + $0x1f0] sm:$0xff] %v4073_v42  }

</bundles_post_ra>
